<compile_context>
chip_gen: v7x
topology: tpu7x:2x2x1
jax: 0.10.0
libtpu: 0.0.40
codegen_flags: <defaults>
</compile_context>

<pallas_src>
import math
from functools import partial

import jax
import jax.numpy as jnp
from jax import lax
from jax.experimental import pallas as pl
from jax.experimental.pallas import tpu as pltpu


# ------------------------- in-kernel math helpers -------------------------

def _erf(x):
    # Abramowitz & Stegun 7.1.26 rational approximation (|err| < 1.5e-7).
    # exp lands on the EUP slot; the polynomial is a handful of VPU FMAs.
    a1, a2, a3, a4, a5 = 0.254829592, -0.284496736, 1.421413741, -1.453152027, 1.061405429
    p = 0.3275911
    ax = jnp.abs(x)
    t = 1.0 / (1.0 + p * ax)
    poly = ((((a5 * t + a4) * t + a3) * t + a2) * t + a1) * t
    y = 1.0 - poly * jnp.exp(-ax * ax)
    return jnp.where(x >= 0.0, y, -y)


def _gelu(x):
    # HF BERT default hidden_act = "gelu" (exact, erf-based).
    return 0.5 * x * (1.0 + _erf(x * (1.0 / math.sqrt(2.0))))


def _layernorm(x, gamma, beta, eps=1e-12):
    # Two-pass (centered) variance: safer than E[x^2]-mean^2 when |mean| >> std.
    mu = jnp.mean(x, axis=-1, keepdims=True)
    xc = x - mu
    var = jnp.mean(xc * xc, axis=-1, keepdims=True)
    return xc * lax.rsqrt(var + eps) * gamma + beta


def _softmax_last(x):
    # reciprocal-then-multiply: the expensive part goes to the EUP slot.
    x = x - jnp.max(x, axis=-1, keepdims=True)
    e = jnp.exp(x)
    r = pl.reciprocal(jnp.sum(e, axis=-1, keepdims=True), approx=True)
    return e * r


# ------------------------------- kernel ------------------------------------

def _bert_layer_kernel(num_heads, head_dim, seq_tile, hidden,
                       x_ref,
                       wq_ref, bq_ref, wkv_ref, bkv_ref,
                       wo_ref, bo_ref, g1_ref, be1_ref,
                       wi_ref, bi_ref, w2_ref, b2_ref, g2_ref, be2_ref,
                       o_ref,
                       k_s, v_s, q_s, ctx_s):
    """One BertLayer; grid = (batch, seq_tiles)."""
    t = pl.program_id(1)
    dh = head_dim
    H = hidden
    f32 = jnp.float32
    bf16 = jnp.bfloat16

    # ---- per-batch prologue: K / V for the full sequence, kept resident ----
    # One full-width (S,H)@(H,2H) GEMM, then head-major scatter (lane slices).
    @pl.when(t == 0)
    def _():
        xb = x_ref[0].astype(bf16)                              # (S, H)
        kv = (jnp.dot(xb, wkv_ref[...], preferred_element_type=f32)
              + bkv_ref[...]).astype(bf16)                      # (S, 2H)
        # TODO(synk): store K as (nh, dh, S) (lane-dense along S) once the
        #             in-kernel per-head 2D transpose is worth the lowering risk.
        for h in range(num_heads):
            k_s[h] = kv[:, h * dh:(h + 1) * dh]
            v_s[h] = kv[:, H + h * dh:H + (h + 1) * dh]

    # ---- query tile: one full-width (tS,H)@(H,H) GEMM (scale folded in) ----
    row0 = pl.multiple_of(t * seq_tile, seq_tile)
    xq = x_ref[0, pl.ds(row0, seq_tile), :]                     # (tS, H) f32
    xq_bf = xq.astype(bf16)

    q2 = (jnp.dot(xq_bf, wq_ref[...], preferred_element_type=f32)
          + bq_ref[...]).astype(bf16)                           # (tS, H), pre-scaled
    for h in range(num_heads):
        q_s[h] = q2[:, h * dh:(h + 1) * dh]

    # ---- attention: all heads batched in single dot_generals ----
    q3 = q_s[...]                                               # (nh, tS, dh) bf16
    k3 = k_s[...]                                               # (nh, S,  dh) bf16
    v3 = v_s[...]                                               # (nh, S,  dh) bf16
    # TODO(synk): for S >~ 1024 switch to a KV-tiled online-softmax over the
    #             resident K/V to avoid materializing full (nh, tS, S) scores.
    scores = lax.dot_general(q3, k3, (((2,), (2,)), ((0,), (0,))),
                             preferred_element_type=f32)        # (nh, tS, S)
    probs = _softmax_last(scores).astype(bf16)                  # attn dropout = identity
    ctx = lax.dot_general(probs, v3, (((2,), (1,)), ((0,), (0,))),
                          preferred_element_type=f32)           # (nh, tS, dh)

    # merge heads into one (tS, H) buffer, then ONE K=H output projection.
    # TODO(synk): a 2-contracting-dim dot_general(ctx, wo3) would skip this
    #             merge but is not supported by the Mosaic dot lowering.
    for h in range(num_heads):
        ctx_s[:, h * dh:(h + 1) * dh] = ctx[h].astype(bf16)
    attn = jnp.dot(ctx_s[...], wo_ref[...], preferred_element_type=f32) + bo_ref[...]

    h1 = _layernorm(attn + xq, g1_ref[...], be1_ref[...])       # add & LN (f32)

    # ---- FFN (GELU) ----
    inter = _gelu(jnp.dot(h1.astype(bf16), wi_ref[...],
                          preferred_element_type=f32) + bi_ref[...])
    ffn = jnp.dot(inter.astype(bf16), w2_ref[...],
                  preferred_element_type=f32) + b2_ref[...]
    out = _layernorm(ffn + h1, g2_ref[...], be2_ref[...])       # add & LN (f32)

    o_ref[0] = out.astype(o_ref.dtype)


# --------------------------- VMEM budgeting ---------------------------------

def _round_up(x, m):
    return ((x + m - 1) // m) * m


def _vmem_budget_bytes():
    """Generation-aware scoped-VMEM budget (cap ~48 MiB on 64 MiB parts,
    ~100 MiB on 128 MiB parts), with headroom for Mosaic internal scratch."""
    cap = 64 << 20          # conservative default (v7x per-core VMEM)
    try:
        info = pltpu.get_tpu_info()
        cap = int(getattr(info, "vmem_capacity_bytes", cap))
    except Exception:
        pass
    return int(min(cap - (16 << 20), 100 << 20))


def _vmem_estimate(S, H, I, nh, dh, tS, single_buf_weights):
    """Rough per-grid-step VMEM bytes: blocks + scratch + f32 temporaries."""
    bf, f32 = 2, 4
    dh_p = _round_up(dh, 128)
    H_p = _round_up(H, 128)
    H2_p = _round_up(2 * H, 128)
    I_p = _round_up(I, 128)
    S_p = _round_up(S, 128)

    weights = (H * H_p + H * H2_p + H * H_p + H * I_p + I * H_p) * bf
    biases = (6 * H_p + H2_p + I_p) * f32
    wmult = 1 if single_buf_weights else 2

    x_blk = 2 * S * H_p * f32                       # double-buffered activation block
    o_blk = 2 * tS * H_p * f32
    scratch = (2 * nh * S * dh_p + nh * tS * dh_p + tS * H_p) * bf
    scores = nh * tS * S_p * f32
    probs = nh * tS * S_p * bf
    ctx_f32 = nh * tS * dh_p * f32
    kv_tmp = S * H2_p * (f32 + bf)                  # prologue (S,2H) temporaries
    ffn_tmp = tS * I_p * (f32 + bf)                 # FFN intermediate
    misc = 8 * tS * H_p * f32                       # residuals / LN temporaries

    return (wmult * (weights + biases) + x_blk + o_blk + scratch
            + scores + probs + ctx_f32 + kv_tmp + ffn_tmp + misc)


def _choose_seq_tile(S, H, I, nh, dh, budget):
    cands = [c for c in (512, 256, 128) if S % c == 0] or [S]
    for c in cands:
        if _vmem_estimate(S, H, I, nh, dh, c, True) <= budget:
            return c
    return cands[-1]


# ------------------------------ wrapper -------------------------------------

def _const_spec(shape, single_buffer):
    idx = lambda b, t: (0,) * len(shape)
    if single_buffer:
        # constant-index weights: no point double-buffering them.
        return pl.BlockSpec(shape, idx, pipeline_mode=pl.Buffered(1))
    return pl.BlockSpec(shape, idx)


def prepare_layer_params(p, num_heads):
    """One-time host-side packing: bf16 casts, K|V fusion, 1/sqrt(dh) folding.
    Do NOT call per forward - pass the prepared dict to bert_encoder."""
    H = p["wq"].shape[0]
    dh = H // num_heads
    scale = 1.0 / math.sqrt(dh)
    bf16 = jnp.bfloat16
    f32 = jnp.float32
    return dict(
        wq=(p["wq"] * scale).astype(bf16),
        bq=(p["bq"] * scale).astype(f32),
        wkv=jnp.concatenate([p["wk"], p["wv"]], axis=1).astype(bf16),
        bkv=jnp.concatenate([p["bk"], p["bv"]], axis=1).astype(f32),
        wo=p["wo"].astype(bf16), bo=p["bo"].astype(f32),
        ln1_g=p["ln1_g"].astype(f32), ln1_b=p["ln1_b"].astype(f32),
        wi=p["wi"].astype(bf16), bi=p["bi"].astype(f32),
        w2=p["w2"].astype(bf16), b2=p["b2"].astype(f32),
        ln2_g=p["ln2_g"].astype(f32), ln2_b=p["ln2_b"].astype(f32),
    )


def prepare_encoder_params(layer_params, num_heads):
    return [prepare_layer_params(p, num_heads) for p in layer_params]


def bert_layer(x, pp, num_heads):
    """x: (B, S, H) float32; pp: prepared (packed bf16) layer parameters."""
    B, S, H = x.shape
    dh = H // num_heads
    assert num_heads * dh == H
    I = pp["wi"].shape[1]
    bf16 = jnp.bfloat16

    budget = _vmem_budget_bytes()
    tS = _choose_seq_tile(S, H, I, num_heads, dh, budget)
    num_tiles = S // tS

    args = (x,
            pp["wq"], pp["bq"], pp["wkv"], pp["bkv"],
            pp["wo"], pp["bo"], pp["ln1_g"], pp["ln1_b"],
            pp["wi"], pp["bi"], pp["w2"], pp["b2"], pp["ln2_g"], pp["ln2_b"])

    scratch_shapes = [
        pltpu.VMEM((num_heads, S, dh), bf16),    # K, full sequence (resident)
        pltpu.VMEM((num_heads, S, dh), bf16),    # V, full sequence (resident)
        pltpu.VMEM((num_heads, tS, dh), bf16),   # Q, current tile (head-major)
        pltpu.VMEM((tS, H), bf16),               # merged attention context
    ]

    def build(single_buf):
        est = _vmem_estimate(S, H, I, num_heads, dh, tS, single_buf)
        vmem_limit = int(min(max(est + (4 << 20), 32 << 20), budget))
        in_specs = [pl.BlockSpec((1, S, H), lambda b, t: (b, 0, 0))]
        in_specs += [_const_spec(a.shape, single_buf) for a in args[1:]]
        # TODO(synk): on v7x with B == 1, add a leading size-2 "parallel" core
        #             axis splitting the seq tiles so both TensorCores are busy.
        return pl.pallas_call(
            partial(_bert_layer_kernel, num_heads, dh, tS, H),
            out_shape=jax.ShapeDtypeStruct((B, S, H), x.dtype),
            grid=(B, num_tiles),
            in_specs=in_specs,
            out_specs=pl.BlockSpec((1, tS, H), lambda b, t: (b, t, 0)),
            scratch_shapes=scratch_shapes,
            compiler_params=pltpu.CompilerParams(
                dimension_semantics=("parallel", "arbitrary"),
                vmem_limit_bytes=vmem_limit),
        )

    try:
        return build(True)(*args)          # single-buffered constant weights
    except Exception:
        return build(False)(*args)         # fallback: default double buffering


def bert_encoder(hidden_states, prepared_layer_params, num_heads):
    """Mirrors BertEncoder.forward with attention_mask=head_mask=None,
    output_attentions=output_hidden_states=None -> returns (hidden_states,)."""
    # TODO(synk): cross-layer weight prefetch (cross-pallas_call DMA future)
    #             would hide each layer's cold weight DMA behind the previous
    #             layer's compute.
    for pp in prepared_layer_params:
        hidden_states = bert_layer(hidden_states, pp, num_heads)
    return (hidden_states,)


# ---------------------------- parameter init --------------------------------

def init_layer_params(key, hidden, intermediate):
    ks = jax.random.split(key, 6)
    n = lambda k, shape: (0.02 * jax.random.normal(k, shape)).astype(jnp.float32)
    H, I = hidden, intermediate
    return dict(
        wq=n(ks[0], (H, H)), bq=jnp.zeros((1, H), jnp.float32),
        wk=n(ks[1], (H, H)), bk=jnp.zeros((1, H), jnp.float32),
        wv=n(ks[2], (H, H)), bv=jnp.zeros((1, H), jnp.float32),
        wo=n(ks[3], (H, H)), bo=jnp.zeros((1, H), jnp.float32),
        ln1_g=jnp.ones((1, H), jnp.float32), ln1_b=jnp.zeros((1, H), jnp.float32),
        wi=n(ks[4], (H, I)), bi=jnp.zeros((1, I), jnp.float32),
        w2=n(ks[5], (I, H)), b2=jnp.zeros((1, H), jnp.float32),
        ln2_g=jnp.ones((1, H), jnp.float32), ln2_b=jnp.zeros((1, H), jnp.float32),
    )


# TODO(synk): gradient_checkpointing / output_attentions / output_hidden_states /
#             encoder_hidden_states (cross-attention) / attention_mask branches
#             are not exercised (defaults None/False in the reference forward).

if __name__ == "__main__":
    B, S, H = 2, 8, 32          # batch, seq, hidden
    NUM_HEADS = 4
    INTERMEDIATE = 64
    NUM_LAYERS = 2

    root = jax.random.PRNGKey(0)
    kx, kp = jax.random.split(root)
    hidden_states = jax.random.normal(kx, (B, S, H), dtype=jnp.float32)

    layer_keys = jax.random.split(kp, NUM_LAYERS)
    layer_params = [init_layer_params(k, H, INTERMEDIATE) for k in layer_keys]
    prepared = prepare_encoder_params(layer_params, NUM_HEADS)   # one-time packing

    outputs = bert_encoder(hidden_states, prepared, NUM_HEADS)
    out = jax.block_until_ready(outputs[0])
    assert out.shape == (B, S, H) and out.dtype == jnp.float32
    assert bool(jnp.all(jnp.isfinite(out)))
    print("KERNEL_OK")
</pallas_src>

<mosaic_0001>
module attributes {stable_mosaic.version = 11 : i64} {
  func.func @_bert_layer_kernel(%arg0: i32, %arg1: i32, %arg2: memref<1x8x32xf32, #tpu.memory_space<vmem>>, %arg3: memref<32x32xbf16, #tpu.memory_space<vmem>>, %arg4: memref<1x32xf32, #tpu.memory_space<vmem>>, %arg5: memref<32x64xbf16, #tpu.memory_space<vmem>>, %arg6: memref<1x64xf32, #tpu.memory_space<vmem>>, %arg7: memref<32x32xbf16, #tpu.memory_space<vmem>>, %arg8: memref<1x32xf32, #tpu.memory_space<vmem>>, %arg9: memref<1x32xf32, #tpu.memory_space<vmem>>, %arg10: memref<1x32xf32, #tpu.memory_space<vmem>>, %arg11: memref<32x64xbf16, #tpu.memory_space<vmem>>, %arg12: memref<1x64xf32, #tpu.memory_space<vmem>>, %arg13: memref<64x32xbf16, #tpu.memory_space<vmem>>, %arg14: memref<1x32xf32, #tpu.memory_space<vmem>>, %arg15: memref<1x32xf32, #tpu.memory_space<vmem>>, %arg16: memref<1x32xf32, #tpu.memory_space<vmem>>, %arg17: memref<1x8x32xf32, #tpu.memory_space<vmem>>, %arg18: memref<4x8x8xbf16, #tpu.memory_space<vmem>>, %arg19: memref<4x8x8xbf16, #tpu.memory_space<vmem>>, %arg20: memref<4x8x8xbf16, #tpu.memory_space<vmem>>, %arg21: memref<8x32xbf16, #tpu.memory_space<vmem>>) attributes {dimension_semantics = [#tpu.dimension_semantics<parallel>, #tpu.dimension_semantics<arbitrary>], iteration_bounds = array<i64: 2, 1>, scalar_prefetch = 0 : i64, scratch_operands = 4 : i64, tpu.core_type = #tpu.core_type<tc>, window_params = [{transform_indices = @transform_0, window_bounds = array<i64: 1, 8, 32>}, {pipeline_mode = #tpu.pipeline_mode<synchronous>, transform_indices = @transform_1, window_bounds = array<i64: 32, 32>}, {pipeline_mode = #tpu.pipeline_mode<synchronous>, transform_indices = @transform_2, window_bounds = array<i64: 1, 32>}, {pipeline_mode = #tpu.pipeline_mode<synchronous>, transform_indices = @transform_3, window_bounds = array<i64: 32, 64>}, {pipeline_mode = #tpu.pipeline_mode<synchronous>, transform_indices = @transform_4, window_bounds = array<i64: 1, 64>}, {pipeline_mode = #tpu.pipeline_mode<synchronous>, transform_indices = @transform_5, window_bounds = array<i64: 32, 32>}, {pipeline_mode = #tpu.pipeline_mode<synchronous>, transform_indices = @transform_6, window_bounds = array<i64: 1, 32>}, {pipeline_mode = #tpu.pipeline_mode<synchronous>, transform_indices = @transform_7, window_bounds = array<i64: 1, 32>}, {pipeline_mode = #tpu.pipeline_mode<synchronous>, transform_indices = @transform_8, window_bounds = array<i64: 1, 32>}, {pipeline_mode = #tpu.pipeline_mode<synchronous>, transform_indices = @transform_9, window_bounds = array<i64: 32, 64>}, {pipeline_mode = #tpu.pipeline_mode<synchronous>, transform_indices = @transform_10, window_bounds = array<i64: 1, 64>}, {pipeline_mode = #tpu.pipeline_mode<synchronous>, transform_indices = @transform_11, window_bounds = array<i64: 64, 32>}, {pipeline_mode = #tpu.pipeline_mode<synchronous>, transform_indices = @transform_12, window_bounds = array<i64: 1, 32>}, {pipeline_mode = #tpu.pipeline_mode<synchronous>, transform_indices = @transform_13, window_bounds = array<i64: 1, 32>}, {pipeline_mode = #tpu.pipeline_mode<synchronous>, transform_indices = @transform_14, window_bounds = array<i64: 1, 32>}, {transform_indices = @transform_15, window_bounds = array<i64: 1, 8, 32>}]} {
    %c0_i32 = arith.constant 0 : i32
    %0 = arith.cmpi eq, %arg1, %c0_i32 : i32
    %1 = arith.extui %0 : i1 to i32
    %c0_i32_0 = arith.constant 0 : i32
    %2 = arith.cmpi ne, %1, %c0_i32_0 : i32
    scf.if %2 {
      %c0_86 = arith.constant 0 : index
      %c0_87 = arith.constant 0 : index
      %c0_88 = arith.constant 0 : index
      %170 = vector.load %arg2[%c0_86, %c0_87, %c0_88] : memref<1x8x32xf32, #tpu.memory_space<vmem>>, vector<1x8x32xf32>
      %171 = vector.shape_cast %170 : vector<1x8x32xf32> to vector<8x32xf32>
      %172 = arith.truncf %171 : vector<8x32xf32> to vector<8x32xbf16>
      %c0_89 = arith.constant 0 : index
      %c0_90 = arith.constant 0 : index
      %173 = vector.load %arg5[%c0_89, %c0_90] : memref<32x64xbf16, #tpu.memory_space<vmem>>, vector<32x64xbf16>
      %cst_91 = arith.constant dense<0.000000e+00> : vector<8x64xf32>
      %174 = tpu.matmul %172, %173, %cst_91 {dimension_numbers = #tpu.dot_dimension_numbers<[1], [0], [0], [1], [0, 0, 1, 1], [], []>} : vector<8x32xbf16>, vector<32x64xbf16>, vector<8x64xf32> -> vector<8x64xf32>
      %c0_92 = arith.constant 0 : index
      %c0_93 = arith.constant 0 : index
      %175 = vector.load %arg6[%c0_92, %c0_93] : memref<1x64xf32, #tpu.memory_space<vmem>>, vector<1x64xf32>
      %176 = vector.broadcast %175 : vector<1x64xf32> to vector<8x64xf32>
      %177 = arith.addf %174, %176 : vector<8x64xf32>
      %178 = arith.truncf %177 : vector<8x64xf32> to vector<8x64xbf16>
      %179 = vector.extract_strided_slice %178 {offsets = [0, 0], sizes = [8, 8], strides = [1, 1]} : vector<8x64xbf16> to vector<8x8xbf16>
      %c0_94 = arith.constant 0 : index
      %c0_95 = arith.constant 0 : index
      %c0_96 = arith.constant 0 : index
      %180 = vector.load %arg18[%c0_94, %c0_95, %c0_96] : memref<4x8x8xbf16, #tpu.memory_space<vmem>>, vector<1x8x8xbf16>
      %181 = vector.shape_cast %180 : vector<1x8x8xbf16> to vector<8x8xbf16>
      %182 = vector.shape_cast %179 : vector<8x8xbf16> to vector<1x8x8xbf16>
      tpu.vector_store %arg18[%c0_94, %c0_95, %c0_96], %182 {strides = array<i32>} : memref<4x8x8xbf16, #tpu.memory_space<vmem>>, vector<1x8x8xbf16>,
      %183 = vector.extract_strided_slice %178 {offsets = [0, 32], sizes = [8, 8], strides = [1, 1]} : vector<8x64xbf16> to vector<8x8xbf16>
      %c0_97 = arith.constant 0 : index
      %c0_98 = arith.constant 0 : index
      %c0_99 = arith.constant 0 : index
      %184 = vector.load %arg19[%c0_97, %c0_98, %c0_99] : memref<4x8x8xbf16, #tpu.memory_space<vmem>>, vector<1x8x8xbf16>
      %185 = vector.shape_cast %184 : vector<1x8x8xbf16> to vector<8x8xbf16>
      %186 = vector.shape_cast %183 : vector<8x8xbf16> to vector<1x8x8xbf16>
      tpu.vector_store %arg19[%c0_97, %c0_98, %c0_99], %186 {strides = array<i32>} : memref<4x8x8xbf16, #tpu.memory_space<vmem>>, vector<1x8x8xbf16>,
      %187 = vector.extract_strided_slice %178 {offsets = [0, 8], sizes = [8, 8], strides = [1, 1]} : vector<8x64xbf16> to vector<8x8xbf16>
      %c1_100 = arith.constant 1 : index
      %c0_101 = arith.constant 0 : index
      %c0_102 = arith.constant 0 : index
      %188 = vector.load %arg18[%c1_100, %c0_101, %c0_102] : memref<4x8x8xbf16, #tpu.memory_space<vmem>>, vector<1x8x8xbf16>
      %189 = vector.shape_cast %188 : vector<1x8x8xbf16> to vector<8x8xbf16>
      %190 = vector.shape_cast %187 : vector<8x8xbf16> to vector<1x8x8xbf16>
      tpu.vector_store %arg18[%c1_100, %c0_101, %c0_102], %190 {strides = array<i32>} : memref<4x8x8xbf16, #tpu.memory_space<vmem>>, vector<1x8x8xbf16>,
      %191 = vector.extract_strided_slice %178 {offsets = [0, 40], sizes = [8, 8], strides = [1, 1]} : vector<8x64xbf16> to vector<8x8xbf16>
      %c1_103 = arith.constant 1 : index
      %c0_104 = arith.constant 0 : index
      %c0_105 = arith.constant 0 : index
      %192 = vector.load %arg19[%c1_103, %c0_104, %c0_105] : memref<4x8x8xbf16, #tpu.memory_space<vmem>>, vector<1x8x8xbf16>
      %193 = vector.shape_cast %192 : vector<1x8x8xbf16> to vector<8x8xbf16>
      %194 = vector.shape_cast %191 : vector<8x8xbf16> to vector<1x8x8xbf16>
      tpu.vector_store %arg19[%c1_103, %c0_104, %c0_105], %194 {strides = array<i32>} : memref<4x8x8xbf16, #tpu.memory_space<vmem>>, vector<1x8x8xbf16>,
      %195 = vector.extract_strided_slice %178 {offsets = [0, 16], sizes = [8, 8], strides = [1, 1]} : vector<8x64xbf16> to vector<8x8xbf16>
      %c2_106 = arith.constant 2 : index
      %c0_107 = arith.constant 0 : index
      %c0_108 = arith.constant 0 : index
      %196 = vector.load %arg18[%c2_106, %c0_107, %c0_108] : memref<4x8x8xbf16, #tpu.memory_space<vmem>>, vector<1x8x8xbf16>
      %197 = vector.shape_cast %196 : vector<1x8x8xbf16> to vector<8x8xbf16>
      %198 = vector.shape_cast %195 : vector<8x8xbf16> to vector<1x8x8xbf16>
      tpu.vector_store %arg18[%c2_106, %c0_107, %c0_108], %198 {strides = array<i32>} : memref<4x8x8xbf16, #tpu.memory_space<vmem>>, vector<1x8x8xbf16>,
      %199 = vector.extract_strided_slice %178 {offsets = [0, 48], sizes = [8, 8], strides = [1, 1]} : vector<8x64xbf16> to vector<8x8xbf16>
      %c2_109 = arith.constant 2 : index
      %c0_110 = arith.constant 0 : index
      %c0_111 = arith.constant 0 : index
      %200 = vector.load %arg19[%c2_109, %c0_110, %c0_111] : memref<4x8x8xbf16, #tpu.memory_space<vmem>>, vector<1x8x8xbf16>
      %201 = vector.shape_cast %200 : vector<1x8x8xbf16> to vector<8x8xbf16>
      %202 = vector.shape_cast %199 : vector<8x8xbf16> to vector<1x8x8xbf16>
      tpu.vector_store %arg19[%c2_109, %c0_110, %c0_111], %202 {strides = array<i32>} : memref<4x8x8xbf16, #tpu.memory_space<vmem>>, vector<1x8x8xbf16>,
      %203 = vector.extract_strided_slice %178 {offsets = [0, 24], sizes = [8, 8], strides = [1, 1]} : vector<8x64xbf16> to vector<8x8xbf16>
      %c3_112 = arith.constant 3 : index
      %c0_113 = arith.constant 0 : index
      %c0_114 = arith.constant 0 : index
      %204 = vector.load %arg18[%c3_112, %c0_113, %c0_114] : memref<4x8x8xbf16, #tpu.memory_space<vmem>>, vector<1x8x8xbf16>
      %205 = vector.shape_cast %204 : vector<1x8x8xbf16> to vector<8x8xbf16>
      %206 = vector.shape_cast %203 : vector<8x8xbf16> to vector<1x8x8xbf16>
      tpu.vector_store %arg18[%c3_112, %c0_113, %c0_114], %206 {strides = array<i32>} : memref<4x8x8xbf16, #tpu.memory_space<vmem>>, vector<1x8x8xbf16>,
      %207 = vector.extract_strided_slice %178 {offsets = [0, 56], sizes = [8, 8], strides = [1, 1]} : vector<8x64xbf16> to vector<8x8xbf16>
      %c3_115 = arith.constant 3 : index
      %c0_116 = arith.constant 0 : index
      %c0_117 = arith.constant 0 : index
      %208 = vector.load %arg19[%c3_115, %c0_116, %c0_117] : memref<4x8x8xbf16, #tpu.memory_space<vmem>>, vector<1x8x8xbf16>
      %209 = vector.shape_cast %208 : vector<1x8x8xbf16> to vector<8x8xbf16>
      %210 = vector.shape_cast %207 : vector<8x8xbf16> to vector<1x8x8xbf16>
      tpu.vector_store %arg19[%c3_115, %c0_116, %c0_117], %210 {strides = array<i32>} : memref<4x8x8xbf16, #tpu.memory_space<vmem>>, vector<1x8x8xbf16>,
    } else {
    }
    %c8_i32 = arith.constant 8 : i32
    %3 = arith.muli %arg1, %c8_i32 : i32
    %4 = tpu.assume_multiple %3, 8 : i32
    %c0 = arith.constant 0 : index
    %5 = arith.index_cast %4 : i32 to index
    %c0_1 = arith.constant 0 : index
    %6 = vector.load %arg2[%c0, %5, %c0_1] : memref<1x8x32xf32, #tpu.memory_space<vmem>>, vector<1x8x32xf32>
    %7 = vector.shape_cast %6 : vector<1x8x32xf32> to vector<8x32xf32>
    %8 = arith.truncf %7 : vector<8x32xf32> to vector<8x32xbf16>
    %c0_2 = arith.constant 0 : index
    %c0_3 = arith.constant 0 : index
    %9 = vector.load %arg3[%c0_2, %c0_3] : memref<32x32xbf16, #tpu.memory_space<vmem>>, vector<32x32xbf16>
    %cst = arith.constant dense<0.000000e+00> : vector<8x32xf32>
    %10 = tpu.matmul %8, %9, %cst {dimension_numbers = #tpu.dot_dimension_numbers<[1], [0], [0], [1], [0, 0, 1, 1], [], []>} : vector<8x32xbf16>, vector<32x32xbf16>, vector<8x32xf32> -> vector<8x32xf32>
    %c0_4 = arith.constant 0 : index
    %c0_5 = arith.constant 0 : index
    %11 = vector.load %arg4[%c0_4, %c0_5] : memref<1x32xf32, #tpu.memory_space<vmem>>, vector<1x32xf32>
    %12 = vector.broadcast %11 : vector<1x32xf32> to vector<8x32xf32>
    %13 = arith.addf %10, %12 : vector<8x32xf32>
    %14 = arith.truncf %13 : vector<8x32xf32> to vector<8x32xbf16>
    %15 = vector.extract_strided_slice %14 {offsets = [0, 0], sizes = [8, 8], strides = [1, 1]} : vector<8x32xbf16> to vector<8x8xbf16>
    %c0_6 = arith.constant 0 : index
    %c0_7 = arith.constant 0 : index
    %c0_8 = arith.constant 0 : index
    %16 = vector.load %arg20[%c0_6, %c0_7, %c0_8] : memref<4x8x8xbf16, #tpu.memory_space<vmem>>, vector<1x8x8xbf16>
    %17 = vector.shape_cast %16 : vector<1x8x8xbf16> to vector<8x8xbf16>
    %18 = vector.shape_cast %15 : vector<8x8xbf16> to vector<1x8x8xbf16>
    tpu.vector_store %arg20[%c0_6, %c0_7, %c0_8], %18 {strides = array<i32>} : memref<4x8x8xbf16, #tpu.memory_space<vmem>>, vector<1x8x8xbf16>,
    %19 = vector.extract_strided_slice %14 {offsets = [0, 8], sizes = [8, 8], strides = [1, 1]} : vector<8x32xbf16> to vector<8x8xbf16>
    %c1 = arith.constant 1 : index
    %c0_9 = arith.constant 0 : index
    %c0_10 = arith.constant 0 : index
    %20 = vector.load %arg20[%c1, %c0_9, %c0_10] : memref<4x8x8xbf16, #tpu.memory_space<vmem>>, vector<1x8x8xbf16>
    %21 = vector.shape_cast %20 : vector<1x8x8xbf16> to vector<8x8xbf16>
    %22 = vector.shape_cast %19 : vector<8x8xbf16> to vector<1x8x8xbf16>
    tpu.vector_store %arg20[%c1, %c0_9, %c0_10], %22 {strides = array<i32>} : memref<4x8x8xbf16, #tpu.memory_space<vmem>>, vector<1x8x8xbf16>,
    %23 = vector.extract_strided_slice %14 {offsets = [0, 16], sizes = [8, 8], strides = [1, 1]} : vector<8x32xbf16> to vector<8x8xbf16>
    %c2 = arith.constant 2 : index
    %c0_11 = arith.constant 0 : index
    %c0_12 = arith.constant 0 : index
    %24 = vector.load %arg20[%c2, %c0_11, %c0_12] : memref<4x8x8xbf16, #tpu.memory_space<vmem>>, vector<1x8x8xbf16>
    %25 = vector.shape_cast %24 : vector<1x8x8xbf16> to vector<8x8xbf16>
    %26 = vector.shape_cast %23 : vector<8x8xbf16> to vector<1x8x8xbf16>
    tpu.vector_store %arg20[%c2, %c0_11, %c0_12], %26 {strides = array<i32>} : memref<4x8x8xbf16, #tpu.memory_space<vmem>>, vector<1x8x8xbf16>,
    %27 = vector.extract_strided_slice %14 {offsets = [0, 24], sizes = [8, 8], strides = [1, 1]} : vector<8x32xbf16> to vector<8x8xbf16>
    %c3 = arith.constant 3 : index
    %c0_13 = arith.constant 0 : index
    %c0_14 = arith.constant 0 : index
    %28 = vector.load %arg20[%c3, %c0_13, %c0_14] : memref<4x8x8xbf16, #tpu.memory_space<vmem>>, vector<1x8x8xbf16>
    %29 = vector.shape_cast %28 : vector<1x8x8xbf16> to vector<8x8xbf16>
    %30 = vector.shape_cast %27 : vector<8x8xbf16> to vector<1x8x8xbf16>
    tpu.vector_store %arg20[%c3, %c0_13, %c0_14], %30 {strides = array<i32>} : memref<4x8x8xbf16, #tpu.memory_space<vmem>>, vector<1x8x8xbf16>,
    %c0_15 = arith.constant 0 : index
    %c0_16 = arith.constant 0 : index
    %c0_17 = arith.constant 0 : index
    %31 = vector.load %arg20[%c0_15, %c0_16, %c0_17] : memref<4x8x8xbf16, #tpu.memory_space<vmem>>, vector<4x8x8xbf16>
    %c0_18 = arith.constant 0 : index
    %c0_19 = arith.constant 0 : index
    %c0_20 = arith.constant 0 : index
    %32 = vector.load %arg18[%c0_18, %c0_19, %c0_20] : memref<4x8x8xbf16, #tpu.memory_space<vmem>>, vector<4x8x8xbf16>
    %c0_21 = arith.constant 0 : index
    %c0_22 = arith.constant 0 : index
    %c0_23 = arith.constant 0 : index
    %33 = vector.load %arg19[%c0_21, %c0_22, %c0_23] : memref<4x8x8xbf16, #tpu.memory_space<vmem>>, vector<4x8x8xbf16>
    %cst_24 = arith.constant dense<0.000000e+00> : vector<4x8x8xf32>
    %34 = tpu.matmul %31, %32, %cst_24 {dimension_numbers = #tpu.dot_dimension_numbers<[2], [2], [1], [1], [0, 0, 0, 1, 1, 1], [0], [0]>} : vector<4x8x8xbf16>, vector<4x8x8xbf16>, vector<4x8x8xf32> -> vector<4x8x8xf32>
    %cst_25 = arith.constant dense<0xFF800000> : vector<4x8xf32>
    %35 = vector.multi_reduction <maximumf>, %34, %cst_25 [2] : vector<4x8x8xf32> to vector<4x8xf32>
    %36 = vector.shape_cast %35 : vector<4x8xf32> to vector<4x8x1xf32>
    %37 = vector.broadcast %36 : vector<4x8x1xf32> to vector<4x8x8xf32>
    %38 = arith.subf %34, %37 : vector<4x8x8xf32>
    %39 = math.exp %38 : vector<4x8x8xf32>
    %cst_26 = arith.constant dense<0.000000e+00> : vector<4x8xf32>
    %40 = vector.multi_reduction <add>, %39, %cst_26 [2] : vector<4x8x8xf32> to vector<4x8xf32>
    %41 = vector.shape_cast %40 : vector<4x8xf32> to vector<4x8x1xf32>
    %42 = tpu.reciprocal %41 {approx = true} : vector<4x8x1xf32> -> vector<4x8x1xf32>
    %43 = vector.broadcast %42 : vector<4x8x1xf32> to vector<4x8x8xf32>
    %44 = arith.mulf %39, %43 : vector<4x8x8xf32>
    %45 = arith.truncf %44 : vector<4x8x8xf32> to vector<4x8x8xbf16>
    %cst_27 = arith.constant dense<0.000000e+00> : vector<4x8x8xf32>
    %46 = tpu.matmul %45, %33, %cst_27 {dimension_numbers = #tpu.dot_dimension_numbers<[2], [1], [1], [2], [0, 0, 0, 1, 1, 2], [0], [0]>} : vector<4x8x8xbf16>, vector<4x8x8xbf16>, vector<4x8x8xf32> -> vector<4x8x8xf32>
    %47 = vector.extract_strided_slice %46 {offsets = [0, 0, 0], sizes = [1, 8, 8], strides = [1, 1, 1]} : vector<4x8x8xf32> to vector<1x8x8xf32>
    %48 = vector.shape_cast %47 : vector<1x8x8xf32> to vector<8x8xf32>
    %49 = arith.truncf %48 : vector<8x8xf32> to vector<8x8xbf16>
    %c0_28 = arith.constant 0 : index
    %c0_29 = arith.constant 0 : index
    %50 = vector.load %arg21[%c0_28, %c0_29] : memref<8x32xbf16, #tpu.memory_space<vmem>>, vector<8x8xbf16>
    tpu.vector_store %arg21[%c0_28, %c0_29], %49 {strides = array<i32>} : memref<8x32xbf16, #tpu.memory_space<vmem>>, vector<8x8xbf16>,
    %51 = vector.extract_strided_slice %46 {offsets = [1, 0, 0], sizes = [1, 8, 8], strides = [1, 1, 1]} : vector<4x8x8xf32> to vector<1x8x8xf32>
    %52 = vector.shape_cast %51 : vector<1x8x8xf32> to vector<8x8xf32>
    %53 = arith.truncf %52 : vector<8x8xf32> to vector<8x8xbf16>
    %c0_30 = arith.constant 0 : index
    %c8 = arith.constant 8 : index
    %54 = vector.load %arg21[%c0_30, %c8] : memref<8x32xbf16, #tpu.memory_space<vmem>>, vector<8x8xbf16>
    tpu.vector_store %arg21[%c0_30, %c8], %53 {strides = array<i32>} : memref<8x32xbf16, #tpu.memory_space<vmem>>, vector<8x8xbf16>,
    %55 = vector.extract_strided_slice %46 {offsets = [2, 0, 0], sizes = [1, 8, 8], strides = [1, 1, 1]} : vector<4x8x8xf32> to vector<1x8x8xf32>
    %56 = vector.shape_cast %55 : vector<1x8x8xf32> to vector<8x8xf32>
    %57 = arith.truncf %56 : vector<8x8xf32> to vector<8x8xbf16>
    %c0_31 = arith.constant 0 : index
    %c16 = arith.constant 16 : index
    %58 = vector.load %arg21[%c0_31, %c16] : memref<8x32xbf16, #tpu.memory_space<vmem>>, vector<8x8xbf16>
    tpu.vector_store %arg21[%c0_31, %c16], %57 {strides = array<i32>} : memref<8x32xbf16, #tpu.memory_space<vmem>>, vector<8x8xbf16>,
    %59 = vector.extract_strided_slice %46 {offsets = [3, 0, 0], sizes = [1, 8, 8], strides = [1, 1, 1]} : vector<4x8x8xf32> to vector<1x8x8xf32>
    %60 = vector.shape_cast %59 : vector<1x8x8xf32> to vector<8x8xf32>
    %61 = arith.truncf %60 : vector<8x8xf32> to vector<8x8xbf16>
    %c0_32 = arith.constant 0 : index
    %c24 = arith.constant 24 : index
    %62 = vector.load %arg21[%c0_32, %c24] : memref<8x32xbf16, #tpu.memory_space<vmem>>, vector<8x8xbf16>
    tpu.vector_store %arg21[%c0_32, %c24], %61 {strides = array<i32>} : memref<8x32xbf16, #tpu.memory_space<vmem>>, vector<8x8xbf16>,
    %c0_33 = arith.constant 0 : index
    %c0_34 = arith.constant 0 : index
    %63 = vector.load %arg21[%c0_33, %c0_34] : memref<8x32xbf16, #tpu.memory_space<vmem>>, vector<8x32xbf16>
    %c0_35 = arith.constant 0 : index
    %c0_36 = arith.constant 0 : index
    %64 = vector.load %arg7[%c0_35, %c0_36] : memref<32x32xbf16, #tpu.memory_space<vmem>>, vector<32x32xbf16>
    %cst_37 = arith.constant dense<0.000000e+00> : vector<8x32xf32>
    %65 = tpu.matmul %63, %64, %cst_37 {dimension_numbers = #tpu.dot_dimension_numbers<[1], [0], [0], [1], [0, 0, 1, 1], [], []>} : vector<8x32xbf16>, vector<32x32xbf16>, vector<8x32xf32> -> vector<8x32xf32>
    %c0_38 = arith.constant 0 : index
    %c0_39 = arith.constant 0 : index
    %66 = vector.load %arg8[%c0_38, %c0_39] : memref<1x32xf32, #tpu.memory_space<vmem>>, vector<1x32xf32>
    %67 = vector.broadcast %66 : vector<1x32xf32> to vector<8x32xf32>
    %68 = arith.addf %65, %67 : vector<8x32xf32>
    %69 = arith.addf %68, %7 : vector<8x32xf32>
    %c0_40 = arith.constant 0 : index
    %c0_41 = arith.constant 0 : index
    %70 = vector.load %arg9[%c0_40, %c0_41] : memref<1x32xf32, #tpu.memory_space<vmem>>, vector<1x32xf32>
    %c0_42 = arith.constant 0 : index
    %c0_43 = arith.constant 0 : index
    %71 = vector.load %arg10[%c0_42, %c0_43] : memref<1x32xf32, #tpu.memory_space<vmem>>, vector<1x32xf32>
    %cst_44 = arith.constant dense<0.000000e+00> : vector<8xf32>
    %72 = vector.multi_reduction <add>, %69, %cst_44 [1] : vector<8x32xf32> to vector<8xf32>
    %73 = vector.shape_cast %72 : vector<8xf32> to vector<8x1xf32>
    %cst_45 = arith.constant 3.200000e+01 : f32
    %74 = vector.broadcast %cst_45 : f32 to vector<8x1xf32>
    %75 = arith.divf %73, %74 : vector<8x1xf32>
    %76 = vector.broadcast %75 : vector<8x1xf32> to vector<8x32xf32>
    %77 = arith.subf %69, %76 : vector<8x32xf32>
    %78 = arith.mulf %77, %77 : vector<8x32xf32>
    %cst_46 = arith.constant dense<0.000000e+00> : vector<8xf32>
    %79 = vector.multi_reduction <add>, %78, %cst_46 [1] : vector<8x32xf32> to vector<8xf32>
    %80 = vector.shape_cast %79 : vector<8xf32> to vector<8x1xf32>
    %cst_47 = arith.constant 3.200000e+01 : f32
    %81 = vector.broadcast %cst_47 : f32 to vector<8x1xf32>
    %82 = arith.divf %80, %81 : vector<8x1xf32>
    %cst_48 = arith.constant 9.99999996E-13 : f32
    %83 = vector.broadcast %cst_48 : f32 to vector<8x1xf32>
    %84 = arith.addf %82, %83 : vector<8x1xf32>
    %85 = math.rsqrt %84 : vector<8x1xf32>
    %86 = vector.broadcast %85 : vector<8x1xf32> to vector<8x32xf32>
    %87 = arith.mulf %77, %86 : vector<8x32xf32>
    %88 = vector.broadcast %70 : vector<1x32xf32> to vector<8x32xf32>
    %89 = arith.mulf %87, %88 : vector<8x32xf32>
    %90 = vector.broadcast %71 : vector<1x32xf32> to vector<8x32xf32>
    %91 = arith.addf %89, %90 : vector<8x32xf32>
    %92 = arith.truncf %91 : vector<8x32xf32> to vector<8x32xbf16>
    %c0_49 = arith.constant 0 : index
    %c0_50 = arith.constant 0 : index
    %93 = vector.load %arg11[%c0_49, %c0_50] : memref<32x64xbf16, #tpu.memory_space<vmem>>, vector<32x64xbf16>
    %cst_51 = arith.constant dense<0.000000e+00> : vector<8x64xf32>
    %94 = tpu.matmul %92, %93, %cst_51 {dimension_numbers = #tpu.dot_dimension_numbers<[1], [0], [0], [1], [0, 0, 1, 1], [], []>} : vector<8x32xbf16>, vector<32x64xbf16>, vector<8x64xf32> -> vector<8x64xf32>
    %c0_52 = arith.constant 0 : index
    %c0_53 = arith.constant 0 : index
    %95 = vector.load %arg12[%c0_52, %c0_53] : memref<1x64xf32, #tpu.memory_space<vmem>>, vector<1x64xf32>
    %96 = vector.broadcast %95 : vector<1x64xf32> to vector<8x64xf32>
    %97 = arith.addf %94, %96 : vector<8x64xf32>
    %cst_54 = arith.constant 5.000000e-01 : f32
    %98 = vector.broadcast %cst_54 : f32 to vector<8x64xf32>
    %99 = arith.mulf %98, %97 : vector<8x64xf32>
    %cst_55 = arith.constant 0.707106769 : f32
    %100 = vector.broadcast %cst_55 : f32 to vector<8x64xf32>
    %101 = arith.mulf %97, %100 : vector<8x64xf32>
    %102 = math.absf %101 : vector<8x64xf32>
    %cst_56 = arith.constant 0.327591091 : f32
    %103 = vector.broadcast %cst_56 : f32 to vector<8x64xf32>
    %104 = arith.mulf %103, %102 : vector<8x64xf32>
    %cst_57 = arith.constant 1.000000e+00 : f32
    %105 = vector.broadcast %cst_57 : f32 to vector<8x64xf32>
    %106 = arith.addf %105, %104 : vector<8x64xf32>
    %cst_58 = arith.constant 1.000000e+00 : f32
    %107 = vector.broadcast %cst_58 : f32 to vector<8x64xf32>
    %108 = arith.divf %107, %106 : vector<8x64xf32>
    %cst_59 = arith.constant 1.06140542 : f32
    %109 = vector.broadcast %cst_59 : f32 to vector<8x64xf32>
    %110 = arith.mulf %109, %108 : vector<8x64xf32>
    %cst_60 = arith.constant -1.45315206 : f32
    %111 = vector.broadcast %cst_60 : f32 to vector<8x64xf32>
    %112 = arith.addf %110, %111 : vector<8x64xf32>
    %113 = arith.mulf %112, %108 : vector<8x64xf32>
    %cst_61 = arith.constant 1.42141378 : f32
    %114 = vector.broadcast %cst_61 : f32 to vector<8x64xf32>
    %115 = arith.addf %113, %114 : vector<8x64xf32>
    %116 = arith.mulf %115, %108 : vector<8x64xf32>
    %cst_62 = arith.constant -0.284496725 : f32
    %117 = vector.broadcast %cst_62 : f32 to vector<8x64xf32>
    %118 = arith.addf %116, %117 : vector<8x64xf32>
    %119 = arith.mulf %118, %108 : vector<8x64xf32>
    %cst_63 = arith.constant 0.254829586 : f32
    %120 = vector.broadcast %cst_63 : f32 to vector<8x64xf32>
    %121 = arith.addf %119, %120 : vector<8x64xf32>
    %122 = arith.mulf %121, %108 : vector<8x64xf32>
    %cst_64 = arith.constant 0.000000e+00 : f32
    %123 = vector.broadcast %cst_64 : f32 to vector<8x64xf32>
    %124 = arith.subf %123, %102 : vector<8x64xf32>
    %125 = arith.mulf %124, %102 : vector<8x64xf32>
    %126 = math.exp %125 : vector<8x64xf32>
    %127 = arith.mulf %122, %126 : vector<8x64xf32>
    %cst_65 = arith.constant 1.000000e+00 : f32
    %128 = vector.broadcast %cst_65 : f32 to vector<8x64xf32>
    %129 = arith.subf %128, %127 : vector<8x64xf32>
    %cst_66 = arith.constant 0.000000e+00 : f32
    %130 = vector.broadcast %cst_66 : f32 to vector<8x64xf32>
    %131 = arith.cmpf oge, %101, %130 : vector<8x64xf32>
    %cst_67 = arith.constant 0.000000e+00 : f32
    %132 = vector.broadcast %cst_67 : f32 to vector<8x64xf32>
    %133 = arith.subf %132, %129 : vector<8x64xf32>
    %134 = arith.select %131, %129, %133 : vector<8x64xi1>, vector<8x64xf32>
    %cst_68 = arith.constant 1.000000e+00 : f32
    %135 = vector.broadcast %cst_68 : f32 to vector<8x64xf32>
    %136 = arith.addf %135, %134 : vector<8x64xf32>
    %137 = arith.mulf %99, %136 : vector<8x64xf32>
    %138 = arith.truncf %137 : vector<8x64xf32> to vector<8x64xbf16>
    %c0_69 = arith.constant 0 : index
    %c0_70 = arith.constant 0 : index
    %139 = vector.load %arg13[%c0_69, %c0_70] : memref<64x32xbf16, #tpu.memory_space<vmem>>, vector<64x32xbf16>
    %cst_71 = arith.constant dense<0.000000e+00> : vector<8x32xf32>
    %140 = tpu.matmul %138, %139, %cst_71 {dimension_numbers = #tpu.dot_dimension_numbers<[1], [0], [0], [1], [0, 0, 1, 1], [], []>} : vector<8x64xbf16>, vector<64x32xbf16>, vector<8x32xf32> -> vector<8x32xf32>
    %c0_72 = arith.constant 0 : index
    %c0_73 = arith.constant 0 : index
    %141 = vector.load %arg14[%c0_72, %c0_73] : memref<1x32xf32, #tpu.memory_space<vmem>>, vector<1x32xf32>
    %142 = vector.broadcast %141 : vector<1x32xf32> to vector<8x32xf32>
    %143 = arith.addf %140, %142 : vector<8x32xf32>
    %144 = arith.addf %143, %91 : vector<8x32xf32>
    %c0_74 = arith.constant 0 : index
    %c0_75 = arith.constant 0 : index
    %145 = vector.load %arg15[%c0_74, %c0_75] : memref<1x32xf32, #tpu.memory_space<vmem>>, vector<1x32xf32>
    %c0_76 = arith.constant 0 : index
    %c0_77 = arith.constant 0 : index
    %146 = vector.load %arg16[%c0_76, %c0_77] : memref<1x32xf32, #tpu.memory_space<vmem>>, vector<1x32xf32>
    %cst_78 = arith.constant dense<0.000000e+00> : vector<8xf32>
    %147 = vector.multi_reduction <add>, %144, %cst_78 [1] : vector<8x32xf32> to vector<8xf32>
    %148 = vector.shape_cast %147 : vector<8xf32> to vector<8x1xf32>
    %cst_79 = arith.constant 3.200000e+01 : f32
    %149 = vector.broadcast %cst_79 : f32 to vector<8x1xf32>
    %150 = arith.divf %148, %149 : vector<8x1xf32>
    %151 = vector.broadcast %150 : vector<8x1xf32> to vector<8x32xf32>
    %152 = arith.subf %144, %151 : vector<8x32xf32>
    %153 = arith.mulf %152, %152 : vector<8x32xf32>
    %cst_80 = arith.constant dense<0.000000e+00> : vector<8xf32>
    %154 = vector.multi_reduction <add>, %153, %cst_80 [1] : vector<8x32xf32> to vector<8xf32>
    %155 = vector.shape_cast %154 : vector<8xf32> to vector<8x1xf32>
    %cst_81 = arith.constant 3.200000e+01 : f32
    %156 = vector.broadcast %cst_81 : f32 to vector<8x1xf32>
    %157 = arith.divf %155, %156 : vector<8x1xf32>
    %cst_82 = arith.constant 9.99999996E-13 : f32
    %158 = vector.broadcast %cst_82 : f32 to vector<8x1xf32>
    %159 = arith.addf %157, %158 : vector<8x1xf32>
    %160 = math.rsqrt %159 : vector<8x1xf32>
    %161 = vector.broadcast %160 : vector<8x1xf32> to vector<8x32xf32>
    %162 = arith.mulf %152, %161 : vector<8x32xf32>
    %163 = vector.broadcast %145 : vector<1x32xf32> to vector<8x32xf32>
    %164 = arith.mulf %162, %163 : vector<8x32xf32>
    %165 = vector.broadcast %146 : vector<1x32xf32> to vector<8x32xf32>
    %166 = arith.addf %164, %165 : vector<8x32xf32>
    %c0_83 = arith.constant 0 : index
    %c0_84 = arith.constant 0 : index
    %c0_85 = arith.constant 0 : index
    %167 = vector.load %arg17[%c0_83, %c0_84, %c0_85] : memref<1x8x32xf32, #tpu.memory_space<vmem>>, vector<1x8x32xf32>
    %168 = vector.shape_cast %167 : vector<1x8x32xf32> to vector<8x32xf32>
    %169 = vector.shape_cast %166 : vector<8x32xf32> to vector<1x8x32xf32>
    tpu.vector_store %arg17[%c0_83, %c0_84, %c0_85], %169 {strides = array<i32>} : memref<1x8x32xf32, #tpu.memory_space<vmem>>, vector<1x8x32xf32>,
    return
  }
  func.func @transform_0(%arg0: i32, %arg1: i32) -> (i32, i32, i32) {
    %c0_i32 = arith.constant 0 : i32
    %c0_i32_0 = arith.constant 0 : i32
    %c0_i32_1 = arith.constant 0 : i32
    return %arg0, %c0_i32, %c0_i32_0 : i32, i32, i32
  }
  func.func @transform_1(%arg0: i32, %arg1: i32) -> (i32, i32) {
    %c0_i32 = arith.constant 0 : i32
    %c0_i32_0 = arith.constant 0 : i32
    %c0_i32_1 = arith.constant 0 : i32
    return %c0_i32, %c0_i32_0 : i32, i32
  }
  func.func @transform_2(%arg0: i32, %arg1: i32) -> (i32, i32) {
    %c0_i32 = arith.constant 0 : i32
    %c0_i32_0 = arith.constant 0 : i32
    %c0_i32_1 = arith.constant 0 : i32
    return %c0_i32, %c0_i32_0 : i32, i32
  }
  func.func @transform_3(%arg0: i32, %arg1: i32) -> (i32, i32) {
    %c0_i32 = arith.constant 0 : i32
    %c0_i32_0 = arith.constant 0 : i32
    %c0_i32_1 = arith.constant 0 : i32
    return %c0_i32, %c0_i32_0 : i32, i32
  }
  func.func @transform_4(%arg0: i32, %arg1: i32) -> (i32, i32) {
    %c0_i32 = arith.constant 0 : i32
    %c0_i32_0 = arith.constant 0 : i32
    %c0_i32_1 = arith.constant 0 : i32
    return %c0_i32, %c0_i32_0 : i32, i32
  }
  func.func @transform_5(%arg0: i32, %arg1: i32) -> (i32, i32) {
    %c0_i32 = arith.constant 0 : i32
    %c0_i32_0 = arith.constant 0 : i32
    %c0_i32_1 = arith.constant 0 : i32
    return %c0_i32, %c0_i32_0 : i32, i32
  }
  func.func @transform_6(%arg0: i32, %arg1: i32) -> (i32, i32) {
    %c0_i32 = arith.constant 0 : i32
    %c0_i32_0 = arith.constant 0 : i32
    %c0_i32_1 = arith.constant 0 : i32
    return %c0_i32, %c0_i32_0 : i32, i32
  }
  func.func @transform_7(%arg0: i32, %arg1: i32) -> (i32, i32) {
    %c0_i32 = arith.constant 0 : i32
    %c0_i32_0 = arith.constant 0 : i32
    %c0_i32_1 = arith.constant 0 : i32
    return %c0_i32, %c0_i32_0 : i32, i32
  }
  func.func @transform_8(%arg0: i32, %arg1: i32) -> (i32, i32) {
    %c0_i32 = arith.constant 0 : i32
    %c0_i32_0 = arith.constant 0 : i32
    %c0_i32_1 = arith.constant 0 : i32
    return %c0_i32, %c0_i32_0 : i32, i32
  }
  func.func @transform_9(%arg0: i32, %arg1: i32) -> (i32, i32) {
    %c0_i32 = arith.constant 0 : i32
    %c0_i32_0 = arith.constant 0 : i32
    %c0_i32_1 = arith.constant 0 : i32
    return %c0_i32, %c0_i32_0 : i32, i32
  }
  func.func @transform_10(%arg0: i32, %arg1: i32) -> (i32, i32) {
    %c0_i32 = arith.constant 0 : i32
    %c0_i32_0 = arith.constant 0 : i32
    %c0_i32_1 = arith.constant 0 : i32
    return %c0_i32, %c0_i32_0 : i32, i32
  }
  func.func @transform_11(%arg0: i32, %arg1: i32) -> (i32, i32) {
    %c0_i32 = arith.constant 0 : i32
    %c0_i32_0 = arith.constant 0 : i32
    %c0_i32_1 = arith.constant 0 : i32
    return %c0_i32, %c0_i32_0 : i32, i32
  }
  func.func @transform_12(%arg0: i32, %arg1: i32) -> (i32, i32) {
    %c0_i32 = arith.constant 0 : i32
    %c0_i32_0 = arith.constant 0 : i32
    %c0_i32_1 = arith.constant 0 : i32
    return %c0_i32, %c0_i32_0 : i32, i32
  }
  func.func @transform_13(%arg0: i32, %arg1: i32) -> (i32, i32) {
    %c0_i32 = arith.constant 0 : i32
    %c0_i32_0 = arith.constant 0 : i32
    %c0_i32_1 = arith.constant 0 : i32
    return %c0_i32, %c0_i32_0 : i32, i32
  }
  func.func @transform_14(%arg0: i32, %arg1: i32) -> (i32, i32) {
    %c0_i32 = arith.constant 0 : i32
    %c0_i32_0 = arith.constant 0 : i32
    %c0_i32_1 = arith.constant 0 : i32
    return %c0_i32, %c0_i32_0 : i32, i32
  }
  func.func @transform_15(%arg0: i32, %arg1: i32) -> (i32, i32, i32) {
    %c0_i32 = arith.constant 0 : i32
    %c0_i32_0 = arith.constant 0 : i32
    return %arg0, %arg1, %c0_i32 : i32, i32, i32
  }
}

module attributes {stable_mosaic.version = 11 : i64} {
  func.func @_bert_layer_kernel(%arg0: i32, %arg1: i32, %arg2: memref<1x8x32xf32, #tpu.memory_space<vmem>>, %arg3: memref<32x32xbf16, #tpu.memory_space<vmem>>, %arg4: memref<1x32xf32, #tpu.memory_space<vmem>>, %arg5: memref<32x64xbf16, #tpu.memory_space<vmem>>, %arg6: memref<1x64xf32, #tpu.memory_space<vmem>>, %arg7: memref<32x32xbf16, #tpu.memory_space<vmem>>, %arg8: memref<1x32xf32, #tpu.memory_space<vmem>>, %arg9: memref<1x32xf32, #tpu.memory_space<vmem>>, %arg10: memref<1x32xf32, #tpu.memory_space<vmem>>, %arg11: memref<32x64xbf16, #tpu.memory_space<vmem>>, %arg12: memref<1x64xf32, #tpu.memory_space<vmem>>, %arg13: memref<64x32xbf16, #tpu.memory_space<vmem>>, %arg14: memref<1x32xf32, #tpu.memory_space<vmem>>, %arg15: memref<1x32xf32, #tpu.memory_space<vmem>>, %arg16: memref<1x32xf32, #tpu.memory_space<vmem>>, %arg17: memref<1x8x32xf32, #tpu.memory_space<vmem>>, %arg18: memref<4x8x8xbf16, #tpu.memory_space<vmem>>, %arg19: memref<4x8x8xbf16, #tpu.memory_space<vmem>>, %arg20: memref<4x8x8xbf16, #tpu.memory_space<vmem>>, %arg21: memref<8x32xbf16, #tpu.memory_space<vmem>>) attributes {dimension_semantics = [#tpu.dimension_semantics<parallel>, #tpu.dimension_semantics<arbitrary>], iteration_bounds = array<i64: 2, 1>, scalar_prefetch = 0 : i64, scratch_operands = 4 : i64, tpu.core_type = #tpu.core_type<tc>, window_params = [{transform_indices = @transform_0, window_bounds = array<i64: 1, 8, 32>}, {pipeline_mode = #tpu.pipeline_mode<synchronous>, transform_indices = @transform_1, window_bounds = array<i64: 32, 32>}, {pipeline_mode = #tpu.pipeline_mode<synchronous>, transform_indices = @transform_2, window_bounds = array<i64: 1, 32>}, {pipeline_mode = #tpu.pipeline_mode<synchronous>, transform_indices = @transform_3, window_bounds = array<i64: 32, 64>}, {pipeline_mode = #tpu.pipeline_mode<synchronous>, transform_indices = @transform_4, window_bounds = array<i64: 1, 64>}, {pipeline_mode = #tpu.pipeline_mode<synchronous>, transform_indices = @transform_5, window_bounds = array<i64: 32, 32>}, {pipeline_mode = #tpu.pipeline_mode<synchronous>, transform_indices = @transform_6, window_bounds = array<i64: 1, 32>}, {pipeline_mode = #tpu.pipeline_mode<synchronous>, transform_indices = @transform_7, window_bounds = array<i64: 1, 32>}, {pipeline_mode = #tpu.pipeline_mode<synchronous>, transform_indices = @transform_8, window_bounds = array<i64: 1, 32>}, {pipeline_mode = #tpu.pipeline_mode<synchronous>, transform_indices = @transform_9, window_bounds = array<i64: 32, 64>}, {pipeline_mode = #tpu.pipeline_mode<synchronous>, transform_indices = @transform_10, window_bounds = array<i64: 1, 64>}, {pipeline_mode = #tpu.pipeline_mode<synchronous>, transform_indices = @transform_11, window_bounds = array<i64: 64, 32>}, {pipeline_mode = #tpu.pipeline_mode<synchronous>, transform_indices = @transform_12, window_bounds = array<i64: 1, 32>}, {pipeline_mode = #tpu.pipeline_mode<synchronous>, transform_indices = @transform_13, window_bounds = array<i64: 1, 32>}, {pipeline_mode = #tpu.pipeline_mode<synchronous>, transform_indices = @transform_14, window_bounds = array<i64: 1, 32>}, {transform_indices = @transform_15, window_bounds = array<i64: 1, 8, 32>}]} {
    %c0_i32 = arith.constant 0 : i32
    %0 = arith.cmpi eq, %arg1, %c0_i32 : i32
    %1 = arith.extui %0 : i1 to i32
    %c0_i32_0 = arith.constant 0 : i32
    %2 = arith.cmpi ne, %1, %c0_i32_0 : i32
    scf.if %2 {
      %c0_86 = arith.constant 0 : index
      %c0_87 = arith.constant 0 : index
      %c0_88 = arith.constant 0 : index
      %170 = vector.load %arg2[%c0_86, %c0_87, %c0_88] : memref<1x8x32xf32, #tpu.memory_space<vmem>>, vector<1x8x32xf32>
      %171 = vector.shape_cast %170 : vector<1x8x32xf32> to vector<8x32xf32>
      %172 = arith.truncf %171 : vector<8x32xf32> to vector<8x32xbf16>
      %c0_89 = arith.constant 0 : index
      %c0_90 = arith.constant 0 : index
      %173 = vector.load %arg5[%c0_89, %c0_90] : memref<32x64xbf16, #tpu.memory_space<vmem>>, vector<32x64xbf16>
      %cst_91 = arith.constant dense<0.000000e+00> : vector<8x64xf32>
      %174 = tpu.matmul %172, %173, %cst_91 {dimension_numbers = #tpu.dot_dimension_numbers<[1], [0], [0], [1], [0, 0, 1, 1], [], []>} : vector<8x32xbf16>, vector<32x64xbf16>, vector<8x64xf32> -> vector<8x64xf32>
      %c0_92 = arith.constant 0 : index
      %c0_93 = arith.constant 0 : index
      %175 = vector.load %arg6[%c0_92, %c0_93] : memref<1x64xf32, #tpu.memory_space<vmem>>, vector<1x64xf32>
      %176 = vector.broadcast %175 : vector<1x64xf32> to vector<8x64xf32>
      %177 = arith.addf %174, %176 : vector<8x64xf32>
      %178 = arith.truncf %177 : vector<8x64xf32> to vector<8x64xbf16>
      %179 = vector.extract_strided_slice %178 {offsets = [0, 0], sizes = [8, 8], strides = [1, 1]} : vector<8x64xbf16> to vector<8x8xbf16>
      %c0_94 = arith.constant 0 : index
      %c0_95 = arith.constant 0 : index
      %c0_96 = arith.constant 0 : index
      %180 = vector.load %arg18[%c0_94, %c0_95, %c0_96] : memref<4x8x8xbf16, #tpu.memory_space<vmem>>, vector<1x8x8xbf16>
      %181 = vector.shape_cast %180 : vector<1x8x8xbf16> to vector<8x8xbf16>
      %182 = vector.shape_cast %179 : vector<8x8xbf16> to vector<1x8x8xbf16>
      tpu.vector_store %arg18[%c0_94, %c0_95, %c0_96], %182 {strides = array<i32>} : memref<4x8x8xbf16, #tpu.memory_space<vmem>>, vector<1x8x8xbf16>,
      %183 = vector.extract_strided_slice %178 {offsets = [0, 32], sizes = [8, 8], strides = [1, 1]} : vector<8x64xbf16> to vector<8x8xbf16>
      %c0_97 = arith.constant 0 : index
      %c0_98 = arith.constant 0 : index
      %c0_99 = arith.constant 0 : index
      %184 = vector.load %arg19[%c0_97, %c0_98, %c0_99] : memref<4x8x8xbf16, #tpu.memory_space<vmem>>, vector<1x8x8xbf16>
      %185 = vector.shape_cast %184 : vector<1x8x8xbf16> to vector<8x8xbf16>
      %186 = vector.shape_cast %183 : vector<8x8xbf16> to vector<1x8x8xbf16>
      tpu.vector_store %arg19[%c0_97, %c0_98, %c0_99], %186 {strides = array<i32>} : memref<4x8x8xbf16, #tpu.memory_space<vmem>>, vector<1x8x8xbf16>,
      %187 = vector.extract_strided_slice %178 {offsets = [0, 8], sizes = [8, 8], strides = [1, 1]} : vector<8x64xbf16> to vector<8x8xbf16>
      %c1_100 = arith.constant 1 : index
      %c0_101 = arith.constant 0 : index
      %c0_102 = arith.constant 0 : index
      %188 = vector.load %arg18[%c1_100, %c0_101, %c0_102] : memref<4x8x8xbf16, #tpu.memory_space<vmem>>, vector<1x8x8xbf16>
      %189 = vector.shape_cast %188 : vector<1x8x8xbf16> to vector<8x8xbf16>
      %190 = vector.shape_cast %187 : vector<8x8xbf16> to vector<1x8x8xbf16>
      tpu.vector_store %arg18[%c1_100, %c0_101, %c0_102], %190 {strides = array<i32>} : memref<4x8x8xbf16, #tpu.memory_space<vmem>>, vector<1x8x8xbf16>,
      %191 = vector.extract_strided_slice %178 {offsets = [0, 40], sizes = [8, 8], strides = [1, 1]} : vector<8x64xbf16> to vector<8x8xbf16>
      %c1_103 = arith.constant 1 : index
      %c0_104 = arith.constant 0 : index
      %c0_105 = arith.constant 0 : index
      %192 = vector.load %arg19[%c1_103, %c0_104, %c0_105] : memref<4x8x8xbf16, #tpu.memory_space<vmem>>, vector<1x8x8xbf16>
      %193 = vector.shape_cast %192 : vector<1x8x8xbf16> to vector<8x8xbf16>
      %194 = vector.shape_cast %191 : vector<8x8xbf16> to vector<1x8x8xbf16>
      tpu.vector_store %arg19[%c1_103, %c0_104, %c0_105], %194 {strides = array<i32>} : memref<4x8x8xbf16, #tpu.memory_space<vmem>>, vector<1x8x8xbf16>,
      %195 = vector.extract_strided_slice %178 {offsets = [0, 16], sizes = [8, 8], strides = [1, 1]} : vector<8x64xbf16> to vector<8x8xbf16>
      %c2_106 = arith.constant 2 : index
      %c0_107 = arith.constant 0 : index
      %c0_108 = arith.constant 0 : index
      %196 = vector.load %arg18[%c2_106, %c0_107, %c0_108] : memref<4x8x8xbf16, #tpu.memory_space<vmem>>, vector<1x8x8xbf16>
      %197 = vector.shape_cast %196 : vector<1x8x8xbf16> to vector<8x8xbf16>
      %198 = vector.shape_cast %195 : vector<8x8xbf16> to vector<1x8x8xbf16>
      tpu.vector_store %arg18[%c2_106, %c0_107, %c0_108], %198 {strides = array<i32>} : memref<4x8x8xbf16, #tpu.memory_space<vmem>>, vector<1x8x8xbf16>,
      %199 = vector.extract_strided_slice %178 {offsets = [0, 48], sizes = [8, 8], strides = [1, 1]} : vector<8x64xbf16> to vector<8x8xbf16>
      %c2_109 = arith.constant 2 : index
      %c0_110 = arith.constant 0 : index
      %c0_111 = arith.constant 0 : index
      %200 = vector.load %arg19[%c2_109, %c0_110, %c0_111] : memref<4x8x8xbf16, #tpu.memory_space<vmem>>, vector<1x8x8xbf16>
      %201 = vector.shape_cast %200 : vector<1x8x8xbf16> to vector<8x8xbf16>
      %202 = vector.shape_cast %199 : vector<8x8xbf16> to vector<1x8x8xbf16>
      tpu.vector_store %arg19[%c2_109, %c0_110, %c0_111], %202 {strides = array<i32>} : memref<4x8x8xbf16, #tpu.memory_space<vmem>>, vector<1x8x8xbf16>,
      %203 = vector.extract_strided_slice %178 {offsets = [0, 24], sizes = [8, 8], strides = [1, 1]} : vector<8x64xbf16> to vector<8x8xbf16>
      %c3_112 = arith.constant 3 : index
      %c0_113 = arith.constant 0 : index
      %c0_114 = arith.constant 0 : index
      %204 = vector.load %arg18[%c3_112, %c0_113, %c0_114] : memref<4x8x8xbf16, #tpu.memory_space<vmem>>, vector<1x8x8xbf16>
      %205 = vector.shape_cast %204 : vector<1x8x8xbf16> to vector<8x8xbf16>
      %206 = vector.shape_cast %203 : vector<8x8xbf16> to vector<1x8x8xbf16>
      tpu.vector_store %arg18[%c3_112, %c0_113, %c0_114], %206 {strides = array<i32>} : memref<4x8x8xbf16, #tpu.memory_space<vmem>>, vector<1x8x8xbf16>,
      %207 = vector.extract_strided_slice %178 {offsets = [0, 56], sizes = [8, 8], strides = [1, 1]} : vector<8x64xbf16> to vector<8x8xbf16>
      %c3_115 = arith.constant 3 : index
      %c0_116 = arith.constant 0 : index
      %c0_117 = arith.constant 0 : index
      %208 = vector.load %arg19[%c3_115, %c0_116, %c0_117] : memref<4x8x8xbf16, #tpu.memory_space<vmem>>, vector<1x8x8xbf16>
      %209 = vector.shape_cast %208 : vector<1x8x8xbf16> to vector<8x8xbf16>
      %210 = vector.shape_cast %207 : vector<8x8xbf16> to vector<1x8x8xbf16>
      tpu.vector_store %arg19[%c3_115, %c0_116, %c0_117], %210 {strides = array<i32>} : memref<4x8x8xbf16, #tpu.memory_space<vmem>>, vector<1x8x8xbf16>,
    } else {
    }
    %c8_i32 = arith.constant 8 : i32
    %3 = arith.muli %arg1, %c8_i32 : i32
    %4 = tpu.assume_multiple %3, 8 : i32
    %c0 = arith.constant 0 : index
    %5 = arith.index_cast %4 : i32 to index
    %c0_1 = arith.constant 0 : index
    %6 = vector.load %arg2[%c0, %5, %c0_1] : memref<1x8x32xf32, #tpu.memory_space<vmem>>, vector<1x8x32xf32>
    %7 = vector.shape_cast %6 : vector<1x8x32xf32> to vector<8x32xf32>
    %8 = arith.truncf %7 : vector<8x32xf32> to vector<8x32xbf16>
    %c0_2 = arith.constant 0 : index
    %c0_3 = arith.constant 0 : index
    %9 = vector.load %arg3[%c0_2, %c0_3] : memref<32x32xbf16, #tpu.memory_space<vmem>>, vector<32x32xbf16>
    %cst = arith.constant dense<0.000000e+00> : vector<8x32xf32>
    %10 = tpu.matmul %8, %9, %cst {dimension_numbers = #tpu.dot_dimension_numbers<[1], [0], [0], [1], [0, 0, 1, 1], [], []>} : vector<8x32xbf16>, vector<32x32xbf16>, vector<8x32xf32> -> vector<8x32xf32>
    %c0_4 = arith.constant 0 : index
    %c0_5 = arith.constant 0 : index
    %11 = vector.load %arg4[%c0_4, %c0_5] : memref<1x32xf32, #tpu.memory_space<vmem>>, vector<1x32xf32>
    %12 = vector.broadcast %11 : vector<1x32xf32> to vector<8x32xf32>
    %13 = arith.addf %10, %12 : vector<8x32xf32>
    %14 = arith.truncf %13 : vector<8x32xf32> to vector<8x32xbf16>
    %15 = vector.extract_strided_slice %14 {offsets = [0, 0], sizes = [8, 8], strides = [1, 1]} : vector<8x32xbf16> to vector<8x8xbf16>
    %c0_6 = arith.constant 0 : index
    %c0_7 = arith.constant 0 : index
    %c0_8 = arith.constant 0 : index
    %16 = vector.load %arg20[%c0_6, %c0_7, %c0_8] : memref<4x8x8xbf16, #tpu.memory_space<vmem>>, vector<1x8x8xbf16>
    %17 = vector.shape_cast %16 : vector<1x8x8xbf16> to vector<8x8xbf16>
    %18 = vector.shape_cast %15 : vector<8x8xbf16> to vector<1x8x8xbf16>
    tpu.vector_store %arg20[%c0_6, %c0_7, %c0_8], %18 {strides = array<i32>} : memref<4x8x8xbf16, #tpu.memory_space<vmem>>, vector<1x8x8xbf16>,
    %19 = vector.extract_strided_slice %14 {offsets = [0, 8], sizes = [8, 8], strides = [1, 1]} : vector<8x32xbf16> to vector<8x8xbf16>
    %c1 = arith.constant 1 : index
    %c0_9 = arith.constant 0 : index
    %c0_10 = arith.constant 0 : index
    %20 = vector.load %arg20[%c1, %c0_9, %c0_10] : memref<4x8x8xbf16, #tpu.memory_space<vmem>>, vector<1x8x8xbf16>
    %21 = vector.shape_cast %20 : vector<1x8x8xbf16> to vector<8x8xbf16>
    %22 = vector.shape_cast %19 : vector<8x8xbf16> to vector<1x8x8xbf16>
    tpu.vector_store %arg20[%c1, %c0_9, %c0_10], %22 {strides = array<i32>} : memref<4x8x8xbf16, #tpu.memory_space<vmem>>, vector<1x8x8xbf16>,
    %23 = vector.extract_strided_slice %14 {offsets = [0, 16], sizes = [8, 8], strides = [1, 1]} : vector<8x32xbf16> to vector<8x8xbf16>
    %c2 = arith.constant 2 : index
    %c0_11 = arith.constant 0 : index
    %c0_12 = arith.constant 0 : index
    %24 = vector.load %arg20[%c2, %c0_11, %c0_12] : memref<4x8x8xbf16, #tpu.memory_space<vmem>>, vector<1x8x8xbf16>
    %25 = vector.shape_cast %24 : vector<1x8x8xbf16> to vector<8x8xbf16>
    %26 = vector.shape_cast %23 : vector<8x8xbf16> to vector<1x8x8xbf16>
    tpu.vector_store %arg20[%c2, %c0_11, %c0_12], %26 {strides = array<i32>} : memref<4x8x8xbf16, #tpu.memory_space<vmem>>, vector<1x8x8xbf16>,
    %27 = vector.extract_strided_slice %14 {offsets = [0, 24], sizes = [8, 8], strides = [1, 1]} : vector<8x32xbf16> to vector<8x8xbf16>
    %c3 = arith.constant 3 : index
    %c0_13 = arith.constant 0 : index
    %c0_14 = arith.constant 0 : index
    %28 = vector.load %arg20[%c3, %c0_13, %c0_14] : memref<4x8x8xbf16, #tpu.memory_space<vmem>>, vector<1x8x8xbf16>
    %29 = vector.shape_cast %28 : vector<1x8x8xbf16> to vector<8x8xbf16>
    %30 = vector.shape_cast %27 : vector<8x8xbf16> to vector<1x8x8xbf16>
    tpu.vector_store %arg20[%c3, %c0_13, %c0_14], %30 {strides = array<i32>} : memref<4x8x8xbf16, #tpu.memory_space<vmem>>, vector<1x8x8xbf16>,
    %c0_15 = arith.constant 0 : index
    %c0_16 = arith.constant 0 : index
    %c0_17 = arith.constant 0 : index
    %31 = vector.load %arg20[%c0_15, %c0_16, %c0_17] : memref<4x8x8xbf16, #tpu.memory_space<vmem>>, vector<4x8x8xbf16>
    %c0_18 = arith.constant 0 : index
    %c0_19 = arith.constant 0 : index
    %c0_20 = arith.constant 0 : index
    %32 = vector.load %arg18[%c0_18, %c0_19, %c0_20] : memref<4x8x8xbf16, #tpu.memory_space<vmem>>, vector<4x8x8xbf16>
    %c0_21 = arith.constant 0 : index
    %c0_22 = arith.constant 0 : index
    %c0_23 = arith.constant 0 : index
    %33 = vector.load %arg19[%c0_21, %c0_22, %c0_23] : memref<4x8x8xbf16, #tpu.memory_space<vmem>>, vector<4x8x8xbf16>
    %cst_24 = arith.constant dense<0.000000e+00> : vector<4x8x8xf32>
    %34 = tpu.matmul %31, %32, %cst_24 {dimension_numbers = #tpu.dot_dimension_numbers<[2], [2], [1], [1], [0, 0, 0, 1, 1, 1], [0], [0]>} : vector<4x8x8xbf16>, vector<4x8x8xbf16>, vector<4x8x8xf32> -> vector<4x8x8xf32>
    %cst_25 = arith.constant dense<0xFF800000> : vector<4x8xf32>
    %35 = vector.multi_reduction <maximumf>, %34, %cst_25 [2] : vector<4x8x8xf32> to vector<4x8xf32>
    %36 = vector.shape_cast %35 : vector<4x8xf32> to vector<4x8x1xf32>
    %37 = vector.broadcast %36 : vector<4x8x1xf32> to vector<4x8x8xf32>
    %38 = arith.subf %34, %37 : vector<4x8x8xf32>
    %39 = math.exp %38 : vector<4x8x8xf32>
    %cst_26 = arith.constant dense<0.000000e+00> : vector<4x8xf32>
    %40 = vector.multi_reduction <add>, %39, %cst_26 [2] : vector<4x8x8xf32> to vector<4x8xf32>
    %41 = vector.shape_cast %40 : vector<4x8xf32> to vector<4x8x1xf32>
    %42 = tpu.reciprocal %41 {approx = true} : vector<4x8x1xf32> -> vector<4x8x1xf32>
    %43 = vector.broadcast %42 : vector<4x8x1xf32> to vector<4x8x8xf32>
    %44 = arith.mulf %39, %43 : vector<4x8x8xf32>
    %45 = arith.truncf %44 : vector<4x8x8xf32> to vector<4x8x8xbf16>
    %cst_27 = arith.constant dense<0.000000e+00> : vector<4x8x8xf32>
    %46 = tpu.matmul %45, %33, %cst_27 {dimension_numbers = #tpu.dot_dimension_numbers<[2], [1], [1], [2], [0, 0, 0, 1, 1, 2], [0], [0]>} : vector<4x8x8xbf16>, vector<4x8x8xbf16>, vector<4x8x8xf32> -> vector<4x8x8xf32>
    %47 = vector.extract_strided_slice %46 {offsets = [0, 0, 0], sizes = [1, 8, 8], strides = [1, 1, 1]} : vector<4x8x8xf32> to vector<1x8x8xf32>
    %48 = vector.shape_cast %47 : vector<1x8x8xf32> to vector<8x8xf32>
    %49 = arith.truncf %48 : vector<8x8xf32> to vector<8x8xbf16>
    %c0_28 = arith.constant 0 : index
    %c0_29 = arith.constant 0 : index
    %50 = vector.load %arg21[%c0_28, %c0_29] : memref<8x32xbf16, #tpu.memory_space<vmem>>, vector<8x8xbf16>
    tpu.vector_store %arg21[%c0_28, %c0_29], %49 {strides = array<i32>} : memref<8x32xbf16, #tpu.memory_space<vmem>>, vector<8x8xbf16>,
    %51 = vector.extract_strided_slice %46 {offsets = [1, 0, 0], sizes = [1, 8, 8], strides = [1, 1, 1]} : vector<4x8x8xf32> to vector<1x8x8xf32>
    %52 = vector.shape_cast %51 : vector<1x8x8xf32> to vector<8x8xf32>
    %53 = arith.truncf %52 : vector<8x8xf32> to vector<8x8xbf16>
    %c0_30 = arith.constant 0 : index
    %c8 = arith.constant 8 : index
    %54 = vector.load %arg21[%c0_30, %c8] : memref<8x32xbf16, #tpu.memory_space<vmem>>, vector<8x8xbf16>
    tpu.vector_store %arg21[%c0_30, %c8], %53 {strides = array<i32>} : memref<8x32xbf16, #tpu.memory_space<vmem>>, vector<8x8xbf16>,
    %55 = vector.extract_strided_slice %46 {offsets = [2, 0, 0], sizes = [1, 8, 8], strides = [1, 1, 1]} : vector<4x8x8xf32> to vector<1x8x8xf32>
    %56 = vector.shape_cast %55 : vector<1x8x8xf32> to vector<8x8xf32>
    %57 = arith.truncf %56 : vector<8x8xf32> to vector<8x8xbf16>
    %c0_31 = arith.constant 0 : index
    %c16 = arith.constant 16 : index
    %58 = vector.load %arg21[%c0_31, %c16] : memref<8x32xbf16, #tpu.memory_space<vmem>>, vector<8x8xbf16>
    tpu.vector_store %arg21[%c0_31, %c16], %57 {strides = array<i32>} : memref<8x32xbf16, #tpu.memory_space<vmem>>, vector<8x8xbf16>,
    %59 = vector.extract_strided_slice %46 {offsets = [3, 0, 0], sizes = [1, 8, 8], strides = [1, 1, 1]} : vector<4x8x8xf32> to vector<1x8x8xf32>
    %60 = vector.shape_cast %59 : vector<1x8x8xf32> to vector<8x8xf32>
    %61 = arith.truncf %60 : vector<8x8xf32> to vector<8x8xbf16>
    %c0_32 = arith.constant 0 : index
    %c24 = arith.constant 24 : index
    %62 = vector.load %arg21[%c0_32, %c24] : memref<8x32xbf16, #tpu.memory_space<vmem>>, vector<8x8xbf16>
    tpu.vector_store %arg21[%c0_32, %c24], %61 {strides = array<i32>} : memref<8x32xbf16, #tpu.memory_space<vmem>>, vector<8x8xbf16>,
    %c0_33 = arith.constant 0 : index
    %c0_34 = arith.constant 0 : index
    %63 = vector.load %arg21[%c0_33, %c0_34] : memref<8x32xbf16, #tpu.memory_space<vmem>>, vector<8x32xbf16>
    %c0_35 = arith.constant 0 : index
    %c0_36 = arith.constant 0 : index
    %64 = vector.load %arg7[%c0_35, %c0_36] : memref<32x32xbf16, #tpu.memory_space<vmem>>, vector<32x32xbf16>
    %cst_37 = arith.constant dense<0.000000e+00> : vector<8x32xf32>
    %65 = tpu.matmul %63, %64, %cst_37 {dimension_numbers = #tpu.dot_dimension_numbers<[1], [0], [0], [1], [0, 0, 1, 1], [], []>} : vector<8x32xbf16>, vector<32x32xbf16>, vector<8x32xf32> -> vector<8x32xf32>
    %c0_38 = arith.constant 0 : index
    %c0_39 = arith.constant 0 : index
    %66 = vector.load %arg8[%c0_38, %c0_39] : memref<1x32xf32, #tpu.memory_space<vmem>>, vector<1x32xf32>
    %67 = vector.broadcast %66 : vector<1x32xf32> to vector<8x32xf32>
    %68 = arith.addf %65, %67 : vector<8x32xf32>
    %69 = arith.addf %68, %7 : vector<8x32xf32>
    %c0_40 = arith.constant 0 : index
    %c0_41 = arith.constant 0 : index
    %70 = vector.load %arg9[%c0_40, %c0_41] : memref<1x32xf32, #tpu.memory_space<vmem>>, vector<1x32xf32>
    %c0_42 = arith.constant 0 : index
    %c0_43 = arith.constant 0 : index
    %71 = vector.load %arg10[%c0_42, %c0_43] : memref<1x32xf32, #tpu.memory_space<vmem>>, vector<1x32xf32>
    %cst_44 = arith.constant dense<0.000000e+00> : vector<8xf32>
    %72 = vector.multi_reduction <add>, %69, %cst_44 [1] : vector<8x32xf32> to vector<8xf32>
    %73 = vector.shape_cast %72 : vector<8xf32> to vector<8x1xf32>
    %cst_45 = arith.constant 3.200000e+01 : f32
    %74 = vector.broadcast %cst_45 : f32 to vector<8x1xf32>
    %75 = arith.divf %73, %74 : vector<8x1xf32>
    %76 = vector.broadcast %75 : vector<8x1xf32> to vector<8x32xf32>
    %77 = arith.subf %69, %76 : vector<8x32xf32>
    %78 = arith.mulf %77, %77 : vector<8x32xf32>
    %cst_46 = arith.constant dense<0.000000e+00> : vector<8xf32>
    %79 = vector.multi_reduction <add>, %78, %cst_46 [1] : vector<8x32xf32> to vector<8xf32>
    %80 = vector.shape_cast %79 : vector<8xf32> to vector<8x1xf32>
    %cst_47 = arith.constant 3.200000e+01 : f32
    %81 = vector.broadcast %cst_47 : f32 to vector<8x1xf32>
    %82 = arith.divf %80, %81 : vector<8x1xf32>
    %cst_48 = arith.constant 9.99999996E-13 : f32
    %83 = vector.broadcast %cst_48 : f32 to vector<8x1xf32>
    %84 = arith.addf %82, %83 : vector<8x1xf32>
    %85 = math.rsqrt %84 : vector<8x1xf32>
    %86 = vector.broadcast %85 : vector<8x1xf32> to vector<8x32xf32>
    %87 = arith.mulf %77, %86 : vector<8x32xf32>
    %88 = vector.broadcast %70 : vector<1x32xf32> to vector<8x32xf32>
    %89 = arith.mulf %87, %88 : vector<8x32xf32>
    %90 = vector.broadcast %71 : vector<1x32xf32> to vector<8x32xf32>
    %91 = arith.addf %89, %90 : vector<8x32xf32>
    %92 = arith.truncf %91 : vector<8x32xf32> to vector<8x32xbf16>
    %c0_49 = arith.constant 0 : index
    %c0_50 = arith.constant 0 : index
    %93 = vector.load %arg11[%c0_49, %c0_50] : memref<32x64xbf16, #tpu.memory_space<vmem>>, vector<32x64xbf16>
    %cst_51 = arith.constant dense<0.000000e+00> : vector<8x64xf32>
    %94 = tpu.matmul %92, %93, %cst_51 {dimension_numbers = #tpu.dot_dimension_numbers<[1], [0], [0], [1], [0, 0, 1, 1], [], []>} : vector<8x32xbf16>, vector<32x64xbf16>, vector<8x64xf32> -> vector<8x64xf32>
    %c0_52 = arith.constant 0 : index
    %c0_53 = arith.constant 0 : index
    %95 = vector.load %arg12[%c0_52, %c0_53] : memref<1x64xf32, #tpu.memory_space<vmem>>, vector<1x64xf32>
    %96 = vector.broadcast %95 : vector<1x64xf32> to vector<8x64xf32>
    %97 = arith.addf %94, %96 : vector<8x64xf32>
    %cst_54 = arith.constant 5.000000e-01 : f32
    %98 = vector.broadcast %cst_54 : f32 to vector<8x64xf32>
    %99 = arith.mulf %98, %97 : vector<8x64xf32>
    %cst_55 = arith.constant 0.707106769 : f32
    %100 = vector.broadcast %cst_55 : f32 to vector<8x64xf32>
    %101 = arith.mulf %97, %100 : vector<8x64xf32>
    %102 = math.absf %101 : vector<8x64xf32>
    %cst_56 = arith.constant 0.327591091 : f32
    %103 = vector.broadcast %cst_56 : f32 to vector<8x64xf32>
    %104 = arith.mulf %103, %102 : vector<8x64xf32>
    %cst_57 = arith.constant 1.000000e+00 : f32
    %105 = vector.broadcast %cst_57 : f32 to vector<8x64xf32>
    %106 = arith.addf %105, %104 : vector<8x64xf32>
    %cst_58 = arith.constant 1.000000e+00 : f32
    %107 = vector.broadcast %cst_58 : f32 to vector<8x64xf32>
    %108 = arith.divf %107, %106 : vector<8x64xf32>
    %cst_59 = arith.constant 1.06140542 : f32
    %109 = vector.broadcast %cst_59 : f32 to vector<8x64xf32>
    %110 = arith.mulf %109, %108 : vector<8x64xf32>
    %cst_60 = arith.constant -1.45315206 : f32
    %111 = vector.broadcast %cst_60 : f32 to vector<8x64xf32>
    %112 = arith.addf %110, %111 : vector<8x64xf32>
    %113 = arith.mulf %112, %108 : vector<8x64xf32>
    %cst_61 = arith.constant 1.42141378 : f32
    %114 = vector.broadcast %cst_61 : f32 to vector<8x64xf32>
    %115 = arith.addf %113, %114 : vector<8x64xf32>
    %116 = arith.mulf %115, %108 : vector<8x64xf32>
    %cst_62 = arith.constant -0.284496725 : f32
    %117 = vector.broadcast %cst_62 : f32 to vector<8x64xf32>
    %118 = arith.addf %116, %117 : vector<8x64xf32>
    %119 = arith.mulf %118, %108 : vector<8x64xf32>
    %cst_63 = arith.constant 0.254829586 : f32
    %120 = vector.broadcast %cst_63 : f32 to vector<8x64xf32>
    %121 = arith.addf %119, %120 : vector<8x64xf32>
    %122 = arith.mulf %121, %108 : vector<8x64xf32>
    %cst_64 = arith.constant 0.000000e+00 : f32
    %123 = vector.broadcast %cst_64 : f32 to vector<8x64xf32>
    %124 = arith.subf %123, %102 : vector<8x64xf32>
    %125 = arith.mulf %124, %102 : vector<8x64xf32>
    %126 = math.exp %125 : vector<8x64xf32>
    %127 = arith.mulf %122, %126 : vector<8x64xf32>
    %cst_65 = arith.constant 1.000000e+00 : f32
    %128 = vector.broadcast %cst_65 : f32 to vector<8x64xf32>
    %129 = arith.subf %128, %127 : vector<8x64xf32>
    %cst_66 = arith.constant 0.000000e+00 : f32
    %130 = vector.broadcast %cst_66 : f32 to vector<8x64xf32>
    %131 = arith.cmpf oge, %101, %130 : vector<8x64xf32>
    %cst_67 = arith.constant 0.000000e+00 : f32
    %132 = vector.broadcast %cst_67 : f32 to vector<8x64xf32>
    %133 = arith.subf %132, %129 : vector<8x64xf32>
    %134 = arith.select %131, %129, %133 : vector<8x64xi1>, vector<8x64xf32>
    %cst_68 = arith.constant 1.000000e+00 : f32
    %135 = vector.broadcast %cst_68 : f32 to vector<8x64xf32>
    %136 = arith.addf %135, %134 : vector<8x64xf32>
    %137 = arith.mulf %99, %136 : vector<8x64xf32>
    %138 = arith.truncf %137 : vector<8x64xf32> to vector<8x64xbf16>
    %c0_69 = arith.constant 0 : index
    %c0_70 = arith.constant 0 : index
    %139 = vector.load %arg13[%c0_69, %c0_70] : memref<64x32xbf16, #tpu.memory_space<vmem>>, vector<64x32xbf16>
    %cst_71 = arith.constant dense<0.000000e+00> : vector<8x32xf32>
    %140 = tpu.matmul %138, %139, %cst_71 {dimension_numbers = #tpu.dot_dimension_numbers<[1], [0], [0], [1], [0, 0, 1, 1], [], []>} : vector<8x64xbf16>, vector<64x32xbf16>, vector<8x32xf32> -> vector<8x32xf32>
    %c0_72 = arith.constant 0 : index
    %c0_73 = arith.constant 0 : index
    %141 = vector.load %arg14[%c0_72, %c0_73] : memref<1x32xf32, #tpu.memory_space<vmem>>, vector<1x32xf32>
    %142 = vector.broadcast %141 : vector<1x32xf32> to vector<8x32xf32>
    %143 = arith.addf %140, %142 : vector<8x32xf32>
    %144 = arith.addf %143, %91 : vector<8x32xf32>
    %c0_74 = arith.constant 0 : index
    %c0_75 = arith.constant 0 : index
    %145 = vector.load %arg15[%c0_74, %c0_75] : memref<1x32xf32, #tpu.memory_space<vmem>>, vector<1x32xf32>
    %c0_76 = arith.constant 0 : index
    %c0_77 = arith.constant 0 : index
    %146 = vector.load %arg16[%c0_76, %c0_77] : memref<1x32xf32, #tpu.memory_space<vmem>>, vector<1x32xf32>
    %cst_78 = arith.constant dense<0.000000e+00> : vector<8xf32>
    %147 = vector.multi_reduction <add>, %144, %cst_78 [1] : vector<8x32xf32> to vector<8xf32>
    %148 = vector.shape_cast %147 : vector<8xf32> to vector<8x1xf32>
    %cst_79 = arith.constant 3.200000e+01 : f32
    %149 = vector.broadcast %cst_79 : f32 to vector<8x1xf32>
    %150 = arith.divf %148, %149 : vector<8x1xf32>
    %151 = vector.broadcast %150 : vector<8x1xf32> to vector<8x32xf32>
    %152 = arith.subf %144, %151 : vector<8x32xf32>
    %153 = arith.mulf %152, %152 : vector<8x32xf32>
    %cst_80 = arith.constant dense<0.000000e+00> : vector<8xf32>
    %154 = vector.multi_reduction <add>, %153, %cst_80 [1] : vector<8x32xf32> to vector<8xf32>
    %155 = vector.shape_cast %154 : vector<8xf32> to vector<8x1xf32>
    %cst_81 = arith.constant 3.200000e+01 : f32
    %156 = vector.broadcast %cst_81 : f32 to vector<8x1xf32>
    %157 = arith.divf %155, %156 : vector<8x1xf32>
    %cst_82 = arith.constant 9.99999996E-13 : f32
    %158 = vector.broadcast %cst_82 : f32 to vector<8x1xf32>
    %159 = arith.addf %157, %158 : vector<8x1xf32>
    %160 = math.rsqrt %159 : vector<8x1xf32>
    %161 = vector.broadcast %160 : vector<8x1xf32> to vector<8x32xf32>
    %162 = arith.mulf %152, %161 : vector<8x32xf32>
    %163 = vector.broadcast %145 : vector<1x32xf32> to vector<8x32xf32>
    %164 = arith.mulf %162, %163 : vector<8x32xf32>
    %165 = vector.broadcast %146 : vector<1x32xf32> to vector<8x32xf32>
    %166 = arith.addf %164, %165 : vector<8x32xf32>
    %c0_83 = arith.constant 0 : index
    %c0_84 = arith.constant 0 : index
    %c0_85 = arith.constant 0 : index
    %167 = vector.load %arg17[%c0_83, %c0_84, %c0_85] : memref<1x8x32xf32, #tpu.memory_space<vmem>>, vector<1x8x32xf32>
    %168 = vector.shape_cast %167 : vector<1x8x32xf32> to vector<8x32xf32>
    %169 = vector.shape_cast %166 : vector<8x32xf32> to vector<1x8x32xf32>
    tpu.vector_store %arg17[%c0_83, %c0_84, %c0_85], %169 {strides = array<i32>} : memref<1x8x32xf32, #tpu.memory_space<vmem>>, vector<1x8x32xf32>,
    return
  }
  func.func @transform_0(%arg0: i32, %arg1: i32) -> (i32, i32, i32) {
    %c0_i32 = arith.constant 0 : i32
    %c0_i32_0 = arith.constant 0 : i32
    %c0_i32_1 = arith.constant 0 : i32
    return %arg0, %c0_i32, %c0_i32_0 : i32, i32, i32
  }
  func.func @transform_1(%arg0: i32, %arg1: i32) -> (i32, i32) {
    %c0_i32 = arith.constant 0 : i32
    %c0_i32_0 = arith.constant 0 : i32
    %c0_i32_1 = arith.constant 0 : i32
    return %c0_i32, %c0_i32_0 : i32, i32
  }
  func.func @transform_2(%arg0: i32, %arg1: i32) -> (i32, i32) {
    %c0_i32 = arith.constant 0 : i32
    %c0_i32_0 = arith.constant 0 : i32
    %c0_i32_1 = arith.constant 0 : i32
    return %c0_i32, %c0_i32_0 : i32, i32
  }
  func.func @transform_3(%arg0: i32, %arg1: i32) -> (i32, i32) {
    %c0_i32 = arith.constant 0 : i32
    %c0_i32_0 = arith.constant 0 : i32
    %c0_i32_1 = arith.constant 0 : i32
    return %c0_i32, %c0_i32_0 : i32, i32
  }
  func.func @transform_4(%arg0: i32, %arg1: i32) -> (i32, i32) {
    %c0_i32 = arith.constant 0 : i32
    %c0_i32_0 = arith.constant 0 : i32
    %c0_i32_1 = arith.constant 0 : i32
    return %c0_i32, %c0_i32_0 : i32, i32
  }
  func.func @transform_5(%arg0: i32, %arg1: i32) -> (i32, i32) {
    %c0_i32 = arith.constant 0 : i32
    %c0_i32_0 = arith.constant 0 : i32
    %c0_i32_1 = arith.constant 0 : i32
    return %c0_i32, %c0_i32_0 : i32, i32
  }
  func.func @transform_6(%arg0: i32, %arg1: i32) -> (i32, i32) {
    %c0_i32 = arith.constant 0 : i32
    %c0_i32_0 = arith.constant 0 : i32
    %c0_i32_1 = arith.constant 0 : i32
    return %c0_i32, %c0_i32_0 : i32, i32
  }
  func.func @transform_7(%arg0: i32, %arg1: i32) -> (i32, i32) {
    %c0_i32 = arith.constant 0 : i32
    %c0_i32_0 = arith.constant 0 : i32
    %c0_i32_1 = arith.constant 0 : i32
    return %c0_i32, %c0_i32_0 : i32, i32
  }
  func.func @transform_8(%arg0: i32, %arg1: i32) -> (i32, i32) {
    %c0_i32 = arith.constant 0 : i32
    %c0_i32_0 = arith.constant 0 : i32
    %c0_i32_1 = arith.constant 0 : i32
    return %c0_i32, %c0_i32_0 : i32, i32
  }
  func.func @transform_9(%arg0: i32, %arg1: i32) -> (i32, i32) {
    %c0_i32 = arith.constant 0 : i32
    %c0_i32_0 = arith.constant 0 : i32
    %c0_i32_1 = arith.constant 0 : i32
    return %c0_i32, %c0_i32_0 : i32, i32
  }
  func.func @transform_10(%arg0: i32, %arg1: i32) -> (i32, i32) {
    %c0_i32 = arith.constant 0 : i32
    %c0_i32_0 = arith.constant 0 : i32
    %c0_i32_1 = arith.constant 0 : i32
    return %c0_i32, %c0_i32_0 : i32, i32
  }
  func.func @transform_11(%arg0: i32, %arg1: i32) -> (i32, i32) {
    %c0_i32 = arith.constant 0 : i32
    %c0_i32_0 = arith.constant 0 : i32
    %c0_i32_1 = arith.constant 0 : i32
    return %c0_i32, %c0_i32_0 : i32, i32
  }
  func.func @transform_12(%arg0: i32, %arg1: i32) -> (i32, i32) {
    %c0_i32 = arith.constant 0 : i32
    %c0_i32_0 = arith.constant 0 : i32
    %c0_i32_1 = arith.constant 0 : i32
    return %c0_i32, %c0_i32_0 : i32, i32
  }
  func.func @transform_13(%arg0: i32, %arg1: i32) -> (i32, i32) {
    %c0_i32 = arith.constant 0 : i32
    %c0_i32_0 = arith.constant 0 : i32
    %c0_i32_1 = arith.constant 0 : i32
    return %c0_i32, %c0_i32_0 : i32, i32
  }
  func.func @transform_14(%arg0: i32, %arg1: i32) -> (i32, i32) {
    %c0_i32 = arith.constant 0 : i32
    %c0_i32_0 = arith.constant 0 : i32
    %c0_i32_1 = arith.constant 0 : i32
    return %c0_i32, %c0_i32_0 : i32, i32
  }
  func.func @transform_15(%arg0: i32, %arg1: i32) -> (i32, i32, i32) {
    %c0_i32 = arith.constant 0 : i32
    %c0_i32_0 = arith.constant 0 : i32
    return %arg0, %arg1, %c0_i32 : i32, i32, i32
  }
}

</mosaic_0001>

<bundles_post_ra>
// kernel: tpu_custom_call.1
= control target key start
LH: loop header
LB: loop body
LE: loop exit
PB: predicated region body
PF: predicated region fallthrough
CT: control target
= control target key end

     0   :  { %s2674_s0 = inlined_call_operand.vmem [shape: f32[2,8,32], index: 0, kind: input, shape index: {}]   ;;  %s2675_s1 = inlined_call_operand.vmem [shape: bf16[32,32], index: 1, kind: input, shape index: {}]   ;;  %s2676_s2 = inlined_call_operand.vmem [shape: f32[1,32], index: 2, kind: input, shape index: {}]   ;;  %s2677_s3 = inlined_call_operand.vmem [shape: bf16[32,64], index: 3, kind: input, shape index: {}]   ;;  %s2678_s4 = inlined_call_operand.vmem [shape: f32[1,64], index: 4, kind: input, shape index: {}]   ;;  %s2679_s5 = inlined_call_operand.hbm [shape: bf16[32,32], index: 5, kind: input, shape index: {}]   ;;  %s2680_s6 = inlined_call_operand.hbm [shape: f32[1,32], index: 6, kind: input, shape index: {}]   ;;  %s2681_s7 = inlined_call_operand.hbm [shape: f32[1,32], index: 7, kind: input, shape index: {}]   ;;  %s2682_s8 = inlined_call_operand.hbm [shape: f32[1,32], index: 8, kind: input, shape index: {}]   ;;  %s2683_s9 = inlined_call_operand.vmem [shape: bf16[32,64], index: 9, kind: input, shape index: {}]   ;;  %s2684_s10 = inlined_call_operand.vmem [shape: f32[1,64], index: 10, kind: input, shape index: {}]   ;;  %s2685_s11 = inlined_call_operand.vmem [shape: bf16[64,32], index: 11, kind: input, shape index: {}]   ;;  %s2686_s12 = inlined_call_operand.vmem [shape: f32[1,32], index: 12, kind: input, shape index: {}]   ;;  %s2687_s13 = inlined_call_operand.vmem [shape: f32[1,32], index: 13, kind: input, shape index: {}]   ;;  %s2688_s14 = inlined_call_operand.vmem [shape: f32[1,32], index: 14, kind: input, shape index: {}]   ;;  %s2689_s15 = inlined_call_operand.hbm [shape: f32[2,8,32], index: 15, kind: output, shape index: {}]  }
   0x1   :  { %2705 = sst [smem:[#allocation28_spill]] %s2680_s6 }
   0x2   :  { %2706 = sst [smem:[#allocation29_spill]] %s2684_s10 }
   0x3   :  { %2707 = sst [smem:[#allocation30_spill]] %s2686_s12 }
   0x4   :  { %2708 = sst [smem:[#allocation31_spill]] %s2687_s13 }
   0x5   :  { %2709 = sst [smem:[#allocation32_spill]] %s2688_s14 }
   0x6   :  { %2710 = sst [smem:[#allocation33_spill]] %s2689_s15 }
   0x7   :  { %20 = vsyncpa [#allocation7], 0 }
   0x8   :  { %21 = vsyncpa [#allocation10], 0 }
   0x9   :  { %22 = vsyncpa [#allocation13], 0 }
   0xa   :  { %23 = vsyncpa [#allocation8], 0 }
   0xb   :  { %25 = vsyncpa [#allocation8 + $0x1], 0  ;;  %s2292_s18 = smov 0   ;;  %s2294_s19 = smov 0  }
   0xc   :  { %s2296_s20 = smov 0   ;;  %s2298_s21 = smov 0  }
   0xd   :  { %s2300_s22 = smov 0   ;;  %s2302_s23 = smov 0  }
   0xe LB: > { %2711 = sst [smem:[#allocation19_spill]] %s2171_s18  ;;  %s1655_s24 = sadd.s32 4294967295, %s2191_s23   ;;  %s2191_s23 = sphi %s2302_s23, %s31_s23   ;;  %s2187_s22 = sphi %s2300_s22, %s2745_s22   ;;  %s2183_s21 = sphi %s2298_s21, %s2744_s21   ;;  %s2179_s20 = sphi %s2296_s20, %s2743_s20   ;;  %s2175_s19 = sphi %s2294_s19, %s2742_s19   ;;  %s2171_s18 = sphi %s2292_s18, %s2741_s18  }
   0xf   : > { %2712 = sst [smem:[#allocation20_spill]] %s2175_s19  ;;  %s1656_s25 = sadd.s32 4294967294, %s2191_s23  }
  0x10   : > { %2713 = sst [smem:[#allocation21_spill]] %s2179_s20  ;;  %s43_s26 = sadd.s32 1, %s2187_s22 }
  0x11   : > { %2714 = sst [smem:[#allocation22_spill]] %s2187_s22  ;;  %s372_s27 = sadd.s32 1, %s2179_s20 }
  0x12   : > { %2715 = sst [smem:[#allocation23_spill]] %s2191_s23  ;;  %p45_p0 = scmp.ge.s32.totalorder %s43_s26, 2 }
  0x13   : > { %p382_p1 = scmp.ne.s32.totalorder %s2179_s20, %s2175_s19  ;;  %p383_p2 = scmp.eq.s32.totalorder %s1655_s24, 1 }
  0x14   : > { %p388_p3 = scmp.ne.s32.totalorder %s2175_s19, %s2171_s18  ;;  %s2747_s26 = smov (%p45_p0, %s43_s26), 0 }
  0x15   : > { %2716 = sst [smem:[#allocation24_spill]] %s2747_s26  ;;  %p2332_p4 = por %p383_p2, %p382_p1 }
  0x16   : > { %p389_p5 = scmp.eq.s32.totalorder %s1656_s25, 1  ;;  %s367_s29 = ssub.s32 %s2187_s22, %s2747_s26 }
  0x17   : > { %s2717_s28 = scalar_select %p2332_p4, 1, 0 }
  0x18   : > { %p1657_p6 = scmp.ge.s32.totalorder %s2191_s23, 1  ;;  %p370_p7 = scmp.eq.s32.totalorder %s367_s29, 0 }
  0x19   : > { %2718 = sst [smem:[#allocation25_spill]] %s2717_s28  ;;  %p2339_p8 = por %p389_p5, %p388_p3 }
  0x1a   : > { %p396_p9 = scmp.lt.s32.totalorder %s2191_s23, 3  ;;  %p2351_p11 = scmp.eq.s32.totalorder %s1655_s24, 0 }
  0x1b   : > { %s2719_s30 = scalar_select %p2339_p8, 1, 0 }
  0x1c   : > { %s2345_s16 = scalar_select %p370_p7, %s2179_s20, %s372_s27  }
  0x1d   : > { %2720 = sst [smem:[#allocation26_spill]] %s2719_s30  ;;  %p2347_p10 = pnand %p1657_p6, %p396_p9 }
  0x1e   : > { %2721 = sst [smem:[#allocation27_spill]] %s2345_s16  ;;  %s2193_s25 = smov [#allocation9]  }
  0x1f   : > { %s2722_s17 = scalar_select %p2347_p10, 1, 0 }
  0x20   : > { %s2723_s18 = scalar_select %p2351_p11, 1, 0 }
  0x21   : > { %p1861_p12 = pneg %p2347_p10  ;;  %s434_s29 = sshll.u32 %s2193_s25, 4  ;;  %s435_s29 = int_to_ptr.vmem [resolvable:$true] %s434_s29 }
  0x22   : > { %s2194_s27 = smov [#allocation6]   ;;  %s2725_s6 = sld [smem:[#allocation28_spill]] }
  0x23   : > { %p2359_p13 = pnand %p2351_p11, %p1861_p12  ;;  %s420_s22 = sshll.u32 %s2194_s27, 4  ;;  %s2363_s22 = int_to_ptr.vmem [resolvable:$true] %s420_s22 }
  0x25   : > { %p2373_p1 = pneg %p2359_p13 }
  0x28   : > { %s1989_s20 = scalar_lea.hbm %s2725_s6, 16 }
  0x29   : > { %p1990_p0 = scmp.ne.s32.totalorder %s2725_s6, %s1989_s20  ;;  %p1996_p5 = scmp.lt.u32.totalorder %s1989_s20, %s2725_s6 }
  0x2b   : > { %p1992_p2 = pnand %p2373_p1, %p1990_p0 }
  0x2d   : > { %p1993_p3 = pneg %p1992_p2 }
  0x2f   : > { %p1998_p6 = pnand %p1996_p5, %p1993_p3 }
  0x31   : > { %2001 = shalt.err (!%p1998_p6)
}
  0x32   : > { %s2002_s16 = scalar_lea.vmem %s435_s29, 16  ;;  %s2009_s23 = scalar_lea.vmem %s435_s29, 32 }
  0x33   : > { %p2003_p7 = scmp.ne.s32.totalorder %s435_s29, %s2002_s16  ;;  %p2010_p8 = scmp.lt.s32.totalorder %s435_s29, %s435_s29 }
  0x34   : > { %p2011_p4 = scmp.lt.s32.totalorder %s2009_s23, %s2002_s16 }
  0x35   : > { %p2005_p9 = pnand %p2003_p7, %p2373_p1 }
  0x36   : > { %p2012_p11 = por %p2011_p4, %p2010_p8 }
  0x37   : > { %p2006_p12 = pneg %p2005_p9 }
  0x39   : > { %p2013_p10 = pnand %p2012_p11, %p2006_p12 }
  0x3b   : > { %2016 = shalt.err (!%p2013_p10)
}
  0x3c   : > { %1867 = dma.hbm_to_vmem [thread:$0]  (!%p2359_p13), %s2725_s6, 16, %s435_s29, [#allocation10]  }
  0x3d   : > { %s2017_s27 = scalar_lea.hbm %s2679_s5, 256 }
  0x3e   : > { %p2018_p0 = scmp.ne.s32.totalorder %s2679_s5, %s2017_s27  ;;  %p2024_p8 = scmp.lt.u32.totalorder %s2017_s27, %s2679_s5 }
  0x40   : > { %p2020_p2 = pnand %p2018_p0, %p2373_p1 }
  0x42   : > { %p2021_p4 = pneg %p2020_p2 }
  0x44   : > { %p2026_p10 = pnand %p2024_p8, %p2021_p4 }
  0x46   : > { %2029 = shalt.err (!%p2026_p10)
}
  0x47   : > { %s2030_s29 = scalar_lea.vmem %s2363_s22, 256  ;;  %p2038_p6 = scmp.lt.s32.totalorder %s2363_s22, %s2363_s22 }
  0x48   : > { %p2031_p11 = scmp.ne.s32.totalorder %s2363_s22, %s2030_s29  ;;  %p2039_p7 = scmp.lt.s32.totalorder %s2030_s29, %s2030_s29 }
  0x4a   : > { %p2033_p3 = pnand %p2031_p11, %p2373_p1  ;;  %p2040_p9 = por %p2039_p7, %p2038_p6 }
  0x4c   : > { %p2034_p5 = pneg %p2033_p3 }
  0x4e   : > { %p2041_p12 = pnand %p2040_p9, %p2034_p5 }
  0x50   : > { %2044 = shalt.err (!%p2041_p12)
}
  0x51   : > { %s2195_s13 = smov 64   ;;  %s2196_s14 = smov 4  }
  0x52   : > { %1864 = dma.hbm_to_vmem [thread:$0]  (!%p2359_p13), %s2679_s5, 256, %s2363_s22, [#allocation7], %s2195_s13, %s2195_s13, %s2196_s14  }
  0x53   : > { %s2197_s15 = smov [#allocation11]   ;;  %s2198_s27 = smov [#allocation12]  }
  0x54   : > { %s445_s20 = sshll.u32 %s2197_s15, 4  ;;  %s456_s16 = sshll.u32 %s2198_s27, 4  ;;  %s446_s20 = int_to_ptr.vmem [resolvable:$true] %s445_s20  ;;  %s457_s16 = int_to_ptr.vmem [resolvable:$true] %s456_s16 }
  0x55   : > { %s2045_s6 = scalar_lea.hbm %s2681_s7, 16 }
  0x56   : > { %p2046_p0 = scmp.ne.s32.totalorder %s2681_s7, %s2045_s6  ;;  %p2052_p8 = scmp.lt.u32.totalorder %s2045_s6, %s2681_s7 }
  0x58   : > { %p2048_p2 = pnand %p2046_p0, %p2373_p1 }
  0x5a   : > { %p2049_p4 = pneg %p2048_p2 }
  0x5c   : > { %p2054_p10 = pnand %p2052_p8, %p2049_p4 }
  0x5e   : > { %2057 = shalt.err (!%p2054_p10)
}
  0x5f   : > { %s2058_s22 = scalar_lea.vmem %s446_s20, 16  ;;  %s2065_s13 = scalar_lea.vmem %s446_s20, 32 }
  0x60   : > { %p2059_p11 = scmp.ne.s32.totalorder %s446_s20, %s2058_s22  ;;  %p2066_p6 = scmp.lt.s32.totalorder %s446_s20, %s446_s20 }
  0x61   : > { %p2067_p7 = scmp.lt.s32.totalorder %s2065_s13, %s2058_s22 }
  0x62   : > { %p2061_p3 = pnand %p2059_p11, %p2373_p1 }
  0x63   : > { %p2068_p9 = por %p2067_p7, %p2066_p6 }
  0x64   : > { %p2062_p5 = pneg %p2061_p3 }
  0x66   : > { %p2069_p12 = pnand %p2068_p9, %p2062_p5 }
  0x68   : > { %2072 = shalt.err (!%p2069_p12)
}
  0x69   : > { %1870 = dma.hbm_to_vmem [thread:$0]  (!%p2359_p13), %s2681_s7, 16, %s446_s20, [#allocation10]  }
  0x6a   : > { %s2073_s12 = scalar_lea.hbm %s2682_s8, 16 }
  0x6b   : > { %p2074_p0 = scmp.ne.s32.totalorder %s2682_s8, %s2073_s12  ;;  %p2080_p8 = scmp.lt.u32.totalorder %s2073_s12, %s2682_s8 }
  0x6d   : > { %p2076_p2 = pnand %p2074_p0, %p2373_p1 }
  0x6f   : > { %p2077_p4 = pneg %p2076_p2 }
  0x71   : > { %p2082_p10 = pnand %p2080_p8, %p2077_p4 }
  0x73   : > { %2085 = shalt.err (!%p2082_p10)
}
  0x74   : > { %s2086_s27 = scalar_lea.vmem %s457_s16, 16  ;;  %s2093_s20 = scalar_lea.vmem %s457_s16, 32 }
  0x75   : > { %p2087_p11 = scmp.ne.s32.totalorder %s457_s16, %s2086_s27  ;;  %p2094_p6 = scmp.lt.s32.totalorder %s457_s16, %s457_s16 }
  0x76   : > { %p2095_p7 = scmp.lt.s32.totalorder %s2093_s20, %s2086_s27 }
  0x77   : > { %p2089_p3 = pnand %p2087_p11, %p2373_p1 }
  0x78   : > { %p2096_p9 = por %p2095_p7, %p2094_p6 }
  0x79   : > { %p2090_p5 = pneg %p2089_p3 }
  0x7b   : > { %p2097_p12 = pnand %p2096_p9, %p2090_p5 }
  0x7d   : > { %2100 = shalt.err (!%p2097_p12)
}
  0x7e   : > { %1873 = dma.hbm_to_vmem [thread:$0]  (!%p2359_p13), %s2682_s8, 16, %s457_s16, [#allocation13]  }
  0x7f   : > { %p2727_p0 = scmp.ne.s32.totalorder %s2722_s17, 0 }
  0x80   : > { %p2728_p2 = scmp.ne.s32.totalorder (!%p2727_p0), %s2723_s18, 0 }
  0x81   : > { %494 = sbr.rel (%p2727_p0) target bundleno = 2718 (0xa9e), region = 80 }
  0x88   : > { %2154 = dma.done.wait (%p2728_p2), [#allocation7], 256  }
  0x89   : > { %2156 = vsyncadd (%p2728_p2), [#allocation7], 4294967040 }
  0x8a   : > { %2158 = dma.done.wait (%p2728_p2), [#allocation10], 32  }
  0x8b   : > { %2160 = vsyncadd (%p2728_p2), [#allocation10], 4294967264 }
  0x8c   : > { %2162 = dma.done.wait (%p2728_p2), [#allocation13], 16  }
  0x8d   : > { %2164 = vsyncadd (%p2728_p2), [#allocation13], 4294967280  ;;  %p553_p13 = scmp.lt.s32.totalorder %s2183_s21, 1  ;;  %v2199_v0 = vmov 0.0   ;;  %vm2200_vm0 = vmmov 0   ;;  %v1953_v1 = vld [vmem:[%s2677_s3] sm:$0xff]  }
  0x8e   : > { %1751 = vmatprep.subr.bf16.mxu1 %v2199_v0  ;;  %1755 = vmatprep.mubr.msk.bf16.mxu1 %vm2200_vm0, %v2199_v0  ;;  %v1954_v2 = vld [vmem:[%s2677_s3 + $0x8] sm:$0xff]   ;;  %vm587_vm1 = vcmask 261120   ;;  %v1955_v4 = vld [vmem:[%s2675_s1] sm:$0xff]   ;;  %vm632_vm2 = vcmask 60416   ;;  %s2201_s15 = smov 104   ;;  %s2202_s27 = smov 120  }
  0x8f   : > { %s554_s26 = scalar_select %p553_p13, %s2183_s21, 1  ;;  %1767 = vmatprep.subr.bf16.mxu0 %v2199_v0  ;;  %1769 = vmatprep.mubr.msk.bf16.mxu0 %vm2200_vm0, %v2199_v0  ;;  %v1956_v6 = vld [vmem:[%s2675_s1 + $0x8] sm:$0xff]   ;;  %v1670_v7 = vld [vmem:[%s2678_s4] ss:$0 sm:$0xff]  ;;  %vm775_vm3 = vcmask 64512   ;;  %vm1011_vm4 = vcmask 1043456  }
  0x90   : > { %1752 = vmatpush3.bf16.msra.mxu1 %v1953_v1  ;;  %v1675_v14 = vld [vmem:[%s2676_s2] ss:$0 sm:$0xff]  ;;  %s2203_s29 = smov 112   ;;  %s2206_s25 = smov 72   ;;  %vm1202_vm5 = vcmask 126016   ;;  %vm1211_vm6 = vcmask 191616  }
  0x91   : > { %s1669_s17 = sshll.u32 %s554_s26, 3  ;;  %1753 = vmatprep.subr.bf16.mxu1 %v2199_v0  ;;  %s2204_s26 = smov 96   ;;  %vm1220_vm7 = vcmask 257216   ;;  %vm1454_vm9 = vcmask 523264  }
  0x92   : > { %s556_s16 = scalar_lea.vmem %s2674_s0, %s1669_s17  ;;  %s2205_s17 = smov 80  }
  0x93   : > { %v2479_v3 = vld [vmem:[%s556_s16] sm:$0xff]  ;;  %s2207_s18 = smov 88   ;;  %s2208_s16 = smov 16  }
  0x94   : > { %v563_v5 = vpack.c.bf16 %v2479_v3, %v2479_v3  ;;  %1754 = vmatpush3.bf16.msra.mxu1 %v1954_v2  ;;  %s2209_s22 = smov 8   ;;  %s2210_s13 = smov 24  }
  0x95   : > { %1759 = vmatprep.subr.bf16.mxu1 %v2199_v0  ;;  %s2732_s28 = sld [smem:[#allocation25_spill]]  ;;  %s2733_s12 = sld [smem:[#allocation31_spill]] }
  0x96   : > { %s2734_s24 = sld [smem:[#allocation32_spill]] }
  0x97   : > { %1756 = vmatmul.mubr.msk.bf16.vlgmr.msra.gmra.mrb[0].mxu1 %vm587_vm1, %v563_v5 }
  0x98   : > { %1760 = vmatpush3.bf16.msra.mxu1 %v1955_v4  ;;  %1763 = vmatprep.mubr.msk.bf16.mxu1 %vm2200_vm0, %v2199_v0 }
  0x99   : > { %1761 = vmatprep.subr.bf16.mxu1 %v2199_v0 }
  0x9b   : > { %p2736_p4 = scmp.ne.s32.totalorder %s2732_s28, 0 }
  0x9c   : > { %1762 = vmatpush3.bf16.msra.mxu1 %v1956_v6 }
  0x9d   : > { %1773 = vmatprep.subr.bf16.mxu1 %v2199_v0 }
  0x9f   : > { %1764 = vmatmul.mubr.msk.bf16.vlgmr.msra.gmra.mrb[4].mxu1 %vm587_vm1, %v563_v5 }
  0xa0   : > { %1775 = vmatprep.mubr.msk.bf16.mxu1 %vm2200_vm0, %v2199_v0 }
 0x16a   : > { %v625_v8 = vpop.f32.mrb[0].mxu1 }
 0x16b   : > { %v626_v9 = vadd.f32 %v1670_v7, %v625_v8  ;;  %v1757_v10 = vpop.f32.mrb[1].mxu1 }
 0x16c   : > { %v628_v11 = vpop.f32.mrb[2].mxu1 }
 0x16d   : > { %v2502_v12 = vpack.c.bf16 %v626_v9, %v626_v9  ;;  %v1758_v13 = vpop.f32.mrb[3].mxu1 }
 0x16f   : > { %633 = vst.msk [vmem:[#allocation2] sm:$0xf] %vm632_vm2, %v2502_v12  ;;  %661 = vrot.lane.b32.xlu1 %v2502_v12, %s2201_s15  ;;  %641 = vrot.lane.b32.xlu0 %v2502_v12, %s2202_s27 }
 0x172   : > { %v736_v15 = vpop.f32.mrb[4].mxu1 }
 0x173   : > { %v737_v16 = vadd.f32 %v1675_v14, %v736_v15  ;;  %651 = vrot.lane.b32.xlu0 %v2502_v12, %s2203_s29  ;;  %v1765_v17 = vpop.f32.mrb[5].mxu1 }
 0x174   : > { %v739_v18 = vpop.f32.mrb[6].mxu1 }
 0x175   : > { %v742_v19 = vpack.c.bf16 %v737_v16, %v737_v16  ;;  %v1766_v20 = vpop.f32.mrb[7].mxu1 }
 0x176   : > { %v767_v21 = vld [vmem:[#allocation2] sm:$0xf] }
 0x177   : > { %744 = vst.msk [vmem:[#allocation4] sm:$0xf] %vm632_vm2, %v742_v19  ;;  %753 = vrot.lane.b32.xlu0 %v742_v19, %s2203_s29  ;;  %748 = vrot.lane.b32.xlu1 %v742_v19, %s2202_s27  ;;  %v780_v22 = vsel %vm775_vm3, %v767_v21, 0 }
 0x178   : > { %1768 = vmatpush3.bf16.xpose.msra.mxu0 %v780_v22 }
 0x179   : > { %1779 = vmatprep.subr.bf16.mxu0 %v2199_v0 }
 0x17b   : > { %758 = vrot.lane.b32.xlu1 %v742_v19, %s2201_s15  ;;  %s1710_s15 = sshll.u32 %s2183_s21, 7  ;;  %s2211_s21 = smov [#allocation14]  }
 0x17e   : > { %v763_v23 = vld [vmem:[#allocation4] sm:$0xf] }
 0x17f   : > { %1770 = vmatmul.mubr.msk.bf16.vlgmr.msra.gmra.mrb[0].mxu0 %vm775_vm3, %v763_v23 }
 0x180   : > { %1781 = vmatprep.mubr.msk.bf16.mxu0 %vm2200_vm0, %v2199_v0 }
 0x1e1   : > { %v662_v24 = vpop.permute.xlu1 %661  ;;  %v642_v25 = vpop.permute.xlu0 %641 }
 0x1e2   : > { %665 = vst.msk [vmem:[#allocation2 + $0xc] sm:$0xf] %vm632_vm2, %v662_v24  ;;  %645 = vst.msk [vmem:[#allocation2 + $0x4] sm:$0xf] %vm632_vm2, %v642_v25 }
 0x1e5   : > { %v652_v26 = vpop.permute.xlu0 %651 }
 0x1e6   : > { %655 = vst.msk [vmem:[#allocation2 + $0x8] sm:$0xf] %vm632_vm2, %v652_v26 }
 0x1e9   : > { %v754_v27 = vpop.permute.xlu0 %753  ;;  %v749_v28 = vpop.permute.xlu1 %748  ;;  %v768_v29 = vld [vmem:[#allocation2 + $0x4] sm:$0xf]  ;;  %v770_v34 = vld [vmem:[#allocation2 + $0xc] sm:$0xf] }
 0x1ea   : > { %757 = vst.msk [vmem:[#allocation4 + $0x8] sm:$0xf] %vm632_vm2, %v754_v27  ;;  %752 = vst.msk [vmem:[#allocation4 + $0x4] sm:$0xf] %vm632_vm2, %v749_v28  ;;  %v826_v30 = vsel %vm775_vm3, %v768_v29, 0  ;;  %v918_v36 = vsel %vm775_vm3, %v770_v34, 0 }
 0x1eb   : > { %1774 = vmatpush3.bf16.xpose.msra.mxu1 %v826_v30 }
 0x1ec   : > { %1785 = vmatprep.subr.bf16.mxu1 %v2199_v0 }
 0x1ed   : > { %v759_v31 = vpop.permute.xlu1 %758  ;;  %v769_v32 = vld [vmem:[#allocation2 + $0x8] sm:$0xf] }
 0x1ee   : > { %762 = vst.msk [vmem:[#allocation4 + $0xc] sm:$0xf] %vm632_vm2, %v759_v31  ;;  %v872_v33 = vsel %vm775_vm3, %v769_v32, 0 }
 0x1ef   : > { %1780 = vmatpush3.bf16.xpose.msra.mxu0 %v872_v33 }
 0x1f0   : > { %1791 = vmatprep.subr.bf16.mxu0 %v2199_v0 }
 0x1f1   : > { %v764_v35 = vld [vmem:[#allocation4 + $0x4] sm:$0xf]  ;;  %v765_v37 = vld [vmem:[#allocation4 + $0x8] sm:$0xf] }
 0x1f2   : > { %1776 = vmatmul.mubr.msk.bf16.vlgmr.msra.gmra.mrb[8].mxu1 %vm775_vm3, %v764_v35 }
 0x1f3   : > { %1786 = vmatpush3.bf16.xpose.msra.mxu1 %v918_v36  ;;  %1787 = vmatprep.mubr.msk.bf16.mxu1 %vm2200_vm0, %v2199_v0 }
 0x1f4   : > { %1797 = vmatprep.subr.bf16.mxu1 %v2199_v0 }
 0x1f5   : > { %v766_v38 = vld [vmem:[#allocation4 + $0xc] sm:$0xf] }
 0x1f6   : > { %1782 = vmatmul.mubr.msk.bf16.vlgmr.msra.gmra.mrb[4].mxu0 %vm775_vm3, %v765_v37 }
 0x1f7   : > { %1793 = vmatprep.mubr.msk.bf16.mxu0 %vm2200_vm0, %v2199_v0 }
 0x1fa   : > { %1788 = vmatmul.mubr.msk.bf16.vlgmr.msra.gmra.mrb[12].mxu1 %vm775_vm3, %v766_v38 }
 0x1fb   : > { %1799 = vmatprep.mubr.msk.bf16.mxu1 %vm2200_vm0, %v2199_v0 }
 0x252   : > { %v816_v39 = vpop.f32.mrb[0].mxu0 }
 0x253   : > { %v1771_v40 = vpop.f32.mrb[1].mxu0  ;;  %v960_v41 = vsel %vm775_vm3, %v816_v39, -inf }
 0x254   : > { %961 = vmax.xlane.f32.xlu0 %v960_v41  ;;  %v819_v42 = vpop.f32.mrb[2].mxu0 }
 0x255   : > { %v1772_v43 = vpop.f32.mrb[3].mxu0 }
 0x2c5   : > { %v862_v44 = vpop.f32.mrb[8].mxu1 }
 0x2c6   : > { %v1777_v45 = vpop.f32.mrb[9].mxu1  ;;  %v963_v46 = vsel %vm775_vm3, %v862_v44, -inf }
 0x2c7   : > { %964 = vmax.xlane.f32.xlu1 %v963_v46  ;;  %v865_v47 = vpop.f32.mrb[10].mxu1 }
 0x2c8   : > { %v1778_v48 = vpop.f32.mrb[11].mxu1 }
 0x2c9   : > { %v908_v49 = vpop.f32.mrb[4].mxu0 }
 0x2ca   : > { %v1783_v50 = vpop.f32.mrb[5].mxu0  ;;  %v966_v51 = vsel %vm775_vm3, %v908_v49, -inf }
 0x2cb   : > { %967 = vmax.xlane.f32.xlu0 %v966_v51  ;;  %v911_v52 = vpop.f32.mrb[6].mxu0 }
 0x2cc   : > { %v1784_v53 = vpop.f32.mrb[7].mxu0 }
 0x2cd   : > { %v954_v54 = vpop.f32.mrb[12].mxu1  ;;  %v1957_v53 = vld [vmem:[#allocation6] sm:$0xff]  }
 0x2ce   : > { %v1789_v55 = vpop.f32.mrb[13].mxu1  ;;  %v969_v56 = vsel %vm775_vm3, %v954_v54, -inf }
 0x2cf   : > { %970 = vmax.xlane.f32.xlu0 %v969_v56  ;;  %v957_v57 = vpop.f32.mrb[14].mxu1  ;;  %v1958_v56 = vld [vmem:[#allocation6 + $0x8] sm:$0xff]  }
 0x2d0   : > { %v1790_v58 = vpop.f32.mrb[15].mxu1 }
 0x2d8   : > { %637 = vrot.lane.b32.xlu1 %v2502_v12, %s2204_s26  ;;  %s2735_s26 = sld [smem:[#allocation33_spill]] }
 0x2e1   : > { %v962_v59 = vpop.xlane.xlu0 %961 }
 0x2e2   : > { %v972_v60 = vsub.f32 %v816_v39, %v962_v59 }
 0x2e4   : > { %v976_v61 = vmul.f32 1.442695, %v972_v60 }
 0x2e6   : > { %1965 = vpow2.f32 %v976_v61 }
 0x2f0   : > { %v1966_v62 = vpop.eup %1965 }
 0x2f1   : > { %v984_v63 = vsel %vm775_vm3, %v1966_v62, 0.0 }
 0x2fc   : > { %985 = vadd.xlane.f32.xlu1 %v984_v63 }
 0x354   : > { %v965_v1 = vpop.xlane.xlu1 %964 }
 0x355   : > { %v973_v2 = vsub.f32 %v862_v44, %v965_v1 }
 0x357   : > { %v978_v4 = vmul.f32 1.442695, %v973_v2 }
 0x358   : > { %v968_v5 = vpop.xlane.xlu0 %967  ;;  %v638_v6 = vpop.permute.xlu1 %637 }
 0x359   : > { %1967 = vpow2.f32 %v978_v4  ;;  %v974_v7 = vsub.f32 %v908_v49, %v968_v5  ;;  %640 = vst.msk [vmem:[#allocation3] sm:$0xf] %vm632_vm2, %v638_v6 }
 0x35b   : > { %v980_v8 = vmul.f32 1.442695, %v974_v7 }
 0x35c   : > { %v971_v9 = vpop.xlane.xlu0 %970 }
 0x35d   : > { %1969 = vpow2.f32 %v980_v8  ;;  %v975_v10 = vsub.f32 %v954_v54, %v971_v9  ;;  %v1691_v9 = vld [vmem:[#allocation9] ss:$0 sm:$0xff] }
 0x35f   : > { %v982_v11 = vmul.f32 1.442695, %v975_v10 }
 0x360   : > { %v771_v13 = vld [vmem:[#allocation3] sm:$0xf] }
 0x361   : > { %1971 = vpow2.f32 %v982_v11  ;;  %v1013_v14 = vsel %vm1011_vm4, %v771_v13, 0 }
 0x362   : > { %1792 = vmatpush3.bf16.msra.mxu0 %v1013_v14 }
 0x363   : > { %v1968_v15 = vpop.eup %1967  ;;  %1803 = vmatprep.subr.bf16.mxu0 %v2199_v0 }
 0x364   : > { %v987_v16 = vsel %vm775_vm3, %v1968_v15, 0.0 }
 0x365   : > { %988 = vadd.xlane.f32.xlu0 %v987_v16 }
 0x367   : > { %v1970_v17 = vpop.eup %1969 }
 0x368   : > { %v990_v18 = vsel %vm775_vm3, %v1970_v17, 0.0 }
 0x369   : > { %991 = vadd.xlane.f32.xlu1 %v990_v18 }
 0x36b   : > { %v1972_v19 = vpop.eup %1971 }
 0x36c   : > { %v993_v20 = vsel %vm775_vm3, %v1972_v19, 0.0 }
 0x36d   : > { %994 = vadd.xlane.f32.xlu0 %v993_v20 }
 0x37a   : > { %656 = vrot.lane.b32.xlu1 %v2502_v12, %s2205_s17  ;;  %s2729_s17 = sld [smem:[#allocation29_spill]] }
 0x37e   : > { %666 = vrot.lane.b32.xlu1 %v2502_v12, %s2206_s25 }
 0x383   : > { %646 = vrot.lane.b32.xlu0 %v2502_v12, %s2207_s18 }
 0x389   : > { %v986_v21 = vpop.xlane.xlu1 %985 }
 0x38a   : > { %1973 = vrcp.f32 %v986_v21 }
 0x394   : > { %v1974_v22 = vpop.eup %1973 }
 0x395   : > { %v1000_v23 = vmul.f32 %v1974_v22, %v1966_v62 }
 0x397   : > { %v1004_v24 = vpack.c.bf16 %v1000_v23, %v1000_v23  ;;  %v1959_v23 = vld [vmem:[%s2683_s9] sm:$0xff]  }
 0x399   : > { %1794 = vmatmul.mubr.msk.bf16.vlgmr.msra.gmra.mrb[8].mxu0 %vm775_vm3, %v1004_v24 }
 0x39a   : > { %1805 = vmatprep.mubr.msk.bf16.mxu0 %vm2200_vm0, %v2199_v0 }
 0x3f2   : > { %v989_v25 = vpop.xlane.xlu0 %988 }
 0x3f6   : > { %v992_v26 = vpop.xlane.xlu1 %991 }
 0x3f7   : > { %1975 = vrcp.f32 %v992_v26 }
 0x3f8   : > { %1977 = vrcp.f32 %v989_v25 }
 0x3fa   : > { %v657_v27 = vpop.permute.xlu1 %656  ;;  %v995_v28 = vpop.xlane.xlu0 %994 }
 0x3fb   : > { %660 = vst.msk [vmem:[#allocation3 + $0x8] sm:$0xf] %vm632_vm2, %v657_v27  ;;  %1979 = vrcp.f32 %v995_v28  ;;  %v1695_v28 = vld [vmem:[#allocation11] ss:$0 sm:$0xff] }
 0x3fe   : > { %v667_v29 = vpop.permute.xlu1 %666  ;;  %v647_v12 = vpop.permute.xlu0 %646 }
 0x3ff   : > { %670 = vst.msk [vmem:[#allocation3 + $0xc] sm:$0xf] %vm632_vm2, %v667_v29  ;;  %650 = vst.msk [vmem:[#allocation3 + $0x4] sm:$0xf] %vm632_vm2, %v647_v12  ;;  %v1696_v12 = vld [vmem:[#allocation12] ss:$0 sm:$0xff] }
 0x401   : > { %v1976_v30 = vpop.eup %1975 }
 0x402   : > { %v1978_v31 = vpop.eup %1977  ;;  %v1002_v32 = vmul.f32 %v1976_v30, %v1970_v17  ;;  %v773_v33 = vld [vmem:[#allocation3 + $0x8] sm:$0xf] }
 0x403   : > { %v1105_v34 = vsel %vm1011_vm4, %v773_v33, 0  ;;  %v1001_v36 = vmul.f32 %v1978_v31, %v1968_v15  ;;  %v1961_v33 = vld [vmem:[%s2685_s11] sm:$0xff]  }
 0x404   : > { %1804 = vmatpush3.bf16.msra.mxu0 %v1105_v34  ;;  %v1006_v35 = vpack.c.bf16 %v1002_v32, %v1002_v32  ;;  %v1962_v34 = vld [vmem:[%s2685_s11 + $0x8] sm:$0xff]  }
 0x405   : > { %1815 = vmatprep.subr.bf16.mxu0 %v2199_v0  ;;  %v1005_v40 = vpack.c.bf16 %v1001_v36, %v1001_v36  ;;  %v1980_v41 = vpop.eup %1979  ;;  %v1964_v36 = vld [vmem:[%s2685_s11 + $0x18] sm:$0xff]  }
 0x406   : > { %v772_v37 = vld [vmem:[#allocation3 + $0x4] sm:$0xf]  ;;  %v774_v39 = vld [vmem:[#allocation3 + $0xc] sm:$0xf]  ;;  %v1003_v43 = vmul.f32 %v1980_v41, %v1972_v19 }
 0x407   : > { %1806 = vmatmul.mubr.msk.bf16.vlgmr.msra.gmra.mrb[12].mxu0 %vm775_vm3, %v1006_v35  ;;  %v1059_v38 = vsel %vm1011_vm4, %v772_v37, 0  ;;  %v1151_v42 = vsel %vm1011_vm4, %v774_v39, 0  ;;  %v1963_v35 = vld [vmem:[%s2685_s11 + $0x10] sm:$0xff]   ;;  %v1697_v37 = vld [vmem:[%s2729_s17] ss:$0 sm:$0xff]  ;;  %s2626_s17 = scalar_lea.hbm %s2735_s26, %s1710_s15 }
 0x408   : > { %1798 = vmatpush3.bf16.msra.mxu1 %v1059_v38  ;;  %1819 = vmatprep.mubr.msk.bf16.mxu0 %vm2200_vm0, %v2199_v0  ;;  %v1007_v44 = vpack.c.bf16 %v1003_v43, %v1003_v43 }
 0x409   : > { %1809 = vmatprep.subr.bf16.mxu1 %v2199_v0  ;;  %1816 = vmatpush3.bf16.msra.mxu0 %v1957_v53 }
 0x40a   : > { %1817 = vmatprep.subr.bf16.mxu0 %v2199_v0 }
 0x40b   : > { %1800 = vmatmul.mubr.msk.bf16.vlgmr.msra.gmra.mrb[16].mxu1 %vm775_vm3, %v1005_v40 }
 0x40c   : > { %1810 = vmatpush3.bf16.msra.mxu1 %v1151_v42  ;;  %1811 = vmatprep.mubr.msk.bf16.mxu1 %vm2200_vm0, %v2199_v0 }
 0x40d   : > { %1823 = vmatprep.subr.bf16.mxu1 %v2199_v0  ;;  %1818 = vmatpush3.bf16.msra.mxu0 %v1958_v56 }
 0x40e   : > { %1831 = vmatprep.subr.bf16.mxu0 %v2199_v0 }
 0x413   : > { %1812 = vmatmul.mubr.msk.bf16.vlgmr.msra.gmra.mrb[20].mxu1 %vm775_vm3, %v1007_v44 }
 0x414   : > { %1827 = vmatprep.mubr.msk.bf16.mxu1 %vm2200_vm0, %v2199_v0  ;;  %1824 = vmatpush3.bf16.msra.mxu1 %v1959_v23 }
 0x415   : > { %1825 = vmatprep.subr.bf16.mxu1 %v2199_v0 }
 0x46c   : > { %v1049_v45 = vpop.f32.mrb[8].mxu0 }
 0x46d   : > { %v1193_v46 = vpack.c.bf16 %v1049_v45, %v1049_v45  ;;  %v1795_v47 = vpop.f32.mrb[9].mxu0 }
 0x46e   : > { %v1052_v48 = vpop.f32.mrb[10].mxu0 }
 0x46f   : > { %1194 = vst.msk [vmem:[#allocation5] sm:$0xf] %vm632_vm2, %v1193_v46  ;;  %v1796_v49 = vpop.f32.mrb[11].mxu0 }
 0x4da   : > { %v1141_v50 = vpop.f32.mrb[12].mxu0 }
 0x4db   : > { %v1716_v51 = vpack.c.bf16 %v1141_v50, %v1141_v50  ;;  %v1807_v52 = vpop.f32.mrb[13].mxu0 }
 0x4dc   : > { %v1144_v54 = vpop.f32.mrb[14].mxu0 }
 0x4dd   : > { %1208 = vrot.lane.b32.xlu1 %v1716_v51, %s2208_s16  ;;  %v1808_v55 = vpop.f32.mrb[15].mxu0  ;;  %s2730_s16 = sld [smem:[#allocation30_spill]] }
 0x4de   : > { %v1095_v57 = vpop.f32.mrb[16].mxu1 }
 0x4df   : > { %v1715_v58 = vpack.c.bf16 %v1095_v57, %v1095_v57  ;;  %v1801_v59 = vpop.f32.mrb[17].mxu1 }
 0x4e0   : > { %v1098_v60 = vpop.f32.mrb[18].mxu1 }
 0x4e1   : > { %1199 = vrot.lane.b32.xlu0 %v1715_v58, %s2209_s22  ;;  %v1802_v61 = vpop.f32.mrb[19].mxu1  ;;  %s2731_s22 = sld [smem:[#allocation20_spill]] }
 0x4e6   : > { %v1187_v62 = vpop.f32.mrb[20].mxu1 }
 0x4e7   : > { %v1717_v63 = vpack.c.bf16 %v1187_v62, %v1187_v62  ;;  %v1813_v1 = vpop.f32.mrb[21].mxu1 }
 0x4e8   : > { %v1190_v2 = vpop.f32.mrb[22].mxu1 }
 0x4e9   : > { %1217 = vrot.lane.b32.xlu0 %v1717_v63, %s2210_s13  ;;  %v1814_v4 = vpop.f32.mrb[23].mxu1  ;;  %s550_s13 = sand.u32 1, %s2731_s22  }
 0x4ea   : > { %s1668_s19 = sshll.u32 %s550_s13, 3  ;;  %s1530_s25 = scalar_lea.sflag [#allocation8], %s550_s13 }
 0x4eb   : > { %s552_s27 = scalar_lea.vmem [#allocation14], %s1668_s19 }
 0x4ec   : > { %s1544_s20 = sshll.u32 %s552_s27, 4  ;;  %s2628_s20 = int_to_ptr.vmem [resolvable:$true] %s1544_s20 }
 0x4ed   : > { %s2101_s18 = scalar_lea.vmem %s2628_s20, 128 }
 0x4ee   : > { %p2102_p1 = scmp.ne.s32.totalorder %s2628_s20, %s2101_s18 }
 0x4f0   : > { %p2103_p8 = pnand %p2102_p1, %p2736_p4 }
 0x4f2   : > { %p2104_p10 = pneg %p2103_p8 }
 0x54f   : > { %v1209_v6 = vpop.permute.xlu1 %1208 }
 0x553   : > { %v1200_v5 = vpop.permute.xlu0 %1199 }
 0x554   : > { %1203 = vst.msk [vmem:[#allocation5] sm:$0xf] %vm1202_vm5, %v1200_v5 }
 0x555   : > { %1212 = vst.msk [vmem:[#allocation5] sm:$0xf] %vm1211_vm6, %v1209_v6  ;;  %v1701_v6 = vld [vmem:[%s2730_s16] ss:$0 sm:$0xff]  ;;  %s2105_s16 = sshll.u32 %s2211_s21, 4  ;;  %s2106_s16 = int_to_ptr.vmem [resolvable:$false] %s2105_s16 }
 0x556   : > { %s2107_s22 = scalar_lea.vmem %s2106_s16, 256  ;;  %p2108_p11 = scmp.lt.s32.totalorder %s2628_s20, %s2106_s16 }
 0x557   : > { %p2109_p3 = scmp.lt.s32.totalorder %s2107_s22, %s2101_s18 }
 0x559   : > { %p2110_p5 = por %p2109_p3, %p2108_p11 }
 0x55b   : > { %v1218_v7 = vpop.permute.xlu0 %1217  ;;  %p2111_p6 = pnand %p2110_p5, %p2104_p10 }
 0x55c   : > { %1221 = vst.msk [vmem:[#allocation5] sm:$0xf] %vm1220_vm7, %v1218_v7 }
 0x563   : > { %v1222_v8 = vld [vmem:[#allocation5] sm:$0xf] }
 0x564   : > { %1820 = vmatmul.mubr.msk.bf16.vlgmr.msra.gmra.mrb[16].mxu0 %vm587_vm1, %v1222_v8 }
 0x565   : > { %1839 = vmatprep.mubr.msk.bf16.mxu0 %vm2200_vm0, %v2199_v0  ;;  %1832 = vmatpush3.bf16.msra.mxu0 %v1961_v33 }
 0x566   : > { %1833 = vmatprep.subr.bf16.mxu0 %v2199_v0 }
 0x569   : > { %1834 = vmatpush3.bf16.msra.mxu0 %v1962_v34 }
 0x56a   : > { %1835 = vmatprep.subr.bf16.mxu0 %v2199_v0 }
 0x56d   : > { %1836 = vmatpush3.bf16.msra.mxu0 %v1963_v35 }
 0x56e   : > { %1837 = vmatprep.subr.bf16.mxu0 %v2199_v0 }
 0x571   : > { %1838 = vmatpush3.bf16.msra.mxu0 %v1964_v36 }
 0x637   : > { %v1283_v10 = vpop.f32.mrb[16].mxu0 }
 0x638   : > { %v1284_v11 = vadd.f32 %v1691_v9, %v1283_v10  ;;  %v1821_v13 = vpop.f32.mrb[17].mxu0 }
 0x639   : > { %v1286_v14 = vpop.f32.mrb[18].mxu0 }
 0x63a   : > { %v1822_v15 = vpop.f32.mrb[19].mxu0  ;;  %v1289_v16 = vadd.f32 %v1284_v11, %v2479_v3  ;;  %v1960_v3 = vld [vmem:[%s2683_s9 + $0x8] sm:$0xff]  }
 0x63b   : > { %1826 = vmatpush3.bf16.msra.mxu1 %v1960_v3  ;;  %v1707_v3 = vld [vmem:[%s2733_s12] ss:$0 sm:$0xff] }
 0x63c   : > { %v1292_v17 = vsel %vm587_vm1, %v1289_v16, 0.0 }
 0x63d   : > { %1293 = vadd.xlane.f32.xlu1 %v1292_v17 }
 0x6ca   : > { %v1294_v18 = vpop.xlane.xlu1 %1293 }
 0x6cb   : > { %v1296_v19 = vmul.f32 0.03125, %v1294_v18 }
 0x6cd   : > { %v1297_v20 = vsub.f32 %v1289_v16, %v1296_v19 }
 0x6cf   : > { %v1298_v21 = vmul.f32 %v1297_v20, %v1297_v20 }
 0x6d1   : > { %v1299_v22 = vsel %vm587_vm1, %v1298_v21, 0.0 }
 0x6d2   : > { %1300 = vadd.xlane.f32.xlu0 %v1299_v22 }
 0x75f   : > { %v1301_v24 = vpop.xlane.xlu0 %1300 }
 0x760   : > { %v1302_v25 = vmul.f32 0.03125, %v1301_v24 }
 0x762   : > { %v1303_v26 = vadd.f32 1e-12, %v1302_v25  ;;  %v1708_v25 = vld [vmem:[%s2734_s24] ss:$0 sm:$0xff] }
 0x764   : > { %1981 = vrsqrt.f32 %v1303_v26 }
 0x76e   : > { %v1982_v27 = vpop.eup %1981 }
 0x76f   : > { %v1305_v29 = vmul.f32 %v1982_v27, %v1297_v20 }
 0x771   : > { %v1312_v30 = vmul.f32 %v1695_v28, %v1305_v29 }
 0x773   : > { %v1319_v31 = vadd.f32 %v1696_v12, %v1312_v30 }
 0x775   : > { %v1320_v32 = vpack.c.bf16 %v1319_v31, %v1319_v31 }
 0x777   : > { %1828 = vmatmul.mubr.msk.bf16.vlgmr.msra.gmra.mrb[24].mxu1 %vm587_vm1, %v1320_v32 }
 0x84a   : > { %v1381_v38 = vpop.f32.mrb[24].mxu1 }
 0x84b   : > { %v1382_v39 = vadd.f32 %v1697_v37, %v1381_v38  ;;  %v1829_v40 = vpop.f32.mrb[25].mxu1 }
 0x84c   : > { %v1384_v41 = vpop.f32.mrb[26].mxu1 }
 0x84d   : > { %v1388_v42 = vmul.f32 0.70710677, %v1382_v39  ;;  %v1830_v43 = vpop.f32.mrb[27].mxu1  ;;  %v1387_v1 = vmul.f32 0.5, %v1382_v39 }
 0x84f   : > { %v1389_v44 = vand.u32 2147483647, %v1388_v42  ;;  %vm1409_vm8 = vcmp.ge.f32.partialorder %v1388_v42, 0.0 }
 0x851   : > { %v1390_v45 = vmul.f32 0.3275911, %v1389_v44  ;;  %v1403_v0 = vsub.f32 0.0, %v1389_v44 }
 0x853   : > { %v1391_v46 = vadd.f32 1.0, %v1390_v45  ;;  %v1404_v48 = vmul.f32 %v1403_v0, %v1389_v44 }
 0x855   : > { %1983 = vrcp.f32 %v1391_v46  ;;  %v1405_v51 = vmul.f32 1.442695, %v1404_v48 }
 0x857   : > { %1985 = vpow2.f32 %v1405_v51 }
 0x85f   : > { %v1984_v47 = vpop.eup %1983 }
 0x860   : > { %v1394_v49 = vmul.f32 1.0614054, %v1984_v47 }
 0x861   : > { %v1986_v59 = vpop.eup %1985 }
 0x862   : > { %v1395_v50 = vadd.f32 -1.4531521, %v1394_v49 }
 0x864   : > { %v1396_v52 = vmul.f32 %v1984_v47, %v1395_v50 }
 0x866   : > { %v1397_v53 = vadd.f32 1.4214138, %v1396_v52 }
 0x868   : > { %v1398_v54 = vmul.f32 %v1984_v47, %v1397_v53 }
 0x86a   : > { %v1399_v55 = vadd.f32 -0.28449672, %v1398_v54 }
 0x86c   : > { %v1400_v56 = vmul.f32 %v1984_v47, %v1399_v55 }
 0x86e   : > { %v1401_v57 = vadd.f32 0.2548296, %v1400_v56 }
 0x870   : > { %v1402_v58 = vmul.f32 %v1984_v47, %v1401_v57 }
 0x872   : > { %v1407_v60 = vmul.f32 %v1986_v59, %v1402_v58 }
 0x874   : > { %v1408_v61 = vsub.f32 1.0, %v1407_v60 }
 0x876   : > { %v1410_v62 = vsub.f32 0.0, %v1408_v61 }
 0x878   : > { %v1411_v63 = vsel %vm1409_vm8, %v1408_v61, %v1410_v62 }
 0x879   : > { %v1412_v2 = vadd.f32 1.0, %v1411_v63 }
 0x87b   : > { %v1413_v4 = vmul.f32 %v1412_v2, %v1387_v1 }
 0x87d   : > { %v1414_v5 = vpack.c.bf16 %v1413_v4, %v1413_v4 }
 0x87f   : > { %1840 = vmatmul.mubr.msk.bf16.vlgmr.msra.gmra.mrb[20].mxu0 %vm1454_vm9, %v1414_v5 }
 0x952   : > { %v1492_v7 = vpop.f32.mrb[20].mxu0 }
 0x953   : > { %v1493_v8 = vadd.f32 %v1701_v6, %v1492_v7  ;;  %v1841_v9 = vpop.f32.mrb[21].mxu0 }
 0x954   : > { %v1495_v10 = vpop.f32.mrb[22].mxu0 }
 0x955   : > { %v1842_v11 = vpop.f32.mrb[23].mxu0  ;;  %v1498_v13 = vadd.f32 %v1493_v8, %v1319_v31 }
 0x957   : > { %v1501_v14 = vsel %vm587_vm1, %v1498_v13, 0.0 }
 0x958   : > { %1502 = vadd.xlane.f32.xlu0 %v1501_v14 }
 0x9e5   : > { %v1503_v15 = vpop.xlane.xlu0 %1502 }
 0x9e6   : > { %v1504_v16 = vmul.f32 0.03125, %v1503_v15 }
 0x9e8   : > { %v1505_v17 = vsub.f32 %v1498_v13, %v1504_v16 }
 0x9ea   : > { %v1506_v18 = vmul.f32 %v1505_v17, %v1505_v17 }
 0x9ec   : > { %v1507_v19 = vsel %vm587_vm1, %v1506_v18, 0.0 }
 0x9ed   : > { %1508 = vadd.xlane.f32.xlu1 %v1507_v19 }
 0xa7a   : > { %v1509_v20 = vpop.xlane.xlu1 %1508 }
 0xa7b   : > { %v1510_v21 = vmul.f32 0.03125, %v1509_v20 }
 0xa7d   : > { %v1511_v22 = vadd.f32 1e-12, %v1510_v21 }
 0xa7f   : > { %1987 = vrsqrt.f32 %v1511_v22 }
 0xa89   : > { %v1988_v23 = vpop.eup %1987 }
 0xa8a   : > { %v1513_v24 = vmul.f32 %v1988_v23, %v1505_v17 }
 0xa8c   : > { %v1520_v26 = vmul.f32 %v1707_v3, %v1513_v24 }
 0xa8e   : > { %v1527_v27 = vadd.f32 %v1708_v25, %v1520_v26 }
 0xa90   : > { %1528 = vst.msk [vmem:[%s552_s27] sm:$0xff] %vm587_vm1, %v1527_v27 }
 0xa91   : > { %2114 = shalt.err (!%p2111_p6)
}
 0xa92   : > { %s2115_s13 = scalar_lea.hbm %s2626_s17, 128  ;;  %s2119_s10 = scalar_lea.hbm %s2735_s26, 256 }
 0xa93   : > { %p2116_p7 = scmp.ne.s32.totalorder %s2626_s17, %s2115_s13  ;;  %p2120_p0 = scmp.lt.u32.totalorder %s2626_s17, %s2735_s26 }
 0xa94   : > { %p2121_p2 = scmp.lt.u32.totalorder %s2119_s10, %s2115_s13  ;;  %p2123_p1 = scmp.lt.u32.totalorder %s2115_s13, %s2626_s17 }
 0xa95   : > { %p2117_p9 = pnand %p2116_p7, %p2736_p4 }
 0xa96   : > { %p2122_p13 = por %p2121_p2, %p2120_p0 }
 0xa97   : > { %p2118_p12 = pneg %p2117_p9 }
 0xa98   : > { %p2124_p8 = por %p2123_p1, %p2122_p13 }
 0xa9a   : > { %p2125_p10 = pnand %p2124_p8, %p2118_p12 }
 0xa9c   : > { %2128 = shalt.err (!%p2125_p10)
}
 0xa9d   : > { %1859 = dma.vmem_to_hbm [thread:$0]  (%p2736_p4), %s2628_s20, 128, %s2626_s17, %s1530_s25  }
 0xa9e PF: > { %s2737_s30 = sld [smem:[#allocation23_spill]]  ;;  %s2738_s24 = sld [smem:[#allocation19_spill]] }
 0xa9f   : > { %s2739_s15 = sld [smem:[#allocation26_spill]] }
 0xaa4   : > { %p1886_p11 = scmp.ge.s32.totalorder %s2737_s30, 2  ;;  %s1556_s27 = sand.u32 1, %s2738_s24  }
 0xaa5   : > { %p2740_p3 = scmp.ne.s32.totalorder %s2739_s15, 0  ;;  %s1557_s23 = scalar_lea.sflag [#allocation8], %s1556_s27 }
 0xaa7   : > { %p1875_p5 = pnand %p1886_p11, %p2740_p3 }
 0xaa9   : > { %2166 = dma.done.wait (!%p1875_p5), %s1557_s23, 128  }
 0xaaa   : > { %2168 = vsyncadd (!%p1875_p5), %s1557_s23, 4294967168  ;;  %s31_s23 = sadd.s32 1, %s2737_s30   ;;  %s2741_s18 = sld [smem:[#allocation20_spill]] }
 0xaab   : > { %p28_p6 = scmp.ge.s32.totalorder %s31_s23, 4   ;;  %s2742_s19 = sld [smem:[#allocation21_spill]] }
 0xaac   : > { %s2743_s20 = sld [smem:[#allocation27_spill]]  ;;  %s2744_s21 = sld [smem:[#allocation22_spill]] }
 0xaad   : > { %s2745_s22 = sld [smem:[#allocation24_spill]]  ;;  %30 = sbr.rel (!%p28_p6) target bundleno = 14 (0xe), region = 146 }
 0xab4   :  { %1562 = vsyncpa [#allocation7], 1 }
 0xab5   :  { %1564 = vsyncpa [#allocation7 + $0x1], 1 }
 0xab6   :  { %1565 = vsyncpa [#allocation10], 1 }
 0xab7   :  { %1566 = vsyncpa [#allocation13], 1 }
 0xab8   :  { %1567 = vsyncpa [#allocation8], 1 }
 0xab9   :  { %1569 = vsyncpa [#allocation8 + $0x1], 1 }

// kernel: tpu_custom_call.1
= control target key start
LH: loop header
LB: loop body
LE: loop exit
PB: predicated region body
PF: predicated region fallthrough
CT: control target
= control target key end

     0   :  { %s2674_s0 = inlined_call_operand.vmem [shape: f32[2,8,32], index: 0, kind: input, shape index: {}]   ;;  %s2675_s1 = inlined_call_operand.vmem [shape: bf16[32,32], index: 1, kind: input, shape index: {}]   ;;  %s2676_s2 = inlined_call_operand.vmem [shape: f32[1,32], index: 2, kind: input, shape index: {}]   ;;  %s2677_s3 = inlined_call_operand.vmem [shape: bf16[32,64], index: 3, kind: input, shape index: {}]   ;;  %s2678_s4 = inlined_call_operand.vmem [shape: f32[1,64], index: 4, kind: input, shape index: {}]   ;;  %s2679_s5 = inlined_call_operand.hbm [shape: bf16[32,32], index: 5, kind: input, shape index: {}]   ;;  %s2680_s6 = inlined_call_operand.hbm [shape: f32[1,32], index: 6, kind: input, shape index: {}]   ;;  %s2681_s7 = inlined_call_operand.hbm [shape: f32[1,32], index: 7, kind: input, shape index: {}]   ;;  %s2682_s8 = inlined_call_operand.hbm [shape: f32[1,32], index: 8, kind: input, shape index: {}]   ;;  %s2683_s9 = inlined_call_operand.vmem [shape: bf16[32,64], index: 9, kind: input, shape index: {}]   ;;  %s2684_s10 = inlined_call_operand.vmem [shape: f32[1,64], index: 10, kind: input, shape index: {}]   ;;  %s2685_s11 = inlined_call_operand.vmem [shape: bf16[64,32], index: 11, kind: input, shape index: {}]   ;;  %s2686_s12 = inlined_call_operand.vmem [shape: f32[1,32], index: 12, kind: input, shape index: {}]   ;;  %s2687_s13 = inlined_call_operand.vmem [shape: f32[1,32], index: 13, kind: input, shape index: {}]   ;;  %s2688_s14 = inlined_call_operand.vmem [shape: f32[1,32], index: 14, kind: input, shape index: {}]   ;;  %s2689_s15 = inlined_call_operand.hbm [shape: f32[2,8,32], index: 15, kind: output, shape index: {}]  }
   0x1   :  { %2705 = sst [smem:[#allocation28_spill]] %s2680_s6 }
   0x2   :  { %2706 = sst [smem:[#allocation29_spill]] %s2684_s10 }
   0x3   :  { %2707 = sst [smem:[#allocation30_spill]] %s2686_s12 }
   0x4   :  { %2708 = sst [smem:[#allocation31_spill]] %s2687_s13 }
   0x5   :  { %2709 = sst [smem:[#allocation32_spill]] %s2688_s14 }
   0x6   :  { %2710 = sst [smem:[#allocation33_spill]] %s2689_s15 }
   0x7   :  { %20 = vsyncpa [#allocation7], 0 }
   0x8   :  { %21 = vsyncpa [#allocation10], 0 }
   0x9   :  { %22 = vsyncpa [#allocation13], 0 }
   0xa   :  { %23 = vsyncpa [#allocation8], 0 }
   0xb   :  { %25 = vsyncpa [#allocation8 + $0x1], 0  ;;  %s2292_s18 = smov 0   ;;  %s2294_s19 = smov 0  }
   0xc   :  { %s2296_s20 = smov 0   ;;  %s2298_s21 = smov 0  }
   0xd   :  { %s2300_s22 = smov 0   ;;  %s2302_s23 = smov 0  }
   0xe LB: > { %2711 = sst [smem:[#allocation19_spill]] %s2171_s18  ;;  %s1655_s24 = sadd.s32 4294967295, %s2191_s23   ;;  %s2191_s23 = sphi %s2302_s23, %s31_s23   ;;  %s2187_s22 = sphi %s2300_s22, %s2745_s22   ;;  %s2183_s21 = sphi %s2298_s21, %s2744_s21   ;;  %s2179_s20 = sphi %s2296_s20, %s2743_s20   ;;  %s2175_s19 = sphi %s2294_s19, %s2742_s19   ;;  %s2171_s18 = sphi %s2292_s18, %s2741_s18  }
   0xf   : > { %2712 = sst [smem:[#allocation20_spill]] %s2175_s19  ;;  %s1656_s25 = sadd.s32 4294967294, %s2191_s23  }
  0x10   : > { %2713 = sst [smem:[#allocation21_spill]] %s2179_s20  ;;  %s43_s26 = sadd.s32 1, %s2187_s22 }
  0x11   : > { %2714 = sst [smem:[#allocation22_spill]] %s2187_s22  ;;  %s372_s27 = sadd.s32 1, %s2179_s20 }
  0x12   : > { %2715 = sst [smem:[#allocation23_spill]] %s2191_s23  ;;  %p45_p0 = scmp.ge.s32.totalorder %s43_s26, 2 }
  0x13   : > { %p382_p1 = scmp.ne.s32.totalorder %s2179_s20, %s2175_s19  ;;  %p383_p2 = scmp.eq.s32.totalorder %s1655_s24, 1 }
  0x14   : > { %p388_p3 = scmp.ne.s32.totalorder %s2175_s19, %s2171_s18  ;;  %s2747_s26 = smov (%p45_p0, %s43_s26), 0 }
  0x15   : > { %2716 = sst [smem:[#allocation24_spill]] %s2747_s26  ;;  %p2332_p4 = por %p383_p2, %p382_p1 }
  0x16   : > { %p389_p5 = scmp.eq.s32.totalorder %s1656_s25, 1  ;;  %s367_s29 = ssub.s32 %s2187_s22, %s2747_s26 }
  0x17   : > { %s2717_s28 = scalar_select %p2332_p4, 1, 0 }
  0x18   : > { %p1657_p6 = scmp.ge.s32.totalorder %s2191_s23, 1  ;;  %p370_p7 = scmp.eq.s32.totalorder %s367_s29, 0 }
  0x19   : > { %2718 = sst [smem:[#allocation25_spill]] %s2717_s28  ;;  %p2339_p8 = por %p389_p5, %p388_p3 }
  0x1a   : > { %p396_p9 = scmp.lt.s32.totalorder %s2191_s23, 3  ;;  %p2351_p11 = scmp.eq.s32.totalorder %s1655_s24, 0 }
  0x1b   : > { %s2719_s30 = scalar_select %p2339_p8, 1, 0 }
  0x1c   : > { %s2345_s16 = scalar_select %p370_p7, %s2179_s20, %s372_s27  }
  0x1d   : > { %2720 = sst [smem:[#allocation26_spill]] %s2719_s30  ;;  %p2347_p10 = pnand %p1657_p6, %p396_p9 }
  0x1e   : > { %2721 = sst [smem:[#allocation27_spill]] %s2345_s16  ;;  %s2193_s25 = smov [#allocation9]  }
  0x1f   : > { %s2722_s17 = scalar_select %p2347_p10, 1, 0 }
  0x20   : > { %s2723_s18 = scalar_select %p2351_p11, 1, 0 }
  0x21   : > { %p1861_p12 = pneg %p2347_p10  ;;  %s434_s29 = sshll.u32 %s2193_s25, 4  ;;  %s435_s29 = int_to_ptr.vmem [resolvable:$true] %s434_s29 }
  0x22   : > { %s2194_s27 = smov [#allocation6]   ;;  %s2725_s6 = sld [smem:[#allocation28_spill]] }
  0x23   : > { %p2359_p13 = pnand %p2351_p11, %p1861_p12  ;;  %s420_s22 = sshll.u32 %s2194_s27, 4  ;;  %s2363_s22 = int_to_ptr.vmem [resolvable:$true] %s420_s22 }
  0x25   : > { %p2373_p1 = pneg %p2359_p13 }
  0x28   : > { %s1989_s20 = scalar_lea.hbm %s2725_s6, 16 }
  0x29   : > { %p1990_p0 = scmp.ne.s32.totalorder %s2725_s6, %s1989_s20  ;;  %p1996_p5 = scmp.lt.u32.totalorder %s1989_s20, %s2725_s6 }
  0x2b   : > { %p1992_p2 = pnand %p2373_p1, %p1990_p0 }
  0x2d   : > { %p1993_p3 = pneg %p1992_p2 }
  0x2f   : > { %p1998_p6 = pnand %p1996_p5, %p1993_p3 }
  0x31   : > { %2001 = shalt.err (!%p1998_p6)
}
  0x32   : > { %s2002_s16 = scalar_lea.vmem %s435_s29, 16  ;;  %s2009_s23 = scalar_lea.vmem %s435_s29, 32 }
  0x33   : > { %p2003_p7 = scmp.ne.s32.totalorder %s435_s29, %s2002_s16  ;;  %p2010_p8 = scmp.lt.s32.totalorder %s435_s29, %s435_s29 }
  0x34   : > { %p2011_p4 = scmp.lt.s32.totalorder %s2009_s23, %s2002_s16 }
  0x35   : > { %p2005_p9 = pnand %p2003_p7, %p2373_p1 }
  0x36   : > { %p2012_p11 = por %p2011_p4, %p2010_p8 }
  0x37   : > { %p2006_p12 = pneg %p2005_p9 }
  0x39   : > { %p2013_p10 = pnand %p2012_p11, %p2006_p12 }
  0x3b   : > { %2016 = shalt.err (!%p2013_p10)
}
  0x3c   : > { %1867 = dma.hbm_to_vmem [thread:$0]  (!%p2359_p13), %s2725_s6, 16, %s435_s29, [#allocation10]  }
  0x3d   : > { %s2017_s27 = scalar_lea.hbm %s2679_s5, 256 }
  0x3e   : > { %p2018_p0 = scmp.ne.s32.totalorder %s2679_s5, %s2017_s27  ;;  %p2024_p8 = scmp.lt.u32.totalorder %s2017_s27, %s2679_s5 }
  0x40   : > { %p2020_p2 = pnand %p2018_p0, %p2373_p1 }
  0x42   : > { %p2021_p4 = pneg %p2020_p2 }
  0x44   : > { %p2026_p10 = pnand %p2024_p8, %p2021_p4 }
  0x46   : > { %2029 = shalt.err (!%p2026_p10)
}
  0x47   : > { %s2030_s29 = scalar_lea.vmem %s2363_s22, 256  ;;  %p2038_p6 = scmp.lt.s32.totalorder %s2363_s22, %s2363_s22 }
  0x48   : > { %p2031_p11 = scmp.ne.s32.totalorder %s2363_s22, %s2030_s29  ;;  %p2039_p7 = scmp.lt.s32.totalorder %s2030_s29, %s2030_s29 }
  0x4a   : > { %p2033_p3 = pnand %p2031_p11, %p2373_p1  ;;  %p2040_p9 = por %p2039_p7, %p2038_p6 }
  0x4c   : > { %p2034_p5 = pneg %p2033_p3 }
  0x4e   : > { %p2041_p12 = pnand %p2040_p9, %p2034_p5 }
  0x50   : > { %2044 = shalt.err (!%p2041_p12)
}
  0x51   : > { %s2195_s13 = smov 64   ;;  %s2196_s14 = smov 4  }
  0x52   : > { %1864 = dma.hbm_to_vmem [thread:$0]  (!%p2359_p13), %s2679_s5, 256, %s2363_s22, [#allocation7], %s2195_s13, %s2195_s13, %s2196_s14  }
  0x53   : > { %s2197_s15 = smov [#allocation11]   ;;  %s2198_s27 = smov [#allocation12]  }
  0x54   : > { %s445_s20 = sshll.u32 %s2197_s15, 4  ;;  %s456_s16 = sshll.u32 %s2198_s27, 4  ;;  %s446_s20 = int_to_ptr.vmem [resolvable:$true] %s445_s20  ;;  %s457_s16 = int_to_ptr.vmem [resolvable:$true] %s456_s16 }
  0x55   : > { %s2045_s6 = scalar_lea.hbm %s2681_s7, 16 }
  0x56   : > { %p2046_p0 = scmp.ne.s32.totalorder %s2681_s7, %s2045_s6  ;;  %p2052_p8 = scmp.lt.u32.totalorder %s2045_s6, %s2681_s7 }
  0x58   : > { %p2048_p2 = pnand %p2046_p0, %p2373_p1 }
  0x5a   : > { %p2049_p4 = pneg %p2048_p2 }
  0x5c   : > { %p2054_p10 = pnand %p2052_p8, %p2049_p4 }
  0x5e   : > { %2057 = shalt.err (!%p2054_p10)
}
  0x5f   : > { %s2058_s22 = scalar_lea.vmem %s446_s20, 16  ;;  %s2065_s13 = scalar_lea.vmem %s446_s20, 32 }
  0x60   : > { %p2059_p11 = scmp.ne.s32.totalorder %s446_s20, %s2058_s22  ;;  %p2066_p6 = scmp.lt.s32.totalorder %s446_s20, %s446_s20 }
  0x61   : > { %p2067_p7 = scmp.lt.s32.totalorder %s2065_s13, %s2058_s22 }
  0x62   : > { %p2061_p3 = pnand %p2059_p11, %p2373_p1 }
  0x63   : > { %p2068_p9 = por %p2067_p7, %p2066_p6 }
  0x64   : > { %p2062_p5 = pneg %p2061_p3 }
  0x66   : > { %p2069_p12 = pnand %p2068_p9, %p2062_p5 }
  0x68   : > { %2072 = shalt.err (!%p2069_p12)
}
  0x69   : > { %1870 = dma.hbm_to_vmem [thread:$0]  (!%p2359_p13), %s2681_s7, 16, %s446_s20, [#allocation10]  }
  0x6a   : > { %s2073_s12 = scalar_lea.hbm %s2682_s8, 16 }
  0x6b   : > { %p2074_p0 = scmp.ne.s32.totalorder %s2682_s8, %s2073_s12  ;;  %p2080_p8 = scmp.lt.u32.totalorder %s2073_s12, %s2682_s8 }
  0x6d   : > { %p2076_p2 = pnand %p2074_p0, %p2373_p1 }
  0x6f   : > { %p2077_p4 = pneg %p2076_p2 }
  0x71   : > { %p2082_p10 = pnand %p2080_p8, %p2077_p4 }
  0x73   : > { %2085 = shalt.err (!%p2082_p10)
}
  0x74   : > { %s2086_s27 = scalar_lea.vmem %s457_s16, 16  ;;  %s2093_s20 = scalar_lea.vmem %s457_s16, 32 }
  0x75   : > { %p2087_p11 = scmp.ne.s32.totalorder %s457_s16, %s2086_s27  ;;  %p2094_p6 = scmp.lt.s32.totalorder %s457_s16, %s457_s16 }
  0x76   : > { %p2095_p7 = scmp.lt.s32.totalorder %s2093_s20, %s2086_s27 }
  0x77   : > { %p2089_p3 = pnand %p2087_p11, %p2373_p1 }
  0x78   : > { %p2096_p9 = por %p2095_p7, %p2094_p6 }
  0x79   : > { %p2090_p5 = pneg %p2089_p3 }
  0x7b   : > { %p2097_p12 = pnand %p2096_p9, %p2090_p5 }
  0x7d   : > { %2100 = shalt.err (!%p2097_p12)
}
  0x7e   : > { %1873 = dma.hbm_to_vmem [thread:$0]  (!%p2359_p13), %s2682_s8, 16, %s457_s16, [#allocation13]  }
  0x7f   : > { %p2727_p0 = scmp.ne.s32.totalorder %s2722_s17, 0 }
  0x80   : > { %p2728_p2 = scmp.ne.s32.totalorder (!%p2727_p0), %s2723_s18, 0 }
  0x81   : > { %494 = sbr.rel (%p2727_p0) target bundleno = 2718 (0xa9e), region = 80 }
  0x88   : > { %2154 = dma.done.wait (%p2728_p2), [#allocation7], 256  }
  0x89   : > { %2156 = vsyncadd (%p2728_p2), [#allocation7], 4294967040 }
  0x8a   : > { %2158 = dma.done.wait (%p2728_p2), [#allocation10], 32  }
  0x8b   : > { %2160 = vsyncadd (%p2728_p2), [#allocation10], 4294967264 }
  0x8c   : > { %2162 = dma.done.wait (%p2728_p2), [#allocation13], 16  }
  0x8d   : > { %2164 = vsyncadd (%p2728_p2), [#allocation13], 4294967280  ;;  %p553_p13 = scmp.lt.s32.totalorder %s2183_s21, 1  ;;  %v2199_v0 = vmov 0.0   ;;  %vm2200_vm0 = vmmov 0   ;;  %v1953_v1 = vld [vmem:[%s2677_s3] sm:$0xff]  }
  0x8e   : > { %1751 = vmatprep.subr.bf16.mxu1 %v2199_v0  ;;  %1755 = vmatprep.mubr.msk.bf16.mxu1 %vm2200_vm0, %v2199_v0  ;;  %v1954_v2 = vld [vmem:[%s2677_s3 + $0x8] sm:$0xff]   ;;  %vm587_vm1 = vcmask 261120   ;;  %v1955_v4 = vld [vmem:[%s2675_s1] sm:$0xff]   ;;  %vm632_vm2 = vcmask 60416   ;;  %s2201_s15 = smov 104   ;;  %s2202_s27 = smov 120  }
  0x8f   : > { %s554_s26 = scalar_select %p553_p13, %s2183_s21, 1  ;;  %1767 = vmatprep.subr.bf16.mxu0 %v2199_v0  ;;  %1769 = vmatprep.mubr.msk.bf16.mxu0 %vm2200_vm0, %v2199_v0  ;;  %v1956_v6 = vld [vmem:[%s2675_s1 + $0x8] sm:$0xff]   ;;  %v1670_v7 = vld [vmem:[%s2678_s4] ss:$0 sm:$0xff]  ;;  %vm775_vm3 = vcmask 64512   ;;  %vm1011_vm4 = vcmask 1043456  }
  0x90   : > { %1752 = vmatpush3.bf16.msra.mxu1 %v1953_v1  ;;  %v1675_v14 = vld [vmem:[%s2676_s2] ss:$0 sm:$0xff]  ;;  %s2203_s29 = smov 112   ;;  %s2206_s25 = smov 72   ;;  %vm1202_vm5 = vcmask 126016   ;;  %vm1211_vm6 = vcmask 191616  }
  0x91   : > { %s1669_s17 = sshll.u32 %s554_s26, 3  ;;  %1753 = vmatprep.subr.bf16.mxu1 %v2199_v0  ;;  %s2204_s26 = smov 96   ;;  %vm1220_vm7 = vcmask 257216   ;;  %vm1454_vm9 = vcmask 523264  }
  0x92   : > { %s556_s16 = scalar_lea.vmem %s2674_s0, %s1669_s17  ;;  %s2205_s17 = smov 80  }
  0x93   : > { %v2479_v3 = vld [vmem:[%s556_s16] sm:$0xff]  ;;  %s2207_s18 = smov 88   ;;  %s2208_s16 = smov 16  }
  0x94   : > { %v563_v5 = vpack.c.bf16 %v2479_v3, %v2479_v3  ;;  %1754 = vmatpush3.bf16.msra.mxu1 %v1954_v2  ;;  %s2209_s22 = smov 8   ;;  %s2210_s13 = smov 24  }
  0x95   : > { %1759 = vmatprep.subr.bf16.mxu1 %v2199_v0  ;;  %s2732_s28 = sld [smem:[#allocation25_spill]]  ;;  %s2733_s12 = sld [smem:[#allocation31_spill]] }
  0x96   : > { %s2734_s24 = sld [smem:[#allocation32_spill]] }
  0x97   : > { %1756 = vmatmul.mubr.msk.bf16.vlgmr.msra.gmra.mrb[0].mxu1 %vm587_vm1, %v563_v5 }
  0x98   : > { %1760 = vmatpush3.bf16.msra.mxu1 %v1955_v4  ;;  %1763 = vmatprep.mubr.msk.bf16.mxu1 %vm2200_vm0, %v2199_v0 }
  0x99   : > { %1761 = vmatprep.subr.bf16.mxu1 %v2199_v0 }
  0x9b   : > { %p2736_p4 = scmp.ne.s32.totalorder %s2732_s28, 0 }
  0x9c   : > { %1762 = vmatpush3.bf16.msra.mxu1 %v1956_v6 }
  0x9d   : > { %1773 = vmatprep.subr.bf16.mxu1 %v2199_v0 }
  0x9f   : > { %1764 = vmatmul.mubr.msk.bf16.vlgmr.msra.gmra.mrb[4].mxu1 %vm587_vm1, %v563_v5 }
  0xa0   : > { %1775 = vmatprep.mubr.msk.bf16.mxu1 %vm2200_vm0, %v2199_v0 }
 0x16a   : > { %v625_v8 = vpop.f32.mrb[0].mxu1 }
 0x16b   : > { %v626_v9 = vadd.f32 %v1670_v7, %v625_v8  ;;  %v1757_v10 = vpop.f32.mrb[1].mxu1 }
 0x16c   : > { %v628_v11 = vpop.f32.mrb[2].mxu1 }
 0x16d   : > { %v2502_v12 = vpack.c.bf16 %v626_v9, %v626_v9  ;;  %v1758_v13 = vpop.f32.mrb[3].mxu1 }
 0x16f   : > { %633 = vst.msk [vmem:[#allocation2] sm:$0xf] %vm632_vm2, %v2502_v12  ;;  %661 = vrot.lane.b32.xlu1 %v2502_v12, %s2201_s15  ;;  %641 = vrot.lane.b32.xlu0 %v2502_v12, %s2202_s27 }
 0x172   : > { %v736_v15 = vpop.f32.mrb[4].mxu1 }
 0x173   : > { %v737_v16 = vadd.f32 %v1675_v14, %v736_v15  ;;  %651 = vrot.lane.b32.xlu0 %v2502_v12, %s2203_s29  ;;  %v1765_v17 = vpop.f32.mrb[5].mxu1 }
 0x174   : > { %v739_v18 = vpop.f32.mrb[6].mxu1 }
 0x175   : > { %v742_v19 = vpack.c.bf16 %v737_v16, %v737_v16  ;;  %v1766_v20 = vpop.f32.mrb[7].mxu1 }
 0x176   : > { %v767_v21 = vld [vmem:[#allocation2] sm:$0xf] }
 0x177   : > { %744 = vst.msk [vmem:[#allocation4] sm:$0xf] %vm632_vm2, %v742_v19  ;;  %753 = vrot.lane.b32.xlu0 %v742_v19, %s2203_s29  ;;  %748 = vrot.lane.b32.xlu1 %v742_v19, %s2202_s27  ;;  %v780_v22 = vsel %vm775_vm3, %v767_v21, 0 }
 0x178   : > { %1768 = vmatpush3.bf16.xpose.msra.mxu0 %v780_v22 }
 0x179   : > { %1779 = vmatprep.subr.bf16.mxu0 %v2199_v0 }
 0x17b   : > { %758 = vrot.lane.b32.xlu1 %v742_v19, %s2201_s15  ;;  %s1710_s15 = sshll.u32 %s2183_s21, 7  ;;  %s2211_s21 = smov [#allocation14]  }
 0x17e   : > { %v763_v23 = vld [vmem:[#allocation4] sm:$0xf] }
 0x17f   : > { %1770 = vmatmul.mubr.msk.bf16.vlgmr.msra.gmra.mrb[0].mxu0 %vm775_vm3, %v763_v23 }
 0x180   : > { %1781 = vmatprep.mubr.msk.bf16.mxu0 %vm2200_vm0, %v2199_v0 }
 0x1e1   : > { %v662_v24 = vpop.permute.xlu1 %661  ;;  %v642_v25 = vpop.permute.xlu0 %641 }
 0x1e2   : > { %665 = vst.msk [vmem:[#allocation2 + $0xc] sm:$0xf] %vm632_vm2, %v662_v24  ;;  %645 = vst.msk [vmem:[#allocation2 + $0x4] sm:$0xf] %vm632_vm2, %v642_v25 }
 0x1e5   : > { %v652_v26 = vpop.permute.xlu0 %651 }
 0x1e6   : > { %655 = vst.msk [vmem:[#allocation2 + $0x8] sm:$0xf] %vm632_vm2, %v652_v26 }
 0x1e9   : > { %v754_v27 = vpop.permute.xlu0 %753  ;;  %v749_v28 = vpop.permute.xlu1 %748  ;;  %v768_v29 = vld [vmem:[#allocation2 + $0x4] sm:$0xf]  ;;  %v770_v34 = vld [vmem:[#allocation2 + $0xc] sm:$0xf] }
 0x1ea   : > { %757 = vst.msk [vmem:[#allocation4 + $0x8] sm:$0xf] %vm632_vm2, %v754_v27  ;;  %752 = vst.msk [vmem:[#allocation4 + $0x4] sm:$0xf] %vm632_vm2, %v749_v28  ;;  %v826_v30 = vsel %vm775_vm3, %v768_v29, 0  ;;  %v918_v36 = vsel %vm775_vm3, %v770_v34, 0 }
 0x1eb   : > { %1774 = vmatpush3.bf16.xpose.msra.mxu1 %v826_v30 }
 0x1ec   : > { %1785 = vmatprep.subr.bf16.mxu1 %v2199_v0 }
 0x1ed   : > { %v759_v31 = vpop.permute.xlu1 %758  ;;  %v769_v32 = vld [vmem:[#allocation2 + $0x8] sm:$0xf] }
 0x1ee   : > { %762 = vst.msk [vmem:[#allocation4 + $0xc] sm:$0xf] %vm632_vm2, %v759_v31  ;;  %v872_v33 = vsel %vm775_vm3, %v769_v32, 0 }
 0x1ef   : > { %1780 = vmatpush3.bf16.xpose.msra.mxu0 %v872_v33 }
 0x1f0   : > { %1791 = vmatprep.subr.bf16.mxu0 %v2199_v0 }
 0x1f1   : > { %v764_v35 = vld [vmem:[#allocation4 + $0x4] sm:$0xf]  ;;  %v765_v37 = vld [vmem:[#allocation4 + $0x8] sm:$0xf] }
 0x1f2   : > { %1776 = vmatmul.mubr.msk.bf16.vlgmr.msra.gmra.mrb[8].mxu1 %vm775_vm3, %v764_v35 }
 0x1f3   : > { %1786 = vmatpush3.bf16.xpose.msra.mxu1 %v918_v36  ;;  %1787 = vmatprep.mubr.msk.bf16.mxu1 %vm2200_vm0, %v2199_v0 }
 0x1f4   : > { %1797 = vmatprep.subr.bf16.mxu1 %v2199_v0 }
 0x1f5   : > { %v766_v38 = vld [vmem:[#allocation4 + $0xc] sm:$0xf] }
 0x1f6   : > { %1782 = vmatmul.mubr.msk.bf16.vlgmr.msra.gmra.mrb[4].mxu0 %vm775_vm3, %v765_v37 }
 0x1f7   : > { %1793 = vmatprep.mubr.msk.bf16.mxu0 %vm2200_vm0, %v2199_v0 }
 0x1fa   : > { %1788 = vmatmul.mubr.msk.bf16.vlgmr.msra.gmra.mrb[12].mxu1 %vm775_vm3, %v766_v38 }
 0x1fb   : > { %1799 = vmatprep.mubr.msk.bf16.mxu1 %vm2200_vm0, %v2199_v0 }
 0x252   : > { %v816_v39 = vpop.f32.mrb[0].mxu0 }
 0x253   : > { %v1771_v40 = vpop.f32.mrb[1].mxu0  ;;  %v960_v41 = vsel %vm775_vm3, %v816_v39, -inf }
 0x254   : > { %961 = vmax.xlane.f32.xlu0 %v960_v41  ;;  %v819_v42 = vpop.f32.mrb[2].mxu0 }
 0x255   : > { %v1772_v43 = vpop.f32.mrb[3].mxu0 }
 0x2c5   : > { %v862_v44 = vpop.f32.mrb[8].mxu1 }
 0x2c6   : > { %v1777_v45 = vpop.f32.mrb[9].mxu1  ;;  %v963_v46 = vsel %vm775_vm3, %v862_v44, -inf }
 0x2c7   : > { %964 = vmax.xlane.f32.xlu1 %v963_v46  ;;  %v865_v47 = vpop.f32.mrb[10].mxu1 }
 0x2c8   : > { %v1778_v48 = vpop.f32.mrb[11].mxu1 }
 0x2c9   : > { %v908_v49 = vpop.f32.mrb[4].mxu0 }
 0x2ca   : > { %v1783_v50 = vpop.f32.mrb[5].mxu0  ;;  %v966_v51 = vsel %vm775_vm3, %v908_v49, -inf }
 0x2cb   : > { %967 = vmax.xlane.f32.xlu0 %v966_v51  ;;  %v911_v52 = vpop.f32.mrb[6].mxu0 }
 0x2cc   : > { %v1784_v53 = vpop.f32.mrb[7].mxu0 }
 0x2cd   : > { %v954_v54 = vpop.f32.mrb[12].mxu1  ;;  %v1957_v53 = vld [vmem:[#allocation6] sm:$0xff]  }
 0x2ce   : > { %v1789_v55 = vpop.f32.mrb[13].mxu1  ;;  %v969_v56 = vsel %vm775_vm3, %v954_v54, -inf }
 0x2cf   : > { %970 = vmax.xlane.f32.xlu0 %v969_v56  ;;  %v957_v57 = vpop.f32.mrb[14].mxu1  ;;  %v1958_v56 = vld [vmem:[#allocation6 + $0x8] sm:$0xff]  }
 0x2d0   : > { %v1790_v58 = vpop.f32.mrb[15].mxu1 }
 0x2d8   : > { %637 = vrot.lane.b32.xlu1 %v2502_v12, %s2204_s26  ;;  %s2735_s26 = sld [smem:[#allocation33_spill]] }
 0x2e1   : > { %v962_v59 = vpop.xlane.xlu0 %961 }
 0x2e2   : > { %v972_v60 = vsub.f32 %v816_v39, %v962_v59 }
 0x2e4   : > { %v976_v61 = vmul.f32 1.442695, %v972_v60 }
 0x2e6   : > { %1965 = vpow2.f32 %v976_v61 }
 0x2f0   : > { %v1966_v62 = vpop.eup %1965 }
 0x2f1   : > { %v984_v63 = vsel %vm775_vm3, %v1966_v62, 0.0 }
 0x2fc   : > { %985 = vadd.xlane.f32.xlu1 %v984_v63 }
 0x354   : > { %v965_v1 = vpop.xlane.xlu1 %964 }
 0x355   : > { %v973_v2 = vsub.f32 %v862_v44, %v965_v1 }
 0x357   : > { %v978_v4 = vmul.f32 1.442695, %v973_v2 }
 0x358   : > { %v968_v5 = vpop.xlane.xlu0 %967  ;;  %v638_v6 = vpop.permute.xlu1 %637 }
 0x359   : > { %1967 = vpow2.f32 %v978_v4  ;;  %v974_v7 = vsub.f32 %v908_v49, %v968_v5  ;;  %640 = vst.msk [vmem:[#allocation3] sm:$0xf] %vm632_vm2, %v638_v6 }
 0x35b   : > { %v980_v8 = vmul.f32 1.442695, %v974_v7 }
 0x35c   : > { %v971_v9 = vpop.xlane.xlu0 %970 }
 0x35d   : > { %1969 = vpow2.f32 %v980_v8  ;;  %v975_v10 = vsub.f32 %v954_v54, %v971_v9  ;;  %v1691_v9 = vld [vmem:[#allocation9] ss:$0 sm:$0xff] }
 0x35f   : > { %v982_v11 = vmul.f32 1.442695, %v975_v10 }
 0x360   : > { %v771_v13 = vld [vmem:[#allocation3] sm:$0xf] }
 0x361   : > { %1971 = vpow2.f32 %v982_v11  ;;  %v1013_v14 = vsel %vm1011_vm4, %v771_v13, 0 }
 0x362   : > { %1792 = vmatpush3.bf16.msra.mxu0 %v1013_v14 }
 0x363   : > { %v1968_v15 = vpop.eup %1967  ;;  %1803 = vmatprep.subr.bf16.mxu0 %v2199_v0 }
 0x364   : > { %v987_v16 = vsel %vm775_vm3, %v1968_v15, 0.0 }
 0x365   : > { %988 = vadd.xlane.f32.xlu0 %v987_v16 }
 0x367   : > { %v1970_v17 = vpop.eup %1969 }
 0x368   : > { %v990_v18 = vsel %vm775_vm3, %v1970_v17, 0.0 }
 0x369   : > { %991 = vadd.xlane.f32.xlu1 %v990_v18 }
 0x36b   : > { %v1972_v19 = vpop.eup %1971 }
 0x36c   : > { %v993_v20 = vsel %vm775_vm3, %v1972_v19, 0.0 }
 0x36d   : > { %994 = vadd.xlane.f32.xlu0 %v993_v20 }
 0x37a   : > { %656 = vrot.lane.b32.xlu1 %v2502_v12, %s2205_s17  ;;  %s2729_s17 = sld [smem:[#allocation29_spill]] }
 0x37e   : > { %666 = vrot.lane.b32.xlu1 %v2502_v12, %s2206_s25 }
 0x383   : > { %646 = vrot.lane.b32.xlu0 %v2502_v12, %s2207_s18 }
 0x389   : > { %v986_v21 = vpop.xlane.xlu1 %985 }
 0x38a   : > { %1973 = vrcp.f32 %v986_v21 }
 0x394   : > { %v1974_v22 = vpop.eup %1973 }
 0x395   : > { %v1000_v23 = vmul.f32 %v1974_v22, %v1966_v62 }
 0x397   : > { %v1004_v24 = vpack.c.bf16 %v1000_v23, %v1000_v23  ;;  %v1959_v23 = vld [vmem:[%s2683_s9] sm:$0xff]  }
 0x399   : > { %1794 = vmatmul.mubr.msk.bf16.vlgmr.msra.gmra.mrb[8].mxu0 %vm775_vm3, %v1004_v24 }
 0x39a   : > { %1805 = vmatprep.mubr.msk.bf16.mxu0 %vm2200_vm0, %v2199_v0 }
 0x3f2   : > { %v989_v25 = vpop.xlane.xlu0 %988 }
 0x3f6   : > { %v992_v26 = vpop.xlane.xlu1 %991 }
 0x3f7   : > { %1975 = vrcp.f32 %v992_v26 }
 0x3f8   : > { %1977 = vrcp.f32 %v989_v25 }
 0x3fa   : > { %v657_v27 = vpop.permute.xlu1 %656  ;;  %v995_v28 = vpop.xlane.xlu0 %994 }
 0x3fb   : > { %660 = vst.msk [vmem:[#allocation3 + $0x8] sm:$0xf] %vm632_vm2, %v657_v27  ;;  %1979 = vrcp.f32 %v995_v28  ;;  %v1695_v28 = vld [vmem:[#allocation11] ss:$0 sm:$0xff] }
 0x3fe   : > { %v667_v29 = vpop.permute.xlu1 %666  ;;  %v647_v12 = vpop.permute.xlu0 %646 }
 0x3ff   : > { %670 = vst.msk [vmem:[#allocation3 + $0xc] sm:$0xf] %vm632_vm2, %v667_v29  ;;  %650 = vst.msk [vmem:[#allocation3 + $0x4] sm:$0xf] %vm632_vm2, %v647_v12  ;;  %v1696_v12 = vld [vmem:[#allocation12] ss:$0 sm:$0xff] }
 0x401   : > { %v1976_v30 = vpop.eup %1975 }
 0x402   : > { %v1978_v31 = vpop.eup %1977  ;;  %v1002_v32 = vmul.f32 %v1976_v30, %v1970_v17  ;;  %v773_v33 = vld [vmem:[#allocation3 + $0x8] sm:$0xf] }
 0x403   : > { %v1105_v34 = vsel %vm1011_vm4, %v773_v33, 0  ;;  %v1001_v36 = vmul.f32 %v1978_v31, %v1968_v15  ;;  %v1961_v33 = vld [vmem:[%s2685_s11] sm:$0xff]  }
 0x404   : > { %1804 = vmatpush3.bf16.msra.mxu0 %v1105_v34  ;;  %v1006_v35 = vpack.c.bf16 %v1002_v32, %v1002_v32  ;;  %v1962_v34 = vld [vmem:[%s2685_s11 + $0x8] sm:$0xff]  }
 0x405   : > { %1815 = vmatprep.subr.bf16.mxu0 %v2199_v0  ;;  %v1005_v40 = vpack.c.bf16 %v1001_v36, %v1001_v36  ;;  %v1980_v41 = vpop.eup %1979  ;;  %v1964_v36 = vld [vmem:[%s2685_s11 + $0x18] sm:$0xff]  }
 0x406   : > { %v772_v37 = vld [vmem:[#allocation3 + $0x4] sm:$0xf]  ;;  %v774_v39 = vld [vmem:[#allocation3 + $0xc] sm:$0xf]  ;;  %v1003_v43 = vmul.f32 %v1980_v41, %v1972_v19 }
 0x407   : > { %1806 = vmatmul.mubr.msk.bf16.vlgmr.msra.gmra.mrb[12].mxu0 %vm775_vm3, %v1006_v35  ;;  %v1059_v38 = vsel %vm1011_vm4, %v772_v37, 0  ;;  %v1151_v42 = vsel %vm1011_vm4, %v774_v39, 0  ;;  %v1963_v35 = vld [vmem:[%s2685_s11 + $0x10] sm:$0xff]   ;;  %v1697_v37 = vld [vmem:[%s2729_s17] ss:$0 sm:$0xff]  ;;  %s2626_s17 = scalar_lea.hbm %s2735_s26, %s1710_s15 }
 0x408   : > { %1798 = vmatpush3.bf16.msra.mxu1 %v1059_v38  ;;  %1819 = vmatprep.mubr.msk.bf16.mxu0 %vm2200_vm0, %v2199_v0  ;;  %v1007_v44 = vpack.c.bf16 %v1003_v43, %v1003_v43 }
 0x409   : > { %1809 = vmatprep.subr.bf16.mxu1 %v2199_v0  ;;  %1816 = vmatpush3.bf16.msra.mxu0 %v1957_v53 }
 0x40a   : > { %1817 = vmatprep.subr.bf16.mxu0 %v2199_v0 }
 0x40b   : > { %1800 = vmatmul.mubr.msk.bf16.vlgmr.msra.gmra.mrb[16].mxu1 %vm775_vm3, %v1005_v40 }
 0x40c   : > { %1810 = vmatpush3.bf16.msra.mxu1 %v1151_v42  ;;  %1811 = vmatprep.mubr.msk.bf16.mxu1 %vm2200_vm0, %v2199_v0 }
 0x40d   : > { %1823 = vmatprep.subr.bf16.mxu1 %v2199_v0  ;;  %1818 = vmatpush3.bf16.msra.mxu0 %v1958_v56 }
 0x40e   : > { %1831 = vmatprep.subr.bf16.mxu0 %v2199_v0 }
 0x413   : > { %1812 = vmatmul.mubr.msk.bf16.vlgmr.msra.gmra.mrb[20].mxu1 %vm775_vm3, %v1007_v44 }
 0x414   : > { %1827 = vmatprep.mubr.msk.bf16.mxu1 %vm2200_vm0, %v2199_v0  ;;  %1824 = vmatpush3.bf16.msra.mxu1 %v1959_v23 }
 0x415   : > { %1825 = vmatprep.subr.bf16.mxu1 %v2199_v0 }
 0x46c   : > { %v1049_v45 = vpop.f32.mrb[8].mxu0 }
 0x46d   : > { %v1193_v46 = vpack.c.bf16 %v1049_v45, %v1049_v45  ;;  %v1795_v47 = vpop.f32.mrb[9].mxu0 }
 0x46e   : > { %v1052_v48 = vpop.f32.mrb[10].mxu0 }
 0x46f   : > { %1194 = vst.msk [vmem:[#allocation5] sm:$0xf] %vm632_vm2, %v1193_v46  ;;  %v1796_v49 = vpop.f32.mrb[11].mxu0 }
 0x4da   : > { %v1141_v50 = vpop.f32.mrb[12].mxu0 }
 0x4db   : > { %v1716_v51 = vpack.c.bf16 %v1141_v50, %v1141_v50  ;;  %v1807_v52 = vpop.f32.mrb[13].mxu0 }
 0x4dc   : > { %v1144_v54 = vpop.f32.mrb[14].mxu0 }
 0x4dd   : > { %1208 = vrot.lane.b32.xlu1 %v1716_v51, %s2208_s16  ;;  %v1808_v55 = vpop.f32.mrb[15].mxu0  ;;  %s2730_s16 = sld [smem:[#allocation30_spill]] }
 0x4de   : > { %v1095_v57 = vpop.f32.mrb[16].mxu1 }
 0x4df   : > { %v1715_v58 = vpack.c.bf16 %v1095_v57, %v1095_v57  ;;  %v1801_v59 = vpop.f32.mrb[17].mxu1 }
 0x4e0   : > { %v1098_v60 = vpop.f32.mrb[18].mxu1 }
 0x4e1   : > { %1199 = vrot.lane.b32.xlu0 %v1715_v58, %s2209_s22  ;;  %v1802_v61 = vpop.f32.mrb[19].mxu1  ;;  %s2731_s22 = sld [smem:[#allocation20_spill]] }
 0x4e6   : > { %v1187_v62 = vpop.f32.mrb[20].mxu1 }
 0x4e7   : > { %v1717_v63 = vpack.c.bf16 %v1187_v62, %v1187_v62  ;;  %v1813_v1 = vpop.f32.mrb[21].mxu1 }
 0x4e8   : > { %v1190_v2 = vpop.f32.mrb[22].mxu1 }
 0x4e9   : > { %1217 = vrot.lane.b32.xlu0 %v1717_v63, %s2210_s13  ;;  %v1814_v4 = vpop.f32.mrb[23].mxu1  ;;  %s550_s13 = sand.u32 1, %s2731_s22  }
 0x4ea   : > { %s1668_s19 = sshll.u32 %s550_s13, 3  ;;  %s1530_s25 = scalar_lea.sflag [#allocation8], %s550_s13 }
 0x4eb   : > { %s552_s27 = scalar_lea.vmem [#allocation14], %s1668_s19 }
 0x4ec   : > { %s1544_s20 = sshll.u32 %s552_s27, 4  ;;  %s2628_s20 = int_to_ptr.vmem [resolvable:$true] %s1544_s20 }
 0x4ed   : > { %s2101_s18 = scalar_lea.vmem %s2628_s20, 128 }
 0x4ee   : > { %p2102_p1 = scmp.ne.s32.totalorder %s2628_s20, %s2101_s18 }
 0x4f0   : > { %p2103_p8 = pnand %p2102_p1, %p2736_p4 }
 0x4f2   : > { %p2104_p10 = pneg %p2103_p8 }
 0x54f   : > { %v1209_v6 = vpop.permute.xlu1 %1208 }
 0x553   : > { %v1200_v5 = vpop.permute.xlu0 %1199 }
 0x554   : > { %1203 = vst.msk [vmem:[#allocation5] sm:$0xf] %vm1202_vm5, %v1200_v5 }
 0x555   : > { %1212 = vst.msk [vmem:[#allocation5] sm:$0xf] %vm1211_vm6, %v1209_v6  ;;  %v1701_v6 = vld [vmem:[%s2730_s16] ss:$0 sm:$0xff]  ;;  %s2105_s16 = sshll.u32 %s2211_s21, 4  ;;  %s2106_s16 = int_to_ptr.vmem [resolvable:$false] %s2105_s16 }
 0x556   : > { %s2107_s22 = scalar_lea.vmem %s2106_s16, 256  ;;  %p2108_p11 = scmp.lt.s32.totalorder %s2628_s20, %s2106_s16 }
 0x557   : > { %p2109_p3 = scmp.lt.s32.totalorder %s2107_s22, %s2101_s18 }
 0x559   : > { %p2110_p5 = por %p2109_p3, %p2108_p11 }
 0x55b   : > { %v1218_v7 = vpop.permute.xlu0 %1217  ;;  %p2111_p6 = pnand %p2110_p5, %p2104_p10 }
 0x55c   : > { %1221 = vst.msk [vmem:[#allocation5] sm:$0xf] %vm1220_vm7, %v1218_v7 }
 0x563   : > { %v1222_v8 = vld [vmem:[#allocation5] sm:$0xf] }
 0x564   : > { %1820 = vmatmul.mubr.msk.bf16.vlgmr.msra.gmra.mrb[16].mxu0 %vm587_vm1, %v1222_v8 }
 0x565   : > { %1839 = vmatprep.mubr.msk.bf16.mxu0 %vm2200_vm0, %v2199_v0  ;;  %1832 = vmatpush3.bf16.msra.mxu0 %v1961_v33 }
 0x566   : > { %1833 = vmatprep.subr.bf16.mxu0 %v2199_v0 }
 0x569   : > { %1834 = vmatpush3.bf16.msra.mxu0 %v1962_v34 }
 0x56a   : > { %1835 = vmatprep.subr.bf16.mxu0 %v2199_v0 }
 0x56d   : > { %1836 = vmatpush3.bf16.msra.mxu0 %v1963_v35 }
 0x56e   : > { %1837 = vmatprep.subr.bf16.mxu0 %v2199_v0 }
 0x571   : > { %1838 = vmatpush3.bf16.msra.mxu0 %v1964_v36 }
 0x637   : > { %v1283_v10 = vpop.f32.mrb[16].mxu0 }
 0x638   : > { %v1284_v11 = vadd.f32 %v1691_v9, %v1283_v10  ;;  %v1821_v13 = vpop.f32.mrb[17].mxu0 }
 0x639   : > { %v1286_v14 = vpop.f32.mrb[18].mxu0 }
 0x63a   : > { %v1822_v15 = vpop.f32.mrb[19].mxu0  ;;  %v1289_v16 = vadd.f32 %v1284_v11, %v2479_v3  ;;  %v1960_v3 = vld [vmem:[%s2683_s9 + $0x8] sm:$0xff]  }
 0x63b   : > { %1826 = vmatpush3.bf16.msra.mxu1 %v1960_v3  ;;  %v1707_v3 = vld [vmem:[%s2733_s12] ss:$0 sm:$0xff] }
 0x63c   : > { %v1292_v17 = vsel %vm587_vm1, %v1289_v16, 0.0 }
 0x63d   : > { %1293 = vadd.xlane.f32.xlu1 %v1292_v17 }
 0x6ca   : > { %v1294_v18 = vpop.xlane.xlu1 %1293 }
 0x6cb   : > { %v1296_v19 = vmul.f32 0.03125, %v1294_v18 }
 0x6cd   : > { %v1297_v20 = vsub.f32 %v1289_v16, %v1296_v19 }
 0x6cf   : > { %v1298_v21 = vmul.f32 %v1297_v20, %v1297_v20 }
 0x6d1   : > { %v1299_v22 = vsel %vm587_vm1, %v1298_v21, 0.0 }
 0x6d2   : > { %1300 = vadd.xlane.f32.xlu0 %v1299_v22 }
 0x75f   : > { %v1301_v24 = vpop.xlane.xlu0 %1300 }
 0x760   : > { %v1302_v25 = vmul.f32 0.03125, %v1301_v24 }
 0x762   : > { %v1303_v26 = vadd.f32 1e-12, %v1302_v25  ;;  %v1708_v25 = vld [vmem:[%s2734_s24] ss:$0 sm:$0xff] }
 0x764   : > { %1981 = vrsqrt.f32 %v1303_v26 }
 0x76e   : > { %v1982_v27 = vpop.eup %1981 }
 0x76f   : > { %v1305_v29 = vmul.f32 %v1982_v27, %v1297_v20 }
 0x771   : > { %v1312_v30 = vmul.f32 %v1695_v28, %v1305_v29 }
 0x773   : > { %v1319_v31 = vadd.f32 %v1696_v12, %v1312_v30 }
 0x775   : > { %v1320_v32 = vpack.c.bf16 %v1319_v31, %v1319_v31 }
 0x777   : > { %1828 = vmatmul.mubr.msk.bf16.vlgmr.msra.gmra.mrb[24].mxu1 %vm587_vm1, %v1320_v32 }
 0x84a   : > { %v1381_v38 = vpop.f32.mrb[24].mxu1 }
 0x84b   : > { %v1382_v39 = vadd.f32 %v1697_v37, %v1381_v38  ;;  %v1829_v40 = vpop.f32.mrb[25].mxu1 }
 0x84c   : > { %v1384_v41 = vpop.f32.mrb[26].mxu1 }
 0x84d   : > { %v1388_v42 = vmul.f32 0.70710677, %v1382_v39  ;;  %v1830_v43 = vpop.f32.mrb[27].mxu1  ;;  %v1387_v1 = vmul.f32 0.5, %v1382_v39 }
 0x84f   : > { %v1389_v44 = vand.u32 2147483647, %v1388_v42  ;;  %vm1409_vm8 = vcmp.ge.f32.partialorder %v1388_v42, 0.0 }
 0x851   : > { %v1390_v45 = vmul.f32 0.3275911, %v1389_v44  ;;  %v1403_v0 = vsub.f32 0.0, %v1389_v44 }
 0x853   : > { %v1391_v46 = vadd.f32 1.0, %v1390_v45  ;;  %v1404_v48 = vmul.f32 %v1403_v0, %v1389_v44 }
 0x855   : > { %1983 = vrcp.f32 %v1391_v46  ;;  %v1405_v51 = vmul.f32 1.442695, %v1404_v48 }
 0x857   : > { %1985 = vpow2.f32 %v1405_v51 }
 0x85f   : > { %v1984_v47 = vpop.eup %1983 }
 0x860   : > { %v1394_v49 = vmul.f32 1.0614054, %v1984_v47 }
 0x861   : > { %v1986_v59 = vpop.eup %1985 }
 0x862   : > { %v1395_v50 = vadd.f32 -1.4531521, %v1394_v49 }
 0x864   : > { %v1396_v52 = vmul.f32 %v1984_v47, %v1395_v50 }
 0x866   : > { %v1397_v53 = vadd.f32 1.4214138, %v1396_v52 }
 0x868   : > { %v1398_v54 = vmul.f32 %v1984_v47, %v1397_v53 }
 0x86a   : > { %v1399_v55 = vadd.f32 -0.28449672, %v1398_v54 }
 0x86c   : > { %v1400_v56 = vmul.f32 %v1984_v47, %v1399_v55 }
 0x86e   : > { %v1401_v57 = vadd.f32 0.2548296, %v1400_v56 }
 0x870   : > { %v1402_v58 = vmul.f32 %v1984_v47, %v1401_v57 }
 0x872   : > { %v1407_v60 = vmul.f32 %v1986_v59, %v1402_v58 }
 0x874   : > { %v1408_v61 = vsub.f32 1.0, %v1407_v60 }
 0x876   : > { %v1410_v62 = vsub.f32 0.0, %v1408_v61 }
 0x878   : > { %v1411_v63 = vsel %vm1409_vm8, %v1408_v61, %v1410_v62 }
 0x879   : > { %v1412_v2 = vadd.f32 1.0, %v1411_v63 }
 0x87b   : > { %v1413_v4 = vmul.f32 %v1412_v2, %v1387_v1 }
 0x87d   : > { %v1414_v5 = vpack.c.bf16 %v1413_v4, %v1413_v4 }
 0x87f   : > { %1840 = vmatmul.mubr.msk.bf16.vlgmr.msra.gmra.mrb[20].mxu0 %vm1454_vm9, %v1414_v5 }
 0x952   : > { %v1492_v7 = vpop.f32.mrb[20].mxu0 }
 0x953   : > { %v1493_v8 = vadd.f32 %v1701_v6, %v1492_v7  ;;  %v1841_v9 = vpop.f32.mrb[21].mxu0 }
 0x954   : > { %v1495_v10 = vpop.f32.mrb[22].mxu0 }
 0x955   : > { %v1842_v11 = vpop.f32.mrb[23].mxu0  ;;  %v1498_v13 = vadd.f32 %v1493_v8, %v1319_v31 }
 0x957   : > { %v1501_v14 = vsel %vm587_vm1, %v1498_v13, 0.0 }
 0x958   : > { %1502 = vadd.xlane.f32.xlu0 %v1501_v14 }
 0x9e5   : > { %v1503_v15 = vpop.xlane.xlu0 %1502 }
 0x9e6   : > { %v1504_v16 = vmul.f32 0.03125, %v1503_v15 }
 0x9e8   : > { %v1505_v17 = vsub.f32 %v1498_v13, %v1504_v16 }
 0x9ea   : > { %v1506_v18 = vmul.f32 %v1505_v17, %v1505_v17 }
 0x9ec   : > { %v1507_v19 = vsel %vm587_vm1, %v1506_v18, 0.0 }
 0x9ed   : > { %1508 = vadd.xlane.f32.xlu1 %v1507_v19 }
 0xa7a   : > { %v1509_v20 = vpop.xlane.xlu1 %1508 }
 0xa7b   : > { %v1510_v21 = vmul.f32 0.03125, %v1509_v20 }
 0xa7d   : > { %v1511_v22 = vadd.f32 1e-12, %v1510_v21 }
 0xa7f   : > { %1987 = vrsqrt.f32 %v1511_v22 }
 0xa89   : > { %v1988_v23 = vpop.eup %1987 }
 0xa8a   : > { %v1513_v24 = vmul.f32 %v1988_v23, %v1505_v17 }
 0xa8c   : > { %v1520_v26 = vmul.f32 %v1707_v3, %v1513_v24 }
 0xa8e   : > { %v1527_v27 = vadd.f32 %v1708_v25, %v1520_v26 }
 0xa90   : > { %1528 = vst.msk [vmem:[%s552_s27] sm:$0xff] %vm587_vm1, %v1527_v27 }
 0xa91   : > { %2114 = shalt.err (!%p2111_p6)
}
 0xa92   : > { %s2115_s13 = scalar_lea.hbm %s2626_s17, 128  ;;  %s2119_s10 = scalar_lea.hbm %s2735_s26, 256 }
 0xa93   : > { %p2116_p7 = scmp.ne.s32.totalorder %s2626_s17, %s2115_s13  ;;  %p2120_p0 = scmp.lt.u32.totalorder %s2626_s17, %s2735_s26 }
 0xa94   : > { %p2121_p2 = scmp.lt.u32.totalorder %s2119_s10, %s2115_s13  ;;  %p2123_p1 = scmp.lt.u32.totalorder %s2115_s13, %s2626_s17 }
 0xa95   : > { %p2117_p9 = pnand %p2116_p7, %p2736_p4 }
 0xa96   : > { %p2122_p13 = por %p2121_p2, %p2120_p0 }
 0xa97   : > { %p2118_p12 = pneg %p2117_p9 }
 0xa98   : > { %p2124_p8 = por %p2123_p1, %p2122_p13 }
 0xa9a   : > { %p2125_p10 = pnand %p2124_p8, %p2118_p12 }
 0xa9c   : > { %2128 = shalt.err (!%p2125_p10)
}
 0xa9d   : > { %1859 = dma.vmem_to_hbm [thread:$0]  (%p2736_p4), %s2628_s20, 128, %s2626_s17, %s1530_s25  }
 0xa9e PF: > { %s2737_s30 = sld [smem:[#allocation23_spill]]  ;;  %s2738_s24 = sld [smem:[#allocation19_spill]] }
 0xa9f   : > { %s2739_s15 = sld [smem:[#allocation26_spill]] }
 0xaa4   : > { %p1886_p11 = scmp.ge.s32.totalorder %s2737_s30, 2  ;;  %s1556_s27 = sand.u32 1, %s2738_s24  }
 0xaa5   : > { %p2740_p3 = scmp.ne.s32.totalorder %s2739_s15, 0  ;;  %s1557_s23 = scalar_lea.sflag [#allocation8], %s1556_s27 }
 0xaa7   : > { %p1875_p5 = pnand %p1886_p11, %p2740_p3 }
 0xaa9   : > { %2166 = dma.done.wait (!%p1875_p5), %s1557_s23, 128  }
 0xaaa   : > { %2168 = vsyncadd (!%p1875_p5), %s1557_s23, 4294967168  ;;  %s31_s23 = sadd.s32 1, %s2737_s30   ;;  %s2741_s18 = sld [smem:[#allocation20_spill]] }
 0xaab   : > { %p28_p6 = scmp.ge.s32.totalorder %s31_s23, 4   ;;  %s2742_s19 = sld [smem:[#allocation21_spill]] }
 0xaac   : > { %s2743_s20 = sld [smem:[#allocation27_spill]]  ;;  %s2744_s21 = sld [smem:[#allocation22_spill]] }
 0xaad   : > { %s2745_s22 = sld [smem:[#allocation24_spill]]  ;;  %30 = sbr.rel (!%p28_p6) target bundleno = 14 (0xe), region = 146 }
 0xab4   :  { %1562 = vsyncpa [#allocation7], 1 }
 0xab5   :  { %1564 = vsyncpa [#allocation7 + $0x1], 1 }
 0xab6   :  { %1565 = vsyncpa [#allocation10], 1 }
 0xab7   :  { %1566 = vsyncpa [#allocation13], 1 }
 0xab8   :  { %1567 = vsyncpa [#allocation8], 1 }
 0xab9   :  { %1569 = vsyncpa [#allocation8 + $0x1], 1 }

</bundles_post_ra>
